<compile_context>
chip_gen: v6e
topology: v6e:2x2x1
jax: 0.10.0
libtpu: 0.0.40
codegen_flags: <defaults>
</compile_context>

<pallas_src>
import functools

import jax
import jax.numpy as jnp
from jax.experimental import pallas as pl
from jax.experimental.pallas import tpu as pltpu


def _round_up(v, m):
    return ((v + m - 1) // m) * m


def _dynamic_conv_kernel(x_ref, k_ref, w_ref, bias_ref, o_ref, xp_sc, dw_sc,
                         *, Hx, Wx, Hk, Wk, C, pad, woff):
    # ---- stage 0: build the zero-padded image in the bf16 VMEM scratch ---------
    # Only the halo strips are zeroed (interior is overwritten below).  They are
    # re-zeroed every grid step so a megacore-split batch axis stays safe.
    if pad > 0:
        wlo = woff - pad
        whi = woff + Wx + pad
        zrow = jnp.zeros((pad, whi - wlo, C), xp_sc.dtype)
        xp_sc[0:pad, wlo:whi, :] = zrow                                  # top band
        xp_sc[pad + Hx:pad + Hx + pad, wlo:whi, :] = zrow                # bottom band
        zcol = jnp.zeros((Hx, pad, C), xp_sc.dtype)
        xp_sc[pad:pad + Hx, wlo:woff, :] = zcol                          # left strip
        xp_sc[pad:pad + Hx, woff + Wx:whi, :] = zcol                     # right strip
    # Interior copy at a 16-sublane-aligned W offset -> unmasked, phase-matched vst.
    xp_sc[pad:pad + Hx, woff:woff + Wx, :] = x_ref[0]

    # ---- stage 1: depthwise taps, f32 register accumulation per 8-row chunk ----
    ker = k_ref[0].astype(jnp.float32)                       # (Hk, Wk, C) tiny, f32 taps
    # Hoist the Hk*Wk tap slices out of the chunk loop (JAX does not CSE them).
    taps = [[ker[dy, dx, :].reshape(1, 1, C) for dx in range(Wk)] for dy in range(Hk)]
    bias = bias_ref[...]                                     # (1, C) f32 (folded BN bias)

    RH = 8
    for r0 in range(0, Hx, RH):
        rh = min(RH, Hx - r0)                                # static short tail chunk
        acc = None
        for dy in range(Hk):
            for dx in range(Wk):
                # Depthwise cross-correlation tap (matches F.conv2d, groups=C).
                # dx/dy shift is realised as an offset VMEM load (vld slot), not a
                # register sublane shift (XLU/vxt slot).
                band = xp_sc[r0 + dy:r0 + dy + rh,
                             woff - pad + dx:woff - pad + dx + Wx, :].astype(jnp.float32)
                term = band * taps[dy][dx]
                acc = term if acc is None else acc + term    # first tap peeled
        # Stage the depthwise result as the bf16 LHS of the 1x1 conv matmul.
        dw_sc[r0 * Wx:(r0 + rh) * Wx, :] = acc.reshape(rh * Wx, C).astype(dw_sc.dtype)

    # ---- stage 2: single large-M 1x1 conv on the MXU + folded BN bias + ReLU ---
    y = jnp.dot(dw_sc[...], w_ref[...], preferred_element_type=jnp.float32)  # (Hx*Wx, C)
    y = jnp.maximum(y + bias, 0.0)
    o_ref[0, :, :, :] = y.reshape(Hx, Wx, C).astype(o_ref.dtype)


def dynamic_conv(x, k, w_point, gamma, beta, run_mean, run_var, eps=1e-5):
    """x: (B, C, Hx, Wx) NCHW; k: (B, C, Hk, Wk) NCHW per-sample depthwise kernels."""
    B, C, Hx, Wx = x.shape
    _, _, Hk, Wk = k.shape
    # F.conv2d(..., padding=Hk // 2) only keeps the spatial shape for odd, square
    # kernels; the PyTorch module implicitly requires that (it writes the conv
    # result back into an (x_H, x_W) buffer).
    assert Hk == Wk and Hk % 2 == 1, "dynamic kernel must be odd and square"
    pad = Hk // 2
    Hp = Hx + 2 * pad
    woff = _round_up(pad, 16)                      # 16-aligned image W offset in the scratch
    wp_alloc = _round_up(woff + Wx + pad, 16)      # scratch W extent (tile-friendly)

    # NCHW -> NHWC (channels-last = lane dim); bf16 HBM transfer, f32 math in-kernel.
    # TODO(synk): keep the surrounding model NHWC to drop these full-tensor transposes;
    # at these shapes they move as many HBM bytes as the kernel itself.
    x_nhwc = jnp.transpose(x, (0, 2, 3, 1)).astype(jnp.bfloat16)
    k_nhwc = jnp.transpose(k, (0, 2, 3, 1)).astype(jnp.bfloat16)

    # Fold eval-mode BN scale into the 1x1 weight; only the bias survives in-kernel.
    # TODO(synk): train-mode BN (batch statistics) is not implemented.
    scale = gamma / jnp.sqrt(run_var + eps)
    bias = (beta - run_mean * scale).astype(jnp.float32)
    w_t = (w_point * scale[:, None]).T.astype(jnp.bfloat16)   # (C_in, C_out)

    kern = functools.partial(_dynamic_conv_kernel, Hx=Hx, Wx=Wx, Hk=Hk, Wk=Wk,
                             C=C, pad=pad, woff=woff)

    # VMEM limit: leave headroom vs physical capacity (v7x has only 64 MiB per core;
    # v5e/v6e have 128 MiB).  Falls back to a conservative 48 MiB if the query fails.
    try:
        vmem_cap = int(pltpu.get_tpu_info().vmem_capacity_bytes)
    except Exception:
        vmem_cap = 64 * 1024 * 1024
    vmem_limit = int(min(64 * 1024 * 1024, (vmem_cap * 3) // 4))

    # Advisory cost estimate so XLA schedules the surrounding layout ops sensibly.
    flops = 2 * B * Hx * Wx * C * (Hk * Wk + C)
    bytes_accessed = (2 * 2 * B * Hx * Wx * C      # x in + out (bf16)
                      + 2 * B * Hk * Wk * C        # dynamic kernels (bf16)
                      + 2 * C * C + 4 * C)         # folded weight (bf16) + bias (f32)

    out_nhwc = pl.pallas_call(
        kern,
        out_shape=jax.ShapeDtypeStruct((B, Hx, Wx, C), jnp.bfloat16),
        grid_spec=pltpu.PrefetchScalarGridSpec(
            num_scalar_prefetch=0,
            grid=(B,),
            in_specs=[
                pl.BlockSpec((1, Hx, Wx, C), lambda b: (b, 0, 0, 0)),   # image
                pl.BlockSpec((1, Hk, Wk, C), lambda b: (b, 0, 0, 0)),   # dynamic kernel
                pl.BlockSpec((C, C), lambda b: (0, 0)),                 # folded 1x1 weight
                pl.BlockSpec((1, C), lambda b: (0, 0)),                 # folded BN bias
            ],
            out_specs=pl.BlockSpec((1, Hx, Wx, C), lambda b: (b, 0, 0, 0)),
            scratch_shapes=[
                pltpu.VMEM((Hp, wp_alloc, C), jnp.bfloat16),   # padded image (bf16)
                pltpu.VMEM((Hx * Wx, C), jnp.bfloat16),        # depthwise result / matmul LHS
            ]),
        compiler_params=pltpu.CompilerParams(
            dimension_semantics=("parallel",),
            vmem_limit_bytes=vmem_limit),
        cost_estimate=pl.CostEstimate(flops=flops, transcendentals=0,
                                      bytes_accessed=bytes_accessed),
    )(x_nhwc, k_nhwc, w_t, bias[None, :])

    # TODO(synk): for large B on v7x, process BB images per grid step (block
    # (BB, Hx, Wx, C)) sharing one (BB*Hx*Wx, C)@(C, C) matmul to amortize per-step
    # overhead; for very large HxW add a halo-aware row-band grid axis.
    return jnp.transpose(out_nhwc, (0, 3, 1, 2)).astype(jnp.float32)


def dynamic_conv_ref(x, k, w_point, gamma, beta, run_mean, run_var, eps=1e-5,
                     io_dtype=jnp.float32):
    """Pure-JAX reference mirroring the PyTorch forward (eval-mode BN).

    io_dtype=jnp.bfloat16 mirrors the kernel's bf16 transfer precision (f32 accumulate)
    so the tight correctness check isolates kernel bugs from expected quantization."""
    B, C, Hx, Wx = x.shape
    _, _, Hk, Wk = k.shape
    pad = Hk // 2
    xq = x.astype(io_dtype).astype(jnp.float32)
    kq = k.astype(io_dtype).astype(jnp.float32)
    xp = jnp.pad(xq, ((0, 0), (0, 0), (pad, pad), (pad, pad)))
    acc = jnp.zeros((B, C, Hx, Wx), jnp.float32)
    for dy in range(Hk):
        for dx in range(Wk):
            acc = acc + xp[:, :, dy:dy + Hx, dx:dx + Wx] * kq[:, :, dy:dy + 1, dx:dx + 1]
    scale = gamma / jnp.sqrt(run_var + eps)
    bias = beta - run_mean * scale
    w_s = (w_point * scale[:, None]).astype(io_dtype).astype(jnp.float32)
    acc_q = acc.astype(io_dtype).astype(jnp.float32)
    y = jnp.einsum('bchw,oc->bohw', acc_q, w_s)
    y = jnp.maximum(y + bias[None, :, None, None], 0.0)
    return y.astype(io_dtype).astype(jnp.float32)


if __name__ == "__main__":
    key = jax.random.PRNGKey(0)
    kx, kk, kw, kg, kb, km, kv = jax.random.split(key, 7)

    B, C, Hx, Wx = 2, 128, 16, 16   # C=128 = module default -> lane-dense blocks
    Hk = Wk = 3                     # odd dynamic kernel -> "same" padding

    x = jax.random.normal(kx, (B, C, Hx, Wx), jnp.float32)
    k = jax.random.normal(kk, (B, C, Hk, Wk), jnp.float32)

    # BasicConv2dRelu params: 1x1 conv (bias=False) + BatchNorm2d (eval mode).
    w_point = jax.random.normal(kw, (C, C), jnp.float32) * 0.1      # (C_out, C_in)
    gamma = 1.0 + 0.1 * jax.random.normal(kg, (C,), jnp.float32)    # bn.weight
    beta = 0.1 * jax.random.normal(kb, (C,), jnp.float32)           # bn.bias
    run_mean = 0.1 * jax.random.normal(km, (C,), jnp.float32)       # bn.running_mean
    run_var = jax.random.uniform(kv, (C,), jnp.float32, 0.5, 1.5)   # bn.running_var

    out = jax.block_until_ready(
        dynamic_conv(x, k, w_point, gamma, beta, run_mean, run_var))
    assert out.shape == (B, C, Hx, Wx) and out.dtype == jnp.float32

    # Tight check vs a reference mirroring the kernel's bf16 transfer precision.
    ref_bf16 = dynamic_conv_ref(x, k, w_point, gamma, beta, run_mean, run_var,
                                io_dtype=jnp.bfloat16)
    err_bf16 = float(jnp.max(jnp.abs(out - ref_bf16)))
    assert jnp.allclose(out, ref_bf16, atol=2e-2, rtol=2e-2), err_bf16

    # Coarse sanity check vs the true f32 module (catches unintended precision
    # collapse / structural bugs; tolerance covers expected bf16 transfer error).
    ref_f32 = dynamic_conv_ref(x, k, w_point, gamma, beta, run_mean, run_var,
                               io_dtype=jnp.float32)
    err_f32 = float(jnp.max(jnp.abs(out - ref_f32)))
    assert jnp.allclose(out, ref_f32, atol=0.75, rtol=0.1), err_f32

    print("KERNEL_OK")
</pallas_src>

<mosaic_0001>
module attributes {stable_mosaic.version = 11 : i64} {
  func.func @_dynamic_conv_kernel(%arg0: i32, %arg1: memref<1x16x16x128xbf16, #tpu.memory_space<vmem>>, %arg2: memref<1x3x3x128xbf16, #tpu.memory_space<vmem>>, %arg3: memref<128x128xbf16, #tpu.memory_space<vmem>>, %arg4: memref<1x128xf32, #tpu.memory_space<vmem>>, %arg5: memref<1x16x16x128xbf16, #tpu.memory_space<vmem>>, %arg6: memref<18x48x128xbf16, #tpu.memory_space<vmem>>, %arg7: memref<256x128xbf16, #tpu.memory_space<vmem>>) attributes {dimension_semantics = [#tpu.dimension_semantics<parallel>], iteration_bounds = array<i64: 2>, scalar_prefetch = 0 : i64, scratch_operands = 2 : i64, tpu.core_type = #tpu.core_type<tc>, window_params = [{transform_indices = @transform_0, window_bounds = array<i64: 1, 16, 16, 128>}, {transform_indices = @transform_1, window_bounds = array<i64: 1, 3, 3, 128>}, {pipeline_mode = #tpu.pipeline_mode<synchronous>, transform_indices = @transform_2, window_bounds = array<i64: 128, 128>}, {pipeline_mode = #tpu.pipeline_mode<synchronous>, transform_indices = @transform_3, window_bounds = array<i64: 1, 128>}, {transform_indices = @transform_4, window_bounds = array<i64: 1, 16, 16, 128>}]} {
    %cst = arith.constant 0.000000e+00 : bf16
    %0 = vector.broadcast %cst : bf16 to vector<1x18x128xbf16>
    %c0 = arith.constant 0 : index
    %c15 = arith.constant 15 : index
    %c0_0 = arith.constant 0 : index
    %1 = vector.load %arg6[%c0, %c15, %c0_0] : memref<18x48x128xbf16, #tpu.memory_space<vmem>>, vector<1x18x128xbf16>
    tpu.vector_store %arg6[%c0, %c15, %c0_0], %0 {strides = array<i32>} : memref<18x48x128xbf16, #tpu.memory_space<vmem>>, vector<1x18x128xbf16>,
    %c17 = arith.constant 17 : index
    %c15_1 = arith.constant 15 : index
    %c0_2 = arith.constant 0 : index
    %2 = vector.load %arg6[%c17, %c15_1, %c0_2] : memref<18x48x128xbf16, #tpu.memory_space<vmem>>, vector<1x18x128xbf16>
    tpu.vector_store %arg6[%c17, %c15_1, %c0_2], %0 {strides = array<i32>} : memref<18x48x128xbf16, #tpu.memory_space<vmem>>, vector<1x18x128xbf16>,
    %cst_3 = arith.constant 0.000000e+00 : bf16
    %3 = vector.broadcast %cst_3 : bf16 to vector<16x1x128xbf16>
    %c1 = arith.constant 1 : index
    %c15_4 = arith.constant 15 : index
    %c0_5 = arith.constant 0 : index
    %4 = vector.load %arg6[%c1, %c15_4, %c0_5] : memref<18x48x128xbf16, #tpu.memory_space<vmem>>, vector<16x1x128xbf16>
    tpu.vector_store %arg6[%c1, %c15_4, %c0_5], %3 {strides = array<i32>} : memref<18x48x128xbf16, #tpu.memory_space<vmem>>, vector<16x1x128xbf16>,
    %c1_6 = arith.constant 1 : index
    %c32 = arith.constant 32 : index
    %c0_7 = arith.constant 0 : index
    %5 = vector.load %arg6[%c1_6, %c32, %c0_7] : memref<18x48x128xbf16, #tpu.memory_space<vmem>>, vector<16x1x128xbf16>
    tpu.vector_store %arg6[%c1_6, %c32, %c0_7], %3 {strides = array<i32>} : memref<18x48x128xbf16, #tpu.memory_space<vmem>>, vector<16x1x128xbf16>,
    %c0_8 = arith.constant 0 : index
    %c0_9 = arith.constant 0 : index
    %c0_10 = arith.constant 0 : index
    %c0_11 = arith.constant 0 : index
    %6 = vector.load %arg1[%c0_8, %c0_9, %c0_10, %c0_11] : memref<1x16x16x128xbf16, #tpu.memory_space<vmem>>, vector<1x16x16x128xbf16>
    %7 = vector.shape_cast %6 : vector<1x16x16x128xbf16> to vector<16x16x128xbf16>
    %c1_12 = arith.constant 1 : index
    %c16 = arith.constant 16 : index
    %c0_13 = arith.constant 0 : index
    %8 = vector.load %arg6[%c1_12, %c16, %c0_13] : memref<18x48x128xbf16, #tpu.memory_space<vmem>>, vector<16x16x128xbf16>
    tpu.vector_store %arg6[%c1_12, %c16, %c0_13], %7 {strides = array<i32>} : memref<18x48x128xbf16, #tpu.memory_space<vmem>>, vector<16x16x128xbf16>,
    %c0_14 = arith.constant 0 : index
    %c0_15 = arith.constant 0 : index
    %c0_16 = arith.constant 0 : index
    %c0_17 = arith.constant 0 : index
    %9 = vector.load %arg2[%c0_14, %c0_15, %c0_16, %c0_17] : memref<1x3x3x128xbf16, #tpu.memory_space<vmem>>, vector<1x3x3x128xbf16>
    %10 = vector.shape_cast %9 : vector<1x3x3x128xbf16> to vector<3x3x128xbf16>
    %11 = arith.extf %10 : vector<3x3x128xbf16> to vector<3x3x128xf32>
    %12 = vector.extract_strided_slice %11 {offsets = [0, 0, 0], sizes = [1, 1, 128], strides = [1, 1, 1]} : vector<3x3x128xf32> to vector<1x1x128xf32>
    %13 = vector.shape_cast %12 : vector<1x1x128xf32> to vector<128xf32>
    %14 = vector.shape_cast %13 : vector<128xf32> to vector<1x1x128xf32>
    %15 = vector.extract_strided_slice %11 {offsets = [0, 1, 0], sizes = [1, 1, 128], strides = [1, 1, 1]} : vector<3x3x128xf32> to vector<1x1x128xf32>
    %16 = vector.shape_cast %15 : vector<1x1x128xf32> to vector<128xf32>
    %17 = vector.shape_cast %16 : vector<128xf32> to vector<1x1x128xf32>
    %18 = vector.extract_strided_slice %11 {offsets = [0, 2, 0], sizes = [1, 1, 128], strides = [1, 1, 1]} : vector<3x3x128xf32> to vector<1x1x128xf32>
    %19 = vector.shape_cast %18 : vector<1x1x128xf32> to vector<128xf32>
    %20 = vector.shape_cast %19 : vector<128xf32> to vector<1x1x128xf32>
    %21 = vector.extract_strided_slice %11 {offsets = [1, 0, 0], sizes = [1, 1, 128], strides = [1, 1, 1]} : vector<3x3x128xf32> to vector<1x1x128xf32>
    %22 = vector.shape_cast %21 : vector<1x1x128xf32> to vector<128xf32>
    %23 = vector.shape_cast %22 : vector<128xf32> to vector<1x1x128xf32>
    %24 = vector.extract_strided_slice %11 {offsets = [1, 1, 0], sizes = [1, 1, 128], strides = [1, 1, 1]} : vector<3x3x128xf32> to vector<1x1x128xf32>
    %25 = vector.shape_cast %24 : vector<1x1x128xf32> to vector<128xf32>
    %26 = vector.shape_cast %25 : vector<128xf32> to vector<1x1x128xf32>
    %27 = vector.extract_strided_slice %11 {offsets = [1, 2, 0], sizes = [1, 1, 128], strides = [1, 1, 1]} : vector<3x3x128xf32> to vector<1x1x128xf32>
    %28 = vector.shape_cast %27 : vector<1x1x128xf32> to vector<128xf32>
    %29 = vector.shape_cast %28 : vector<128xf32> to vector<1x1x128xf32>
    %30 = vector.extract_strided_slice %11 {offsets = [2, 0, 0], sizes = [1, 1, 128], strides = [1, 1, 1]} : vector<3x3x128xf32> to vector<1x1x128xf32>
    %31 = vector.shape_cast %30 : vector<1x1x128xf32> to vector<128xf32>
    %32 = vector.shape_cast %31 : vector<128xf32> to vector<1x1x128xf32>
    %33 = vector.extract_strided_slice %11 {offsets = [2, 1, 0], sizes = [1, 1, 128], strides = [1, 1, 1]} : vector<3x3x128xf32> to vector<1x1x128xf32>
    %34 = vector.shape_cast %33 : vector<1x1x128xf32> to vector<128xf32>
    %35 = vector.shape_cast %34 : vector<128xf32> to vector<1x1x128xf32>
    %36 = vector.extract_strided_slice %11 {offsets = [2, 2, 0], sizes = [1, 1, 128], strides = [1, 1, 1]} : vector<3x3x128xf32> to vector<1x1x128xf32>
    %37 = vector.shape_cast %36 : vector<1x1x128xf32> to vector<128xf32>
    %38 = vector.shape_cast %37 : vector<128xf32> to vector<1x1x128xf32>
    %c0_18 = arith.constant 0 : index
    %c0_19 = arith.constant 0 : index
    %39 = vector.load %arg4[%c0_18, %c0_19] : memref<1x128xf32, #tpu.memory_space<vmem>>, vector<1x128xf32>
    %c0_20 = arith.constant 0 : index
    %c15_21 = arith.constant 15 : index
    %c0_22 = arith.constant 0 : index
    %40 = vector.load %arg6[%c0_20, %c15_21, %c0_22] : memref<18x48x128xbf16, #tpu.memory_space<vmem>>, vector<8x16x128xbf16>
    %41 = arith.extf %40 : vector<8x16x128xbf16> to vector<8x16x128xf32>
    %42 = vector.broadcast %14 : vector<1x1x128xf32> to vector<8x16x128xf32>
    %43 = arith.mulf %41, %42 : vector<8x16x128xf32>
    %c0_23 = arith.constant 0 : index
    %c16_24 = arith.constant 16 : index
    %c0_25 = arith.constant 0 : index
    %44 = vector.load %arg6[%c0_23, %c16_24, %c0_25] : memref<18x48x128xbf16, #tpu.memory_space<vmem>>, vector<8x16x128xbf16>
    %45 = arith.extf %44 : vector<8x16x128xbf16> to vector<8x16x128xf32>
    %46 = vector.broadcast %17 : vector<1x1x128xf32> to vector<8x16x128xf32>
    %47 = arith.mulf %45, %46 : vector<8x16x128xf32>
    %48 = arith.addf %43, %47 : vector<8x16x128xf32>
    %c0_26 = arith.constant 0 : index
    %c17_27 = arith.constant 17 : index
    %c0_28 = arith.constant 0 : index
    %49 = vector.load %arg6[%c0_26, %c17_27, %c0_28] : memref<18x48x128xbf16, #tpu.memory_space<vmem>>, vector<8x16x128xbf16>
    %50 = arith.extf %49 : vector<8x16x128xbf16> to vector<8x16x128xf32>
    %51 = vector.broadcast %20 : vector<1x1x128xf32> to vector<8x16x128xf32>
    %52 = arith.mulf %50, %51 : vector<8x16x128xf32>
    %53 = arith.addf %48, %52 : vector<8x16x128xf32>
    %c1_29 = arith.constant 1 : index
    %c15_30 = arith.constant 15 : index
    %c0_31 = arith.constant 0 : index
    %54 = vector.load %arg6[%c1_29, %c15_30, %c0_31] : memref<18x48x128xbf16, #tpu.memory_space<vmem>>, vector<8x16x128xbf16>
    %55 = arith.extf %54 : vector<8x16x128xbf16> to vector<8x16x128xf32>
    %56 = vector.broadcast %23 : vector<1x1x128xf32> to vector<8x16x128xf32>
    %57 = arith.mulf %55, %56 : vector<8x16x128xf32>
    %58 = arith.addf %53, %57 : vector<8x16x128xf32>
    %c1_32 = arith.constant 1 : index
    %c16_33 = arith.constant 16 : index
    %c0_34 = arith.constant 0 : index
    %59 = vector.load %arg6[%c1_32, %c16_33, %c0_34] : memref<18x48x128xbf16, #tpu.memory_space<vmem>>, vector<8x16x128xbf16>
    %60 = arith.extf %59 : vector<8x16x128xbf16> to vector<8x16x128xf32>
    %61 = vector.broadcast %26 : vector<1x1x128xf32> to vector<8x16x128xf32>
    %62 = arith.mulf %60, %61 : vector<8x16x128xf32>
    %63 = arith.addf %58, %62 : vector<8x16x128xf32>
    %c1_35 = arith.constant 1 : index
    %c17_36 = arith.constant 17 : index
    %c0_37 = arith.constant 0 : index
    %64 = vector.load %arg6[%c1_35, %c17_36, %c0_37] : memref<18x48x128xbf16, #tpu.memory_space<vmem>>, vector<8x16x128xbf16>
    %65 = arith.extf %64 : vector<8x16x128xbf16> to vector<8x16x128xf32>
    %66 = vector.broadcast %29 : vector<1x1x128xf32> to vector<8x16x128xf32>
    %67 = arith.mulf %65, %66 : vector<8x16x128xf32>
    %68 = arith.addf %63, %67 : vector<8x16x128xf32>
    %c2 = arith.constant 2 : index
    %c15_38 = arith.constant 15 : index
    %c0_39 = arith.constant 0 : index
    %69 = vector.load %arg6[%c2, %c15_38, %c0_39] : memref<18x48x128xbf16, #tpu.memory_space<vmem>>, vector<8x16x128xbf16>
    %70 = arith.extf %69 : vector<8x16x128xbf16> to vector<8x16x128xf32>
    %71 = vector.broadcast %32 : vector<1x1x128xf32> to vector<8x16x128xf32>
    %72 = arith.mulf %70, %71 : vector<8x16x128xf32>
    %73 = arith.addf %68, %72 : vector<8x16x128xf32>
    %c2_40 = arith.constant 2 : index
    %c16_41 = arith.constant 16 : index
    %c0_42 = arith.constant 0 : index
    %74 = vector.load %arg6[%c2_40, %c16_41, %c0_42] : memref<18x48x128xbf16, #tpu.memory_space<vmem>>, vector<8x16x128xbf16>
    %75 = arith.extf %74 : vector<8x16x128xbf16> to vector<8x16x128xf32>
    %76 = vector.broadcast %35 : vector<1x1x128xf32> to vector<8x16x128xf32>
    %77 = arith.mulf %75, %76 : vector<8x16x128xf32>
    %78 = arith.addf %73, %77 : vector<8x16x128xf32>
    %c2_43 = arith.constant 2 : index
    %c17_44 = arith.constant 17 : index
    %c0_45 = arith.constant 0 : index
    %79 = vector.load %arg6[%c2_43, %c17_44, %c0_45] : memref<18x48x128xbf16, #tpu.memory_space<vmem>>, vector<8x16x128xbf16>
    %80 = arith.extf %79 : vector<8x16x128xbf16> to vector<8x16x128xf32>
    %81 = vector.broadcast %38 : vector<1x1x128xf32> to vector<8x16x128xf32>
    %82 = arith.mulf %80, %81 : vector<8x16x128xf32>
    %83 = arith.addf %78, %82 : vector<8x16x128xf32>
    %84 = vector.shape_cast %83 : vector<8x16x128xf32> to vector<128x128xf32>
    %85 = arith.truncf %84 : vector<128x128xf32> to vector<128x128xbf16>
    %c0_46 = arith.constant 0 : index
    %c0_47 = arith.constant 0 : index
    %86 = vector.load %arg7[%c0_46, %c0_47] : memref<256x128xbf16, #tpu.memory_space<vmem>>, vector<128x128xbf16>
    tpu.vector_store %arg7[%c0_46, %c0_47], %85 {strides = array<i32>} : memref<256x128xbf16, #tpu.memory_space<vmem>>, vector<128x128xbf16>,
    %c8 = arith.constant 8 : index
    %c15_48 = arith.constant 15 : index
    %c0_49 = arith.constant 0 : index
    %87 = vector.load %arg6[%c8, %c15_48, %c0_49] : memref<18x48x128xbf16, #tpu.memory_space<vmem>>, vector<8x16x128xbf16>
    %88 = arith.extf %87 : vector<8x16x128xbf16> to vector<8x16x128xf32>
    %89 = vector.broadcast %14 : vector<1x1x128xf32> to vector<8x16x128xf32>
    %90 = arith.mulf %88, %89 : vector<8x16x128xf32>
    %c8_50 = arith.constant 8 : index
    %c16_51 = arith.constant 16 : index
    %c0_52 = arith.constant 0 : index
    %91 = vector.load %arg6[%c8_50, %c16_51, %c0_52] : memref<18x48x128xbf16, #tpu.memory_space<vmem>>, vector<8x16x128xbf16>
    %92 = arith.extf %91 : vector<8x16x128xbf16> to vector<8x16x128xf32>
    %93 = vector.broadcast %17 : vector<1x1x128xf32> to vector<8x16x128xf32>
    %94 = arith.mulf %92, %93 : vector<8x16x128xf32>
    %95 = arith.addf %90, %94 : vector<8x16x128xf32>
    %c8_53 = arith.constant 8 : index
    %c17_54 = arith.constant 17 : index
    %c0_55 = arith.constant 0 : index
    %96 = vector.load %arg6[%c8_53, %c17_54, %c0_55] : memref<18x48x128xbf16, #tpu.memory_space<vmem>>, vector<8x16x128xbf16>
    %97 = arith.extf %96 : vector<8x16x128xbf16> to vector<8x16x128xf32>
    %98 = vector.broadcast %20 : vector<1x1x128xf32> to vector<8x16x128xf32>
    %99 = arith.mulf %97, %98 : vector<8x16x128xf32>
    %100 = arith.addf %95, %99 : vector<8x16x128xf32>
    %c9 = arith.constant 9 : index
    %c15_56 = arith.constant 15 : index
    %c0_57 = arith.constant 0 : index
    %101 = vector.load %arg6[%c9, %c15_56, %c0_57] : memref<18x48x128xbf16, #tpu.memory_space<vmem>>, vector<8x16x128xbf16>
    %102 = arith.extf %101 : vector<8x16x128xbf16> to vector<8x16x128xf32>
    %103 = vector.broadcast %23 : vector<1x1x128xf32> to vector<8x16x128xf32>
    %104 = arith.mulf %102, %103 : vector<8x16x128xf32>
    %105 = arith.addf %100, %104 : vector<8x16x128xf32>
    %c9_58 = arith.constant 9 : index
    %c16_59 = arith.constant 16 : index
    %c0_60 = arith.constant 0 : index
    %106 = vector.load %arg6[%c9_58, %c16_59, %c0_60] : memref<18x48x128xbf16, #tpu.memory_space<vmem>>, vector<8x16x128xbf16>
    %107 = arith.extf %106 : vector<8x16x128xbf16> to vector<8x16x128xf32>
    %108 = vector.broadcast %26 : vector<1x1x128xf32> to vector<8x16x128xf32>
    %109 = arith.mulf %107, %108 : vector<8x16x128xf32>
    %110 = arith.addf %105, %109 : vector<8x16x128xf32>
    %c9_61 = arith.constant 9 : index
    %c17_62 = arith.constant 17 : index
    %c0_63 = arith.constant 0 : index
    %111 = vector.load %arg6[%c9_61, %c17_62, %c0_63] : memref<18x48x128xbf16, #tpu.memory_space<vmem>>, vector<8x16x128xbf16>
    %112 = arith.extf %111 : vector<8x16x128xbf16> to vector<8x16x128xf32>
    %113 = vector.broadcast %29 : vector<1x1x128xf32> to vector<8x16x128xf32>
    %114 = arith.mulf %112, %113 : vector<8x16x128xf32>
    %115 = arith.addf %110, %114 : vector<8x16x128xf32>
    %c10 = arith.constant 10 : index
    %c15_64 = arith.constant 15 : index
    %c0_65 = arith.constant 0 : index
    %116 = vector.load %arg6[%c10, %c15_64, %c0_65] : memref<18x48x128xbf16, #tpu.memory_space<vmem>>, vector<8x16x128xbf16>
    %117 = arith.extf %116 : vector<8x16x128xbf16> to vector<8x16x128xf32>
    %118 = vector.broadcast %32 : vector<1x1x128xf32> to vector<8x16x128xf32>
    %119 = arith.mulf %117, %118 : vector<8x16x128xf32>
    %120 = arith.addf %115, %119 : vector<8x16x128xf32>
    %c10_66 = arith.constant 10 : index
    %c16_67 = arith.constant 16 : index
    %c0_68 = arith.constant 0 : index
    %121 = vector.load %arg6[%c10_66, %c16_67, %c0_68] : memref<18x48x128xbf16, #tpu.memory_space<vmem>>, vector<8x16x128xbf16>
    %122 = arith.extf %121 : vector<8x16x128xbf16> to vector<8x16x128xf32>
    %123 = vector.broadcast %35 : vector<1x1x128xf32> to vector<8x16x128xf32>
    %124 = arith.mulf %122, %123 : vector<8x16x128xf32>
    %125 = arith.addf %120, %124 : vector<8x16x128xf32>
    %c10_69 = arith.constant 10 : index
    %c17_70 = arith.constant 17 : index
    %c0_71 = arith.constant 0 : index
    %126 = vector.load %arg6[%c10_69, %c17_70, %c0_71] : memref<18x48x128xbf16, #tpu.memory_space<vmem>>, vector<8x16x128xbf16>
    %127 = arith.extf %126 : vector<8x16x128xbf16> to vector<8x16x128xf32>
    %128 = vector.broadcast %38 : vector<1x1x128xf32> to vector<8x16x128xf32>
    %129 = arith.mulf %127, %128 : vector<8x16x128xf32>
    %130 = arith.addf %125, %129 : vector<8x16x128xf32>
    %131 = vector.shape_cast %130 : vector<8x16x128xf32> to vector<128x128xf32>
    %132 = arith.truncf %131 : vector<128x128xf32> to vector<128x128xbf16>
    %c128 = arith.constant 128 : index
    %c0_72 = arith.constant 0 : index
    %133 = vector.load %arg7[%c128, %c0_72] : memref<256x128xbf16, #tpu.memory_space<vmem>>, vector<128x128xbf16>
    tpu.vector_store %arg7[%c128, %c0_72], %132 {strides = array<i32>} : memref<256x128xbf16, #tpu.memory_space<vmem>>, vector<128x128xbf16>,
    %c0_73 = arith.constant 0 : index
    %c0_74 = arith.constant 0 : index
    %134 = vector.load %arg7[%c0_73, %c0_74] : memref<256x128xbf16, #tpu.memory_space<vmem>>, vector<256x128xbf16>
    %c0_75 = arith.constant 0 : index
    %c0_76 = arith.constant 0 : index
    %135 = vector.load %arg3[%c0_75, %c0_76] : memref<128x128xbf16, #tpu.memory_space<vmem>>, vector<128x128xbf16>
    %cst_77 = arith.constant dense<0.000000e+00> : vector<256x128xf32>
    %136 = tpu.matmul %134, %135, %cst_77 {dimension_numbers = #tpu.dot_dimension_numbers<[1], [0], [0], [1], [0, 0, 1, 1], [], []>} : vector<256x128xbf16>, vector<128x128xbf16>, vector<256x128xf32> -> vector<256x128xf32>
    %137 = vector.broadcast %39 : vector<1x128xf32> to vector<256x128xf32>
    %138 = arith.addf %136, %137 : vector<256x128xf32>
    %cst_78 = arith.constant 0.000000e+00 : f32
    %139 = vector.broadcast %cst_78 : f32 to vector<256x128xf32>
    %140 = arith.maximumf %138, %139 : vector<256x128xf32>
    %141 = vector.shape_cast %140 : vector<256x128xf32> to vector<16x16x128xf32>
    %142 = arith.truncf %141 : vector<16x16x128xf32> to vector<16x16x128xbf16>
    %c0_79 = arith.constant 0 : index
    %c0_80 = arith.constant 0 : index
    %c0_81 = arith.constant 0 : index
    %c0_82 = arith.constant 0 : index
    %143 = vector.load %arg5[%c0_79, %c0_80, %c0_81, %c0_82] : memref<1x16x16x128xbf16, #tpu.memory_space<vmem>>, vector<1x16x16x128xbf16>
    %144 = vector.shape_cast %143 : vector<1x16x16x128xbf16> to vector<16x16x128xbf16>
    %145 = vector.shape_cast %142 : vector<16x16x128xbf16> to vector<1x16x16x128xbf16>
    tpu.vector_store %arg5[%c0_79, %c0_80, %c0_81, %c0_82], %145 {strides = array<i32>} : memref<1x16x16x128xbf16, #tpu.memory_space<vmem>>, vector<1x16x16x128xbf16>,
    return
  }
  func.func @transform_0(%arg0: i32) -> (i32, i32, i32, i32) {
    %c0_i32 = arith.constant 0 : i32
    %c0_i32_0 = arith.constant 0 : i32
    %c0_i32_1 = arith.constant 0 : i32
    %c0_i32_2 = arith.constant 0 : i32
    return %arg0, %c0_i32, %c0_i32_0, %c0_i32_1 : i32, i32, i32, i32
  }
  func.func @transform_1(%arg0: i32) -> (i32, i32, i32, i32) {
    %c0_i32 = arith.constant 0 : i32
    %c0_i32_0 = arith.constant 0 : i32
    %c0_i32_1 = arith.constant 0 : i32
    %c0_i32_2 = arith.constant 0 : i32
    return %arg0, %c0_i32, %c0_i32_0, %c0_i32_1 : i32, i32, i32, i32
  }
  func.func @transform_2(%arg0: i32) -> (i32, i32) {
    %c0_i32 = arith.constant 0 : i32
    %c0_i32_0 = arith.constant 0 : i32
    %c0_i32_1 = arith.constant 0 : i32
    return %c0_i32, %c0_i32_0 : i32, i32
  }
  func.func @transform_3(%arg0: i32) -> (i32, i32) {
    %c0_i32 = arith.constant 0 : i32
    %c0_i32_0 = arith.constant 0 : i32
    %c0_i32_1 = arith.constant 0 : i32
    return %c0_i32, %c0_i32_0 : i32, i32
  }
  func.func @transform_4(%arg0: i32) -> (i32, i32, i32, i32) {
    %c0_i32 = arith.constant 0 : i32
    %c0_i32_0 = arith.constant 0 : i32
    %c0_i32_1 = arith.constant 0 : i32
    %c0_i32_2 = arith.constant 0 : i32
    return %arg0, %c0_i32, %c0_i32_0, %c0_i32_1 : i32, i32, i32, i32
  }
}

</mosaic_0001>

<bundles_post_ra>
// kernel: tpu_custom_call.1
= control target key start
LH: loop header
LB: loop body
LE: loop exit
PB: predicated region body
PF: predicated region fallthrough
CT: control target
= control target key end

     0   :  { %9 = vsyncpa [#allocation5], 0  ;;  %s5756_s0 = inlined_call_operand.hbm [shape: bf16[2,16,16,128], index: 0, kind: input, shape index: {}]   ;;  %s5757_s1 = inlined_call_operand.vmem [shape: bf16[2,3,3,128], index: 1, kind: input, shape index: {}]   ;;  %s5758_s2 = inlined_call_operand.hbm [shape: bf16[128,128], index: 2, kind: input, shape index: {}]   ;;  %s5759_s3 = inlined_call_operand.vmem [shape: f32[1,128], index: 3, kind: input, shape index: {}]   ;;  %s5760_s4 = inlined_call_operand.hbm [shape: bf16[2,16,16,128], index: 4, kind: output, shape index: {}]  }
   0x1   :  { %11 = vsyncpa [#allocation5 + $0x1], 0 }
   0x2   :  { %12 = vsyncpa [#allocation8], 0 }
   0x3   :  { %13 = vsyncpa [#allocation6], 0 }
   0x4   :  { %15 = vsyncpa [#allocation6 + $0x1], 0  ;;  %s4464_s15 = smov 0   ;;  %s4466_s16 = smov 0  }
   0x5   :  { %s4468_s17 = smov 0   ;;  %s4470_s18 = smov 0  }
   0x6 LB: > { %s4485_s19 = sadd.s32 4294967295, %s4429_s18   ;;  %s3530_s20 = sadd.s32 4294967294, %s4429_s18   ;;  %s4429_s18 = sphi %s4470_s18, %s5786_s18   ;;  %s4425_s17 = sphi %s4468_s17, %s5785_s17   ;;  %s4421_s16 = sphi %s4466_s16, %s5784_s16   ;;  %s4417_s15 = sphi %s4464_s15, %s5783_s15  }
   0x7   : > { %p41_p0 = scmp.ne.s32.totalorder %s4421_s16, %s4417_s15  ;;  %p5761_p1 = scmp.eq.s32.totalorder %s4485_s19, 0 }
   0x8   : > { %p139_p3 = scmp.eq.s32.totalorder %s3530_s20, 1  ;;  %p3531_p5 = scmp.ge.s32.totalorder %s4429_s18, 1 }
   0x9   : > { %p4494_p4 = por %p5761_p1, %p41_p0  ;;  %p146_p7 = scmp.lt.s32.totalorder %s4429_s18, 3 }
   0xa   : > { %p4499_p6 = por %p139_p3, %p41_p0  ;;  %s4431_s24 = smov [#allocation7]  }
   0xb   : > { %s5765_s21 = scalar_select %p4494_p4, 1, 0 }
   0xc   : > { %s5766_s22 = scalar_select %p4499_p6, 1, 0 }
   0xd   : > { %p4504_p8 = pnand %p3531_p5, %p146_p7  ;;  %s158_s25 = sshll.u32 %s4431_s24, 4  ;;  %s159_s25 = int_to_ptr.vmem [resolvable:$true] %s158_s25 }
   0xe   : > { %s4518_s27 = sadd.s32 1, %s4429_s18   ;;  %s28_s28 = sadd.s32 1, %s4425_s17 }
   0xf   : > { %s5767_s23 = scalar_select %p4504_p8, 1, 0 }
  0x10   : > { %p4229_p9 = pneg %p4504_p8  ;;  %s25_s29 = ssub.s32 %s4429_s18, %s4518_s27 }
  0x11   : > { %s4318_s30 = scalar_lea.vmem %s159_s25, 1024  ;;  %p4326_p5 = scmp.lt.s32.totalorder %s159_s25, %s159_s25 }
  0x12   : > { %p4513_p11 = pnand %p4229_p9, %p5761_p1  ;;  %p4319_p13 = scmp.ne.s32.totalorder %s159_s25, %s4318_s30 }
  0x13   : > { %p4327_p7 = scmp.lt.s32.totalorder %s4318_s30, %s4318_s30 }
  0x14   : > { %p4309_p12 = pneg %p4513_p11 }
  0x15   : > { %p4328_p10 = por %p4327_p7, %p4326_p5 }
  0x16   : > { %p4321_p0 = pnand %p4319_p13, %p4309_p12 }
  0x18   : > { %p4322_p3 = pneg %p4321_p0 }
  0x1a   : > { %p4329_p2 = pnand %p4328_p10, %p4322_p3 }
  0x1c   : > { %4332 = shalt.err (!%p4329_p2)
}
  0x1d   : > { %s4432_s5 = smov 64   ;;  %s4433_s6 = smov 4  }
  0x1e   : > { %4232 = dma.hbm_to_vmem [thread:$0]  (!%p4513_p11), %s5758_s2, 1024, %s159_s25, [#allocation8], %s4432_s5, %s4432_s5, %s4433_s6  }
  0x1f   : > { %p26_p2 = scmp.eq.s32.totalorder %s25_s29, 0  ;;  %p35_p9 = scmp.ne.s32.totalorder %s4425_s17, %s4421_s16 }
  0x20   : > { %p36_p10 = scmp.eq.s32.totalorder %s4429_s18, 0  ;;  %p4242_p12 = scmp.lt.s32.totalorder %s4429_s18, 2 }
  0x21   : > { %s4538_s9 = scalar_select %p26_p2, %s4425_s17, %s28_s28  }
  0x22   : > { %p37_p13 = por %p36_p10, %p35_p9  ;;  %p5769_p0 = scmp.eq.s32.totalorder %s4485_s19, 1 }
  0x23   : > { %s175_s11 = sand.u32 1, %s4425_s17   ;;  %s3636_s12 = sshll.u32 %s4429_s18, 11 }
  0x24   : > { %p4542_p3 = por %p5769_p0, %p35_p9  ;;  %s3534_s13 = sshll.u32 %s175_s11, 7 }
  0x25   : > { %s4551_s24 = scalar_lea.hbm %s5756_s0, %s3636_s12  ;;  %s179_s25 = scalar_lea.vmem [#allocation4], %s3534_s13 }
  0x26   : > { %s5770_s10 = scalar_select %p4542_p3, 1, 0 }
  0x27   : > { %s186_s26 = sshll.u32 %s179_s25, 4  ;;  %p4553_p11 = pnand %p4242_p12, %p37_p13  ;;  %s4557_s26 = int_to_ptr.vmem [resolvable:$true] %s186_s26 }
  0x28   : > { %s4559_s29 = scalar_lea.sflag [#allocation5], %s175_s11  ;;  %s4333_s30 = scalar_lea.hbm %s4551_s24, 2048 }
  0x29   : > { %p4334_p5 = scmp.ne.s32.totalorder %s4551_s24, %s4333_s30  ;;  %p4335_p7 = pneg %p4553_p11 }
  0x2a   : > { %s4338_s12 = scalar_lea.hbm %s5756_s0, 4096  ;;  %p4339_p10 = scmp.lt.s32.totalorder %s4551_s24, %s5756_s0 }
  0x2b   : > { %p4336_p2 = pnand %p4335_p7, %p4334_p5  ;;  %p4340_p12 = scmp.lt.s32.totalorder %s4338_s12, %s4333_s30 }
  0x2d   : > { %p4337_p9 = pneg %p4336_p2  ;;  %p4341_p13 = por %p4340_p12, %p4339_p10 }
  0x2f   : > { %p4342_p0 = pnand %p4341_p13, %p4337_p9 }
  0x31   : > { %4345 = shalt.err (!%p4342_p0)
}
  0x32   : > { %s4346_s11 = scalar_lea.vmem %s4557_s26, 2048  ;;  %s4434_s20 = smov [#allocation4]  }
  0x33   : > { %p4347_p1 = scmp.ne.s32.totalorder %s4557_s26, %s4346_s11  ;;  %s4351_s25 = sshll.u32 %s4434_s20, 4  ;;  %s4352_s25 = int_to_ptr.vmem [resolvable:$false] %s4351_s25 }
  0x34   : > { %s4353_s7 = scalar_lea.vmem %s4352_s25, 4096  ;;  %p4354_p2 = scmp.lt.s32.totalorder %s4557_s26, %s4352_s25 }
  0x35   : > { %p4349_p6 = pnand %p4347_p1, %p4335_p7  ;;  %p4355_p3 = scmp.lt.s32.totalorder %s4353_s7, %s4346_s11 }
  0x37   : > { %p4350_p5 = pneg %p4349_p6  ;;  %p4356_p4 = por %p4355_p3, %p4354_p2 }
  0x39   : > { %p4357_p8 = pnand %p4356_p4, %p4350_p5 }
  0x3b   : > { %4360 = shalt.err (!%p4357_p8)
}
  0x3c   : > { %4236 = dma.hbm_to_vmem [thread:$0]  (!%p4553_p11), %s4551_s24, 2048, %s4557_s26, %s4559_s29, %s4432_s5, %s4432_s5, %s4433_s6  }
  0x3d   : > { %p5772_p1 = scmp.ne.s32.totalorder %s5767_s23, 0 }
  0x3e   : > { %s4586_s30 = sand.u32 (!%p5772_p1), 1, %s4421_s16   ;;  %p5773_p4 = scmp.ne.s32.totalorder (!%p5772_p1), %s5765_s21, 0 }
  0x3f   : > { %206 = sbr.rel (%p5772_p1) target bundleno = 674 (0x2a2), region = 36  ;;  %s3538_s8 = sshll.u32 (!%p5772_p1), %s4586_s30, 7 }
  0x40   : > { %s209_s12 = scalar_lea.sflag (!%p5772_p1), [#allocation5], %s4586_s30  ;;  %s4592_s28 = scalar_lea.vmem (!%p5772_p1), [#allocation4], %s3538_s8 }
  0x44   : > { %4404 = dma.done.wait (%p5773_p4), %s209_s12, 2048  }
  0x45   : > { %4406 = vsyncadd (%p5773_p4), %s209_s12, 4294965248  ;;  %p5774_p6 = scmp.eq.s32.totalorder %s4485_s19, 0 }
  0x47   : > { %4408 = dma.done.wait (%p5774_p6), [#allocation8], 1024   ;;  %p5775_p8 = pmov %p5774_p6 }
  0x48   : > { %v4435_v0 = vmov 0   ;;  %p246_p3 = scmp.lt.s32.totalorder %s4485_s19, 1  ;;  %v491_v1 = vlaneseq  ;;  %vm253_vm0 = vsmask.f32 7950  ;;  %v4283_v2 = vld [vmem:[#allocation7 + $0x38] sm:$0xff]   ;;  %v4284_v3 = vld [vmem:[#allocation7 + $0x30] sm:$0xff]  }
  0x49   : > { %4410 = vsyncadd (%p5775_p8), [#allocation8], 4294966272  ;;  %258 = vst [vmem:[#allocation2 + $0x8] sm:$0xf] %v4435_v0  ;;  %vm252_vm1 = vcmask 1043459   ;;  %4156 = vmatprep.subr.bf16.mxu0 %v4283_v2  ;;  %4204 = vmatprep.subr.bf16.mxu1 %v4283_v2  ;;  %vm260_vm2 = vcmask 1040384  }
  0x4a   : > { %259 = vst [vmem:[#allocation2 + $0xc] sm:$0xf] %v4435_v0  ;;  %270 = vst [vmem:[#allocation2 + $0x1a0] sm:$0xf] %v4435_v0  ;;  %s247_s23 = scalar_select %p246_p3, %s4485_s19, 1  ;;  %v492_v4 = vshrl.u32 %v491_v1, 7  ;;  %4157 = vmatpush3.bf16.msra.mxu0 %v4283_v2  ;;  %4212 = vmatpush3.bf16.msra.mxu1 %v4283_v2 }
  0x4b   : > { %271 = vst [vmem:[#allocation2 + $0x1a4] sm:$0xf] %v4435_v0  ;;  %vm261_vm3 = vsmask.f32 256  ;;  %4158 = vmatprep.subr.bf16.mxu0 %v4284_v3  ;;  %4205 = vmatprep.subr.bf16.mxu1 %v4284_v3  ;;  %v4285_v5 = vld [vmem:[#allocation7 + $0x28] sm:$0xff]   ;;  %vm4605_vm4 = vmand %vm252_vm1, %vm253_vm0  ;;  %v4286_v10 = vld [vmem:[#allocation7 + $0x20] sm:$0xff]  }
  0x4c   : > { %s4220_s21 = smul.u32 6, %s247_s23  ;;  %vm4610_vm5 = vmand %vm260_vm2, %vm261_vm3  ;;  %v493_v8 = vsub.s32 0, %v492_v4  ;;  %v4614_v9 = vsub.s32 1, %v492_v4  ;;  %v4616_v11 = vsub.s32 2, %v492_v4  ;;  %v255_v12 = vld [vmem:[#allocation2 + $0x4] sm:$0x8] }
  0x4d   : > { %v263_v13 = vld [vmem:[#allocation2 + $0x10] sm:$0x1]  ;;  %v276_v14 = vld [vmem:[#allocation2 + $0x1c] sm:$0x8]  ;;  %v256_v15 = vsel %vm4605_vm4, 0, %v255_v12  ;;  %v4630_v20 = vld [vmem:[#allocation7 + $0x18] sm:$0xff]  }
  0x4e   : > { %4159 = vmatpush3.bf16.msra.mxu0 %v4284_v3  ;;  %4213 = vmatpush3.bf16.msra.mxu1 %v4284_v3  ;;  %s4621_s24 = scalar_lea.vmem %s5757_s1, %s4220_s21  ;;  %v264_v16 = vsel %vm4610_vm5, 0, %v263_v13  ;;  %v277_v17 = vsel %vm4605_vm4, 0, %v276_v14  ;;  %v279_v18 = vld [vmem:[#allocation2 + $0x34] sm:$0x8]  ;;  %257 = vst [vmem:[#allocation2 + $0x4] sm:$0x8] %v256_v15 }
  0x4f   : > { %4160 = vmatprep.subr.bf16.mxu0 %v4285_v5  ;;  %4206 = vmatprep.subr.bf16.mxu1 %v4285_v5  ;;  %v372_v19 = vld [vmem:[%s4592_s28] sm:$0xff]   ;;  %265 = vst [vmem:[#allocation2 + $0x10] sm:$0x1] %v264_v16  ;;  %278 = vst [vmem:[#allocation2 + $0x1c] sm:$0x8] %v277_v17  ;;  %v280_v21 = vsel %vm4605_vm4, 0, %v279_v18 }
  0x50   : > { %v324_v22 = vld [vmem:[#allocation2 + $0x28] sm:$0x1]  ;;  %v327_v23 = vld [vmem:[#allocation2 + $0x40] sm:$0x1]  ;;  %v374_v24 = vld [vmem:[%s4592_s28 + $0x8] sm:$0xff]   ;;  %404 = vst [vmem:[#allocation2 + $0x20] sm:$0xff] %v372_v19  }
  0x51   : > { %vm555_vm6 = vcmask 1046528   ;;  %281 = vst [vmem:[#allocation2 + $0x34] sm:$0x8] %v280_v21  ;;  %v325_v25 = vsel %vm4610_vm5, 0, %v324_v22  ;;  %v328_v26 = vsel %vm4610_vm5, 0, %v327_v23  ;;  %406 = vst [vmem:[#allocation2 + $0x38] sm:$0xff] %v374_v24  }
  0x52   : > { %4161 = vmatpush3.bf16.msra.mxu0 %v4285_v5  ;;  %4214 = vmatpush3.bf16.msra.mxu1 %v4285_v5  ;;  %v436_v27 = vld [vmem:[%s4621_s24] sm:$0x3]  ;;  %v437_v28 = vld [vmem:[%s4621_s24 + $0x2] sm:$0x3]  ;;  %326 = vst [vmem:[#allocation2 + $0x28] sm:$0x1] %v325_v25 }
  0x53   : > { %4162 = vmatprep.subr.bf16.mxu0 %v4286_v10  ;;  %4207 = vmatprep.subr.bf16.mxu1 %v4286_v10  ;;  %329 = vst [vmem:[#allocation2 + $0x40] sm:$0x1] %v328_v26  ;;  %v438_v29 = vld [vmem:[%s4621_s24 + $0x4] sm:$0x3]  ;;  %v439_v30 = vunpack.c.l.bf16 %v436_v27  ;;  %v440_v31 = vunpack.c.l.bf16 %v437_v28  ;;  %v4054_v32 = vld [vmem:[#allocation2 + $0x8] sm:$0xff]   ;;  %vm696_vm7 = vcmask 1045504  }
  0x54   : > { %v282_v33 = vld [vmem:[#allocation2 + $0x4c] sm:$0x8]  ;;  %v4642_v34 = vunpack.c.l.bf16 %v438_v29  ;;  %v3704_v35 = vunpack.c.l.bf16 %v4054_v32  ;;  %v3705_v36 = vunpack.c.h.bf16 %v4054_v32  ;;  %v330_v38 = vld [vmem:[#allocation2 + $0x58] sm:$0x1]  ;;  %v376_v39 = vld [vmem:[%s4592_s28 + $0x10] sm:$0xff]   ;;  %s5666_s13 = scalar_lea.vmem [#allocation9], %s3538_s8 }
  0x55   : > { %v283_v37 = vsel %vm4605_vm4, 0, %v282_v33  ;;  %v297_v40 = vld [vmem:[#allocation2 + $0xc4] sm:$0x8]  ;;  %v4647_v41 = vrot.slane %v439_v30, %v493_v8  ;;  %v4650_v42 = vrot.slane %v439_v30, %v4614_v9  ;;  %v4653_v43 = vrot.slane %v439_v30, %v4616_v11  ;;  %408 = vst [vmem:[#allocation2 + $0x50] sm:$0xff] %v376_v39   ;;  %v386_v49 = vld [vmem:[%s4592_s28 + $0x38] sm:$0xff]   ;;  %v388_v55 = vld [vmem:[%s4592_s28 + $0x40] sm:$0xff]  }
  0x56   : > { %v4655_v44 = vrot.slane %v440_v31, %v493_v8  ;;  %284 = vst [vmem:[#allocation2 + $0x4c] sm:$0x8] %v283_v37  ;;  %4163 = vmatpush3.bf16.msra.mxu0 %v4286_v10  ;;  %4215 = vmatpush3.bf16.msra.mxu1 %v4286_v10  ;;  %v4658_v45 = vrot.slane %v440_v31, %v4614_v9  ;;  %v331_v48 = vsel %vm4610_vm5, 0, %v330_v38  ;;  %v4288_v50 = vld [vmem:[#allocation7 + $0x10] sm:$0xff]   ;;  %v298_v54 = vsel %vm4605_vm4, 0, %v297_v40  ;;  %v390_v56 = vld [vmem:[%s4592_s28 + $0x48] sm:$0xff]  }
  0x57   : > { %v4661_v46 = vrot.slane %v440_v31, %v4616_v11  ;;  %v4664_v47 = vrot.slane %v4642_v34, %v493_v8  ;;  %4164 = vmatprep.subr.bf16.mxu0 %v4630_v20  ;;  %4208 = vmatprep.subr.bf16.mxu1 %v4630_v20  ;;  %v496_v51 = vmul.f32 %v3704_v35, %v4647_v41  ;;  %v443_v57 = vld [vmem:[#allocation2 + $0x4] sm:$0x8]  ;;  %v628_v59 = vld [vmem:[#allocation2 + $0x10] sm:$0x1]  ;;  %v785_v62 = vld [vmem:[#allocation2 + $0x1c] sm:$0x8] }
  0x58   : > { %v497_v52 = vmul.f32 %v3705_v36, %v4647_v41  ;;  %v523_v53 = vmul.f32 %v3704_v35, %v4650_v42  ;;  %332 = vst [vmem:[#allocation2 + $0x58] sm:$0x1] %v331_v48  ;;  %418 = vst [vmem:[#allocation2 + $0xc8] sm:$0xff] %v386_v49   ;;  %v524_v58 = vmul.f32 %v3705_v36, %v4650_v42  ;;  %v467_v0 = vunpack.c.l.bf16 %v443_v57  ;;  %v4062_v3 = vld [vmem:[#allocation2 + $0x20] sm:$0xff]   ;;  %v4070_v23 = vld [vmem:[#allocation2 + $0x38] sm:$0xff]   ;;  %s3701_s14 = sshll.u32 %s4485_s19, 11 }
  0x59   : > { %v648_v60 = vmul.f32 %v3704_v35, %v4653_v43  ;;  %v649_v61 = vmul.f32 %v3705_v36, %v4653_v43  ;;  %v4683_v63 = vrot.slane %v4642_v34, %v4614_v9  ;;  %299 = vst [vmem:[#allocation2 + $0xc4] sm:$0x8] %v298_v54  ;;  %420 = vst [vmem:[#allocation2 + $0xe0] sm:$0xff] %v388_v55   ;;  %v636_v2 = vunpack.c.l.bf16 %v628_v59  ;;  %v392_v13 = vld [vmem:[%s4592_s28 + $0x50] sm:$0xff]   ;;  %v4289_v9 = vld [vmem:[#allocation7 + $0x8] sm:$0xff]   ;;  %s3435_s11 = sshll.u32 %s5666_s13, 4  ;;  %s5709_s7 = scalar_lea.hbm %s5760_s4, %s3701_s14  ;;  %s5711_s11 = int_to_ptr.vmem [resolvable:$true] %s3435_s11 }
  0x5a   : > { %422 = vst [vmem:[#allocation2 + $0xf8] sm:$0xff] %v390_v56   ;;  %v556_v1 = vrot.slane %v523_v53, 1  ;;  %v809_v4 = vunpack.c.l.bf16 %v785_v62  ;;  %4165 = vmatpush3.bf16.msra.mxu0 %v4630_v20  ;;  %4216 = vmatpush3.bf16.msra.mxu1 %v4630_v20  ;;  %v557_v5 = vrot.slane %v524_v58, 1  ;;  %v4687_v12 = vunpack.c.l.bf16 %v4062_v3  ;;  %v993_v18 = vld [vmem:[#allocation2 + $0x28] sm:$0x1]  ;;  %424 = vst [vmem:[#allocation2 + $0x110] sm:$0xff] %v392_v13  }
  0x5b   : > { %v697_v8 = vrot.slane %v648_v60, 2  ;;  %v698_v10 = vrot.slane %v649_v61, 2  ;;  %4166 = vmatprep.subr.bf16.mxu0 %v4288_v50  ;;  %4209 = vmatprep.subr.bf16.mxu1 %v4288_v50  ;;  %v495_v14 = vmul.f32 %v4647_v41, %v467_v0  ;;  %v650_v15 = vmul.f32 %v4653_v43, %v636_v2  ;;  %v4290_v32 = vld [vmem:[#allocation7] sm:$0xff]   ;;  %v394_v56 = vld [vmem:[%s4592_s28 + $0x58] sm:$0xff]   ;;  %v1358_v2 = vld [vmem:[#allocation2 + $0x40] sm:$0x1] }
  0x5c   : > { %v4692_v16 = vunpack.c.h.bf16 %v4062_v3  ;;  %v837_v17 = vmul.f32 %v4655_v44, %v809_v4  ;;  %v558_v19 = vsel %vm555_vm6, %v556_v1, %v557_v5  ;;  %v606_v20 = vadd.f32 %v557_v5, %v497_v52  ;;  %v1150_v49 = vld [vmem:[#allocation2 + $0x34] sm:$0x8]  ;;  %426 = vst [vmem:[#allocation2 + $0x128] sm:$0xff] %v394_v56   ;;  %s3422_s8 = scalar_lea.sflag [#allocation6], %s4586_s30  ;;  %s4361_s12 = scalar_lea.vmem %s5711_s11, 2048 }
  0x5d   : > { %v699_v21 = vsel %vm696_vm7, %v697_v8, %v698_v10  ;;  %v838_v22 = vmul.f32 %v4687_v12, %v4655_v44  ;;  %v604_v24 = vadd.f32 %v556_v1, %v495_v14  ;;  %v605_v25 = vadd.f32 %v558_v19, %v496_v51  ;;  %v380_v51 = vld [vmem:[%s4592_s28 + $0x20] sm:$0xff]   ;;  %p4362_p11 = scmp.ne.s32.totalorder %s5711_s11, %s4361_s12  ;;  %p5780_p7 = scmp.ne.s32.totalorder %s5770_s10, 0 }
  0x5e   : > { %v700_v26 = vrot.slane %v650_v15, 2  ;;  %v839_v27 = vmul.f32 %v4692_v16, %v4655_v44  ;;  %4167 = vmatpush3.bf16.msra.mxu0 %v4288_v50  ;;  %4217 = vmatpush3.bf16.msra.mxu1 %v4288_v50  ;;  %v889_v28 = vmul.f32 %v4687_v12, %v4658_v45  ;;  %v890_v29 = vmul.f32 %v4692_v16, %v4658_v45  ;;  %v378_v50 = vld [vmem:[%s4592_s28 + $0x18] sm:$0xff]   ;;  %s4436_s19 = smov [#allocation9]  }
  0x5f   : > { %v1001_v30 = vunpack.c.l.bf16 %v993_v18  ;;  %v1013_v31 = vmul.f32 %v4687_v12, %v4661_v46  ;;  %4168 = vmatprep.subr.bf16.mxu0 %v4289_v9  ;;  %4210 = vmatprep.subr.bf16.mxu1 %v4289_v9  ;;  %v761_v35 = vadd.f32 %v697_v8, %v604_v24  ;;  %v762_v36 = vadd.f32 %v699_v21, %v605_v25  ;;  %p4363_p9 = pnand %p4362_p11, %p5780_p7 }
  0x60   : > { %v701_v33 = vsel %vm696_vm7, %v698_v10, %v700_v26  ;;  %v4708_v37 = vunpack.c.l.bf16 %v4070_v23  ;;  %v921_v39 = vrot.slane %v889_v28, 1  ;;  %v922_v40 = vrot.slane %v890_v29, 1  ;;  %410 = vst [vmem:[#allocation2 + $0x68] sm:$0xff] %v378_v50   ;;  %412 = vst [vmem:[#allocation2 + $0x80] sm:$0xff] %v380_v51   ;;  %v446_v10 = vld [vmem:[#allocation2 + $0x1c] sm:$0x8] }
  0x61   : > { %v763_v38 = vadd.f32 %v701_v33, %v606_v20  ;;  %v1014_v48 = vmul.f32 %v4692_v16, %v4661_v46  ;;  %v861_v52 = vadd.f32 %v837_v17, %v761_v35  ;;  %v862_v53 = vadd.f32 %v838_v22, %v762_v36  ;;  %v629_v33 = vld [vmem:[#allocation2 + $0x28] sm:$0x1]  ;;  %p4364_p10 = pneg %p4363_p9 }
  0x62   : > { %v1015_v54 = vmul.f32 %v4661_v46, %v1001_v30  ;;  %v1061_v55 = vrot.slane %v1013_v31, 2  ;;  %4169 = vmatpush3.bf16.msra.mxu0 %v4289_v9  ;;  %4218 = vmatpush3.bf16.msra.mxu1 %v4289_v9  ;;  %v923_v58 = vsel %vm555_vm6, %v921_v39, %v922_v40  ;;  %v4717_v60 = vunpack.c.h.bf16 %v4070_v23 }
  0x63   : > { %v863_v57 = vadd.f32 %v839_v27, %v763_v38  ;;  %v1062_v59 = vrot.slane %v1014_v48, 2  ;;  %4170 = vmatprep.subr.bf16.mxu0 %v4290_v32  ;;  %4211 = vmatprep.subr.bf16.mxu1 %v4290_v32  ;;  %v969_v61 = vadd.f32 %v921_v39, %v861_v52  ;;  %v970_v62 = vadd.f32 %v923_v58, %v862_v53 }
  0x64   : > { %v1064_v0 = vrot.slane %v1015_v54, 2  ;;  %v1174_v1 = vunpack.c.l.bf16 %v1150_v49  ;;  %v1203_v5 = vmul.f32 %v4708_v37, %v4664_v47  ;;  %v1204_v8 = vmul.f32 %v4717_v60, %v4664_v47 }
  0x65   : > { %v971_v3 = vadd.f32 %v922_v40, %v863_v57  ;;  %v1063_v4 = vsel %vm696_vm7, %v1061_v55, %v1062_v59  ;;  %v1125_v9 = vadd.f32 %v1061_v55, %v969_v61  ;;  %v1254_v18 = vmul.f32 %v4708_v37, %v4683_v63  ;;  %v396_v57 = vld [vmem:[%s4592_s28 + $0x60] sm:$0xff]  }
  0x66   : > { %v1065_v13 = vsel %vm696_vm7, %v1062_v59, %v1064_v0  ;;  %v1126_v14 = vadd.f32 %v1063_v4, %v970_v62  ;;  %v1202_v15 = vmul.f32 %v4664_v47, %v1174_v1  ;;  %4171 = vmatpush3.bf16.msra.mxu0 %v4290_v32  ;;  %4219 = vmatpush3.bf16.msra.mxu1 %v4290_v32  ;;  %v1366_v20 = vunpack.c.l.bf16 %v1358_v2 }
  0x67   : > { %v1127_v17 = vadd.f32 %v1065_v13, %v971_v3  ;;  %v1255_v19 = vmul.f32 %v4717_v60, %v4683_v63  ;;  %v4732_v23 = vrot.slane %v4642_v34, %v4616_v11  ;;  %v470_v24 = vunpack.c.l.bf16 %v446_v10  ;;  %428 = vst [vmem:[#allocation2 + $0x140] sm:$0xff] %v396_v57  }
  0x68   : > { %v1226_v21 = vadd.f32 %v1202_v15, %v1125_v9  ;;  %v1227_v22 = vadd.f32 %v1203_v5, %v1126_v14  ;;  %v1286_v26 = vrot.slane %v1254_v18, 1  ;;  %v499_v28 = vmul.f32 %v4687_v12, %v4647_v41 }
  0x69   : > { %v1228_v25 = vadd.f32 %v1204_v8, %v1127_v17  ;;  %v1287_v27 = vrot.slane %v1255_v19, 1  ;;  %v1378_v29 = vmul.f32 %v4708_v37, %v4732_v23  ;;  %v1379_v30 = vmul.f32 %v4717_v60, %v4732_v23 }
  0x6a   : > { %v1380_v31 = vmul.f32 %v4732_v23, %v1366_v20  ;;  %v498_v32 = vmul.f32 %v4647_v41, %v470_v24  ;;  %v1334_v34 = vadd.f32 %v1286_v26, %v1226_v21  ;;  %v500_v36 = vmul.f32 %v4692_v16, %v4647_v41  ;;  %v994_v20 = vld [vmem:[#allocation2 + $0x40] sm:$0x1] }
  0x6b   : > { %v1288_v11 = vsel %vm555_vm6, %v1286_v26, %v1287_v27  ;;  %v1336_v35 = vadd.f32 %v1287_v27, %v1228_v25  ;;  %v1426_v39 = vrot.slane %v1378_v29, 2  ;;  %v1427_v40 = vrot.slane %v1379_v30, 2  ;;  %v4071_v30 = vld [vmem:[#allocation2 + $0x50] sm:$0xff]  }
  0x6c   : > { %v1335_v38 = vadd.f32 %v1288_v11, %v1227_v22  ;;  %v1429_v48 = vrot.slane %v1380_v31, 2  ;;  %v525_v49 = vmul.f32 %v4687_v12, %v4650_v42  ;;  %v526_v50 = vmul.f32 %v4692_v16, %v4650_v42 }
  0x6d   : > { %v637_v51 = vunpack.c.l.bf16 %v629_v33  ;;  %v651_v52 = vmul.f32 %v4687_v12, %v4653_v43  ;;  %v1428_v53 = vsel %vm696_vm7, %v1426_v39, %v1427_v40  ;;  %v1490_v55 = vadd.f32 %v1426_v39, %v1334_v34  ;;  %v788_v12 = vld [vmem:[#allocation2 + $0x34] sm:$0x8]  ;;  %v1153_v34 = vld [vmem:[#allocation2 + $0x4c] sm:$0x8] }
  0x6e   : > { %v1430_v54 = vsel %vm696_vm7, %v1427_v40, %v1429_v48  ;;  %v652_v56 = vmul.f32 %v4692_v16, %v4653_v43  ;;  %v1491_v58 = vadd.f32 %v1428_v53, %v1335_v38  ;;  %v559_v61 = vrot.slane %v525_v49, 1 }
  0x6f   : > { %v1492_v59 = vadd.f32 %v1430_v54, %v1336_v35  ;;  %v560_v62 = vrot.slane %v526_v50, 1  ;;  %v1539_v0 = vrot.slane %v1490_v55, 7  ;;  %v653_v1 = vmul.f32 %v4653_v43, %v637_v51 }
  0x70   : > { %v702_v2 = vrot.slane %v651_v52, 2  ;;  %v703_v3 = vrot.slane %v652_v56, 2  ;;  %v1540_v4 = vrot.slane %v1491_v58, 7  ;;  %v607_v10 = vadd.f32 %v559_v61, %v498_v32 }
  0x71   : > { %v1542_v5 = vrot.slane %v1492_v59, 7  ;;  %v561_v8 = vsel %vm555_vm6, %v559_v61, %v560_v62  ;;  %v609_v9 = vadd.f32 %v560_v62, %v500_v36  ;;  %v705_v14 = vrot.slane %v653_v1, 2  ;;  %v1359_v59 = vld [vmem:[#allocation2 + $0x58] sm:$0x1] }
  0x72   : > { %v608_v13 = vadd.f32 %v561_v8, %v499_v28  ;;  %v704_v16 = vsel %vm696_vm7, %v702_v2, %v703_v3  ;;  %v1541_v15 = vsel %vm260_vm2, %v1539_v0, %v1540_v4  ;;  %v764_v18 = vadd.f32 %v702_v2, %v607_v10 }
  0x73   : > { %v1543_v17 = vsel %vm260_vm2, %v1540_v4, %v1542_v5  ;;  %v812_v19 = vunpack.c.l.bf16 %v788_v12  ;;  %v706_v22 = vsel %vm696_vm7, %v703_v3, %v705_v14  ;;  %v841_v25 = vmul.f32 %v4708_v37, %v4655_v44  ;;  %v300_v5 = vld [vmem:[#allocation2 + $0xdc] sm:$0x8] }
  0x74   : > { %v3801_v21 = vpack.c.bf16 %v1543_v17, %v1541_v15  ;;  %v765_v24 = vadd.f32 %v704_v16, %v608_v13  ;;  %v766_v26 = vadd.f32 %v706_v22, %v609_v9  ;;  %v842_v28 = vmul.f32 %v4717_v60, %v4655_v44 }
  0x75   : > { %v840_v27 = vmul.f32 %v4655_v44, %v812_v19  ;;  %v891_v29 = vmul.f32 %v4708_v37, %v4658_v45  ;;  %v892_v32 = vmul.f32 %v4717_v60, %v4658_v45  ;;  %v1002_v33 = vunpack.c.l.bf16 %v994_v20  ;;  %v303_v19 = vld [vmem:[#allocation2 + $0xf4] sm:$0x8] }
  0x76   : > { %3802 = vst [vmem:[#allocation3] sm:$0xff] %v3801_v21   ;;  %v865_v31 = vadd.f32 %v841_v25, %v765_v24  ;;  %v1016_v11 = vmul.f32 %v4708_v37, %v4661_v46  ;;  %v866_v36 = vadd.f32 %v842_v28, %v766_v26  ;;  %v1017_v39 = vmul.f32 %v4717_v60, %v4661_v46  ;;  %v345_v25 = vld [vmem:[#allocation2 + $0xd0] sm:$0x1]  ;;  %v348_v26 = vld [vmem:[#allocation2 + $0xe8] sm:$0x1] }
  0x77   : > { %v864_v35 = vadd.f32 %v840_v27, %v764_v18  ;;  %v924_v38 = vrot.slane %v891_v29, 1  ;;  %v925_v40 = vrot.slane %v892_v32, 1  ;;  %v1018_v48 = vmul.f32 %v4661_v46, %v1002_v33  ;;  %v4085_v32 = vld [vmem:[#allocation2 + $0xc8] sm:$0xff]  }
  0x78   : > { %v1066_v49 = vrot.slane %v1016_v11, 2  ;;  %v4776_v50 = vunpack.c.l.bf16 %v4071_v30  ;;  %v1067_v52 = vrot.slane %v1017_v39, 2  ;;  %v4778_v53 = vunpack.c.h.bf16 %v4071_v30 }
  0x79   : > { %v972_v51 = vadd.f32 %v924_v38, %v864_v35  ;;  %v1177_v54 = vunpack.c.l.bf16 %v1153_v34  ;;  %v926_v55 = vsel %vm555_vm6, %v924_v38, %v925_v40  ;;  %v974_v56 = vadd.f32 %v925_v40, %v866_v36  ;;  %v1676_v36 = vld [vmem:[#allocation2 + $0xc4] sm:$0x8] }
  0x7a   : > { %v1069_v57 = vrot.slane %v1018_v48, 2  ;;  %v1206_v58 = vmul.f32 %v4776_v50, %v4664_v47  ;;  %v973_v61 = vadd.f32 %v926_v55, %v865_v31  ;;  %v1068_v62 = vsel %vm696_vm7, %v1066_v49, %v1067_v52  ;;  %v351_v31 = vld [vmem:[#allocation2 + $0x100] sm:$0x1] }
  0x7b   : > { %v1128_v0 = vadd.f32 %v1066_v49, %v972_v51  ;;  %v1205_v1 = vmul.f32 %v4664_v47, %v1177_v54  ;;  %v1207_v3 = vmul.f32 %v4778_v53, %v4664_v47  ;;  %v1256_v12 = vmul.f32 %v4776_v50, %v4683_v63 }
  0x7c   : > { %v1070_v2 = vsel %vm696_vm7, %v1067_v52, %v1069_v57  ;;  %v1257_v4 = vmul.f32 %v4778_v53, %v4683_v63  ;;  %v1129_v10 = vadd.f32 %v1068_v62, %v973_v61  ;;  %v1367_v16 = vunpack.c.l.bf16 %v1359_v59  ;;  %v382_v59 = vld [vmem:[%s4592_s28 + $0x28] sm:$0xff]  }
  0x7d   : > { %v4291_v8 = vld [vmem:[#allocation3] sm:$0xff]   ;;  %v1130_v13 = vadd.f32 %v1070_v2, %v974_v56  ;;  %v1229_v9 = vadd.f32 %v1205_v1, %v1128_v0  ;;  %v1289_v14 = vrot.slane %v1256_v12, 1  ;;  %v1381_v17 = vmul.f32 %v4776_v50, %v4732_v23  ;;  %v4093_v2 = vld [vmem:[#allocation2 + $0xe0] sm:$0xff]   ;;  %414 = vst [vmem:[#allocation2 + $0x98] sm:$0xff] %v382_v59  }
  0x7e   : > { %v1290_v15 = vrot.slane %v1257_v4, 1  ;;  %v1382_v18 = vmul.f32 %v4778_v53, %v4732_v23  ;;  %4172 = vmatprep.mubr.bf16.mxu0 %v4291_v8  ;;  %v1230_v20 = vadd.f32 %v1206_v58, %v1129_v10  ;;  %v1383_v22 = vmul.f32 %v4732_v23, %v1367_v16 }
  0x7f   : > { %v1231_v21 = vadd.f32 %v1207_v3, %v1130_v13  ;;  %v301_v24 = vsel %vm4605_vm4, 0, %v300_v5  ;;  %v1337_v28 = vadd.f32 %v1289_v14, %v1229_v9  ;;  %v1431_v29 = vrot.slane %v1381_v17, 2 }
  0x80   : > { %v1291_v27 = vsel %vm555_vm6, %v1289_v14, %v1290_v15  ;;  %v1432_v30 = vrot.slane %v1382_v18, 2  ;;  %302 = vst [vmem:[#allocation2 + $0xdc] sm:$0x8] %v301_v24  ;;  %v1434_v34 = vrot.slane %v1383_v22, 2  ;;  %v304_v35 = vsel %vm4605_vm4, 0, %v303_v19 }
  0x81   : > { %v1338_v33 = vadd.f32 %v1291_v27, %v1230_v20  ;;  %v1339_v11 = vadd.f32 %v1290_v15, %v1231_v21  ;;  %v1493_v39 = vadd.f32 %v1431_v29, %v1337_v28  ;;  %305 = vst [vmem:[#allocation2 + $0xf4] sm:$0x8] %v304_v35  ;;  %v346_v40 = vsel %vm4610_vm5, 0, %v345_v25 }
  0x82   : > { %v1433_v38 = vsel %vm696_vm7, %v1431_v29, %v1432_v30  ;;  %v349_v48 = vsel %vm4610_vm5, 0, %v348_v26  ;;  %v1435_v49 = vsel %vm696_vm7, %v1432_v30, %v1434_v34  ;;  %347 = vst [vmem:[#allocation2 + $0xd0] sm:$0x1] %v346_v40  ;;  %v352_v52 = vsel %vm4610_vm5, 0, %v351_v31 }
  0x83   : > { %v1494_v51 = vadd.f32 %v1433_v38, %v1338_v33  ;;  %350 = vst [vmem:[#allocation2 + $0xe8] sm:$0x1] %v349_v48  ;;  %v3840_v54 = vunpack.c.l.bf16 %v4085_v32  ;;  %v1495_v55 = vadd.f32 %v1435_v49, %v1339_v11  ;;  %v1544_v56 = vrot.slane %v1493_v39, 7  ;;  %353 = vst [vmem:[#allocation2 + $0x100] sm:$0x1] %v352_v52  ;;  %v4101_v49 = vld [vmem:[#allocation2 + $0xf8] sm:$0xff]  }
  0x84   : > { %v3841_v57 = vunpack.c.h.bf16 %v4085_v32  ;;  %v1700_v58 = vunpack.c.l.bf16 %v1676_v36  ;;  %v4820_v17 = vunpack.c.l.bf16 %v4093_v2  ;;  %v4822_v18 = vunpack.c.h.bf16 %v4093_v2 }
  0x85   : > { %v1545_v61 = vrot.slane %v1494_v51, 7  ;;  %v1725_v62 = vmul.f32 %v3840_v54, %v4647_v41  ;;  %v1748_v0 = vmul.f32 %v3840_v54, %v4650_v42  ;;  %v1868_v1 = vmul.f32 %v3840_v54, %v4653_v43 }
  0x86   : > { %v1547_v3 = vrot.slane %v1495_v55, 7  ;;  %v1724_v12 = vmul.f32 %v1700_v58, %v4647_v41  ;;  %v1726_v4 = vmul.f32 %v3841_v57, %v4647_v41  ;;  %v1749_v5 = vmul.f32 %v3841_v57, %v4650_v42 }
  0x87   : > { %v1546_v8 = vsel %vm260_vm2, %v1544_v56, %v1545_v61  ;;  %v1780_v10 = vrot.slane %v1748_v0, 1  ;;  %v1869_v13 = vmul.f32 %v3841_v57, %v4653_v43  ;;  %v1916_v9 = vrot.slane %v1868_v1, 2  ;;  %v2005_v16 = vld [vmem:[#allocation2 + $0xdc] sm:$0x8] }
  0x88   : > { %v1548_v14 = vsel %vm260_vm2, %v1545_v61, %v1547_v3  ;;  %v1781_v15 = vrot.slane %v1749_v5, 1  ;;  %v2029_v22 = vunpack.c.l.bf16 %v2005_v16  ;;  %v2054_v27 = vmul.f32 %v4820_v17, %v4655_v44  ;;  %v2358_v61 = vld [vmem:[#allocation2 + $0xf4] sm:$0x8] }
  0x89   : > { %v3806_v19 = vpack.c.bf16 %v1548_v14, %v1546_v8  ;;  %v1828_v20 = vadd.f32 %v1780_v10, %v1724_v12  ;;  %v1917_v21 = vrot.slane %v1869_v13, 2  ;;  %v1852_v26 = vld [vmem:[#allocation2 + $0xd0] sm:$0x1]  ;;  %v2055_v28 = vmul.f32 %v4822_v18, %v4655_v44 }
  0x8a   : > { %v1782_v24 = vsel %vm555_vm6, %v1780_v10, %v1781_v15  ;;  %v1830_v25 = vadd.f32 %v1781_v15, %v1726_v4  ;;  %v2205_v29 = vld [vmem:[#allocation2 + $0xe8] sm:$0x1]  ;;  %v1860_v31 = vunpack.c.l.bf16 %v1852_v26  ;;  %v2053_v11 = vmul.f32 %v2029_v22, %v4655_v44  ;;  %v2558_v8 = vld [vmem:[#allocation2 + $0x100] sm:$0x1] }
  0x8b   : > { %4078 = vst [vmem:[#allocation3 + $0x8] sm:$0xff] %v3806_v19   ;;  %v1829_v30 = vadd.f32 %v1782_v24, %v1725_v62  ;;  %v1918_v32 = vsel %vm696_vm7, %v1916_v9, %v1917_v21  ;;  %v1980_v33 = vadd.f32 %v1916_v9, %v1828_v20  ;;  %v2101_v34 = vmul.f32 %v4820_v17, %v4658_v45 }
  0x8c   : > { %v2102_v35 = vmul.f32 %v4822_v18, %v4658_v45  ;;  %v2213_v36 = vunpack.c.l.bf16 %v2205_v29  ;;  %v1870_v38 = vmul.f32 %v1860_v31, %v4653_v43  ;;  %v2221_v40 = vmul.f32 %v4820_v17, %v4661_v46  ;;  %v354_v29 = vld [vmem:[#allocation2 + $0x118] sm:$0x1] }
  0x8d   : > { %v1981_v39 = vadd.f32 %v1918_v32, %v1829_v30  ;;  %v2222_v48 = vmul.f32 %v4822_v18, %v4661_v46  ;;  %v2077_v51 = vadd.f32 %v2053_v11, %v1980_v33  ;;  %v2133_v52 = vrot.slane %v2101_v34, 1 }
  0x8e   : > { %v2134_v54 = vrot.slane %v2102_v35, 1  ;;  %v2223_v55 = vmul.f32 %v2213_v36, %v4661_v46  ;;  %v1919_v56 = vrot.slane %v1870_v38, 2  ;;  %v2269_v58 = vrot.slane %v2221_v40, 2  ;;  %v1679_v36 = vld [vmem:[#allocation2 + $0xdc] sm:$0x8] }
  0x8f   : > { %v2078_v57 = vadd.f32 %v2054_v27, %v1981_v39  ;;  %v2270_v59 = vrot.slane %v2222_v48, 2  ;;  %v2181_v0 = vadd.f32 %v2133_v52, %v2077_v51  ;;  %v4842_v2 = vunpack.c.l.bf16 %v4101_v49  ;;  %v306_v27 = vld [vmem:[#allocation2 + $0x10c] sm:$0x8] }
  0x90   : > { %v2135_v62 = vsel %vm555_vm6, %v2133_v52, %v2134_v54  ;;  %v2272_v1 = vrot.slane %v2223_v55, 2  ;;  %v1920_v3 = vsel %vm696_vm7, %v1917_v21, %v1919_v56  ;;  %v4846_v5 = vunpack.c.h.bf16 %v4101_v49 }
  0x91   : > { %v2182_v12 = vadd.f32 %v2135_v62, %v2078_v57  ;;  %v2271_v4 = vsel %vm696_vm7, %v2269_v58, %v2270_v59  ;;  %v1982_v13 = vadd.f32 %v1920_v3, %v1830_v25  ;;  %v2333_v16 = vadd.f32 %v2269_v58, %v2181_v0  ;;  %v384_v3 = vld [vmem:[%s4592_s28 + $0x30] sm:$0xff]  }
  0x92   : > { %v4292_v10 = vld [vmem:[#allocation3 + $0x8] sm:$0xff]   ;;  %v2273_v9 = vsel %vm696_vm7, %v2270_v59, %v2272_v1  ;;  %v2382_v14 = vunpack.c.l.bf16 %v2358_v61  ;;  %v2407_v19 = vmul.f32 %v4842_v2, %v4664_v47  ;;  %v2408_v20 = vmul.f32 %v4846_v5, %v4664_v47  ;;  %v1853_v59 = vld [vmem:[#allocation2 + $0xe8] sm:$0x1]  ;;  %416 = vst [vmem:[#allocation2 + $0xb0] sm:$0xff] %v384_v3  }
  0x93   : > { %v2334_v15 = vadd.f32 %v2271_v4, %v2182_v12  ;;  %v2454_v21 = vmul.f32 %v4842_v2, %v4683_v63  ;;  %4173 = vmatmul.mubr.bf16.vlgmr.msra.gmra.mxu0 %v4292_v10  ;;  %v2079_v22 = vadd.f32 %v2055_v28, %v1982_v13  ;;  %v2455_v25 = vmul.f32 %v4846_v5, %v4683_v63  ;;  %v2008_v13 = vld [vmem:[#allocation2 + $0xf4] sm:$0x8] }
  0x94   : > { %v2406_v24 = vmul.f32 %v2382_v14, %v4664_v47  ;;  %v2566_v26 = vunpack.c.l.bf16 %v2558_v8  ;;  %v2574_v32 = vmul.f32 %v4842_v2, %v4732_v23  ;;  %v2575_v33 = vmul.f32 %v4846_v5, %v4732_v23 }
  0x95   : > { %v2431_v30 = vadd.f32 %v2407_v19, %v2334_v15  ;;  %v2486_v31 = vrot.slane %v2454_v21, 1  ;;  %v2183_v11 = vadd.f32 %v2134_v54, %v2079_v22  ;;  %v2487_v35 = vrot.slane %v2455_v25, 1 }
  0x96   : > { %v2430_v34 = vadd.f32 %v2406_v24, %v2333_v16  ;;  %v2576_v28 = vmul.f32 %v2566_v26, %v4732_v23  ;;  %v2622_v38 = vrot.slane %v2574_v32, 2  ;;  %v2623_v39 = vrot.slane %v2575_v33, 2 }
  0x97   : > { %v307_v40 = vsel %vm4605_vm4, 0, %v306_v27  ;;  %v355_v48 = vsel %vm4610_vm5, 0, %v354_v29  ;;  %v2335_v49 = vadd.f32 %v2273_v9, %v2183_v11  ;;  %v2488_v51 = vsel %vm555_vm6, %v2486_v31, %v2487_v35 }
  0x98   : > { %v2534_v52 = vadd.f32 %v2486_v31, %v2430_v34  ;;  %v2625_v55 = vrot.slane %v2576_v28, 2  ;;  %308 = vst [vmem:[#allocation2 + $0x10c] sm:$0x8] %v307_v40  ;;  %356 = vst [vmem:[#allocation2 + $0x118] sm:$0x1] %v355_v48  ;;  %v2535_v54 = vadd.f32 %v2488_v51, %v2431_v30  ;;  %v2624_v56 = vsel %vm696_vm7, %v2622_v38, %v2623_v39  ;;  %v4102_v51 = vld [vmem:[#allocation2 + $0x110] sm:$0xff]  }
  0x99   : > { %v1703_v57 = vunpack.c.l.bf16 %v1679_v36  ;;  %v1728_v58 = vmul.f32 %v4820_v17, %v4647_v41  ;;  %v2432_v61 = vadd.f32 %v2408_v20, %v2335_v49  ;;  %v1729_v1 = vmul.f32 %v4822_v18, %v4647_v41 }
  0x9a   : > { %v2626_v62 = vsel %vm696_vm7, %v2623_v39, %v2625_v55  ;;  %v2686_v0 = vadd.f32 %v2622_v38, %v2534_v52  ;;  %v2687_v12 = vadd.f32 %v2624_v56, %v2535_v54  ;;  %v1750_v8 = vmul.f32 %v4820_v17, %v4650_v42  ;;  %v2206_v38 = vld [vmem:[#allocation2 + $0x100] sm:$0x1] }
  0x9b   : > { %v1727_v4 = vmul.f32 %v1703_v57, %v4647_v41  ;;  %v1751_v10 = vmul.f32 %v4822_v18, %v4650_v42  ;;  %v2536_v9 = vadd.f32 %v2487_v35, %v2432_v61  ;;  %v1861_v14 = vunpack.c.l.bf16 %v1853_v59 }
  0x9c   : > { %v2734_v16 = vrot.slane %v2686_v0, 7  ;;  %v1871_v15 = vmul.f32 %v4820_v17, %v4653_v43  ;;  %v2735_v19 = vrot.slane %v2687_v12, 7  ;;  %v1783_v20 = vrot.slane %v1750_v8, 1 }
  0x9d   : > { %v1784_v21 = vrot.slane %v1751_v10, 1  ;;  %v1872_v22 = vmul.f32 %v4822_v18, %v4653_v43  ;;  %v2688_v24 = vadd.f32 %v2626_v62, %v2536_v9  ;;  %v1873_v25 = vmul.f32 %v1861_v14, %v4653_v43 }
  0x9e   : > { %v1921_v26 = vrot.slane %v1871_v15, 2  ;;  %v2032_v27 = vunpack.c.l.bf16 %v2008_v13  ;;  %v2736_v29 = vsel %vm260_vm2, %v2734_v16, %v2735_v19  ;;  %v1831_v31 = vadd.f32 %v1783_v20, %v1727_v4 }
  0x9f   : > { %v1785_v30 = vsel %vm555_vm6, %v1783_v20, %v1784_v21  ;;  %v1833_v32 = vadd.f32 %v1784_v21, %v1729_v1  ;;  %v2737_v33 = vrot.slane %v2688_v24, 7  ;;  %v1922_v17 = vrot.slane %v1872_v22, 2  ;;  %v2361_v62 = vld [vmem:[#allocation2 + $0x10c] sm:$0x8] }
  0xa0   : > { %v1832_v11 = vadd.f32 %v1785_v30, %v1728_v58  ;;  %v1924_v34 = vrot.slane %v1873_v25, 2  ;;  %v1983_v35 = vadd.f32 %v1921_v26, %v1831_v31  ;;  %v2056_v28 = vmul.f32 %v2032_v27, %v4655_v44  ;;  %v449_v30 = vld [vmem:[#allocation2 + $0x34] sm:$0x8] }
  0xa1   : > { %v2057_v18 = vmul.f32 %v4842_v2, %v4655_v44  ;;  %v2058_v36 = vmul.f32 %v4846_v5, %v4655_v44  ;;  %v2738_v39 = vsel %vm260_vm2, %v2735_v19, %v2737_v33  ;;  %v1923_v40 = vsel %vm696_vm7, %v1921_v26, %v1922_v17  ;;  %v2559_v19 = vld [vmem:[#allocation2 + $0x118] sm:$0x1] }
  0xa2   : > { %v1925_v48 = vsel %vm696_vm7, %v1922_v17, %v1924_v34  ;;  %v2103_v49 = vmul.f32 %v4842_v2, %v4658_v45  ;;  %v3937_v52 = vpack.c.bf16 %v2738_v39, %v2736_v29  ;;  %v1984_v55 = vadd.f32 %v1923_v40, %v1832_v11 }
  0xa3   : > { %v1985_v54 = vadd.f32 %v1925_v48, %v1833_v32  ;;  %v2080_v56 = vadd.f32 %v2056_v28, %v1983_v35  ;;  %v2104_v57 = vmul.f32 %v4846_v5, %v4658_v45  ;;  %v2214_v59 = vunpack.c.l.bf16 %v2206_v38 }
  0xa4   : > { %v2136_v58 = vrot.slane %v2103_v49, 1  ;;  %v2224_v61 = vmul.f32 %v4842_v2, %v4661_v46  ;;  %4109 = vst [vmem:[#allocation3 + $0x40] sm:$0xff] %v3937_v52   ;;  %v2081_v0 = vadd.f32 %v2057_v18, %v1984_v55  ;;  %v2225_v3 = vmul.f32 %v4846_v5, %v4661_v46  ;;  %v285_v18 = vld [vmem:[#allocation2 + $0x64] sm:$0x8] }
  0xa5   : > { %v2082_v1 = vadd.f32 %v2058_v36, %v1985_v54  ;;  %v4903_v12 = vunpack.c.l.bf16 %v4102_v51  ;;  %v2137_v4 = vrot.slane %v2104_v57, 1  ;;  %v2226_v10 = vmul.f32 %v2214_v59, %v4661_v46  ;;  %v333_v36 = vld [vmem:[#allocation2 + $0x70] sm:$0x1] }
  0xa6   : > { %v2184_v8 = vadd.f32 %v2136_v58, %v2080_v56  ;;  %v2274_v13 = vrot.slane %v2224_v61, 2  ;;  %v2275_v9 = vrot.slane %v2225_v3, 2  ;;  %v4906_v16 = vunpack.c.h.bf16 %v4102_v51  ;;  %v630_v3 = vld [vmem:[#allocation2 + $0x40] sm:$0x1] }
  0xa7   : > { %v2385_v14 = vunpack.c.l.bf16 %v2361_v62  ;;  %v2410_v15 = vmul.f32 %v4903_v12, %v4664_v47  ;;  %v2138_v20 = vsel %vm555_vm6, %v2136_v58, %v2137_v4  ;;  %v2186_v21 = vadd.f32 %v2137_v4, %v2082_v1 }
  0xa8   : > { %v2277_v22 = vrot.slane %v2226_v10, 2  ;;  %v2336_v24 = vadd.f32 %v2274_v13, %v2184_v8  ;;  %v2185_v25 = vadd.f32 %v2138_v20, %v2081_v0  ;;  %v2276_v26 = vsel %vm696_vm7, %v2274_v13, %v2275_v9 }
  0xa9   : > { %v2409_v27 = vmul.f32 %v2385_v14, %v4664_v47  ;;  %v2411_v29 = vmul.f32 %v4906_v16, %v4664_v47  ;;  %v2456_v32 = vmul.f32 %v4903_v12, %v4683_v63  ;;  %v2457_v33 = vmul.f32 %v4906_v16, %v4683_v63 }
  0xaa   : > { %v2278_v31 = vsel %vm696_vm7, %v2275_v9, %v2277_v22  ;;  %v2567_v11 = vunpack.c.l.bf16 %v2559_v19  ;;  %v2337_v17 = vadd.f32 %v2276_v26, %v2185_v25  ;;  %v2577_v28 = vmul.f32 %v4903_v12, %v4732_v23  ;;  %v398_v9 = vld [vmem:[%s4592_s28 + $0x68] sm:$0xff]  }
  0xab   : > { %v2338_v34 = vadd.f32 %v2278_v31, %v2186_v21  ;;  %v2433_v35 = vadd.f32 %v2409_v27, %v2336_v24  ;;  %v4293_v38 = vld [vmem:[#allocation3 + $0x40] sm:$0xff]   ;;  %v2489_v39 = vrot.slane %v2456_v32, 1  ;;  %v2578_v40 = vmul.f32 %v4906_v16, %v4732_v23  ;;  %v791_v21 = vld [vmem:[#allocation2 + $0x4c] sm:$0x8]  ;;  %430 = vst [vmem:[#allocation2 + $0x158] sm:$0xff] %v398_v9  }
  0xac   : > { %v2579_v48 = vmul.f32 %v2567_v11, %v4732_v23  ;;  %v473_v49 = vunpack.c.l.bf16 %v449_v30  ;;  %v2434_v51 = vadd.f32 %v2410_v15, %v2337_v17  ;;  %v2490_v55 = vrot.slane %v2457_v33, 1  ;;  %4188 = vmatprep.mubr.bf16.mxu1 %v4293_v38 }
  0xad   : > { %v2435_v52 = vadd.f32 %v2411_v29, %v2338_v34  ;;  %v2627_v54 = vrot.slane %v2577_v28, 2  ;;  %v2537_v56 = vadd.f32 %v2489_v39, %v2433_v35  ;;  %v2628_v57 = vrot.slane %v2578_v40, 2  ;;  %v995_v40 = vld [vmem:[#allocation2 + $0x58] sm:$0x1] }
  0xae   : > { %v2630_v58 = vrot.slane %v2579_v48, 2  ;;  %v286_v59 = vsel %vm4605_vm4, 0, %v285_v18  ;;  %v2491_v61 = vsel %vm555_vm6, %v2489_v39, %v2490_v55  ;;  %v334_v0 = vsel %vm4610_vm5, 0, %v333_v36 }
  0xaf   : > { %v2539_v62 = vadd.f32 %v2490_v55, %v2435_v52  ;;  %287 = vst [vmem:[#allocation2 + $0x64] sm:$0x8] %v286_v59  ;;  %v501_v1 = vmul.f32 %v4647_v41, %v473_v49  ;;  %v2538_v4 = vadd.f32 %v2491_v61, %v2434_v51  ;;  %v2629_v8 = vsel %vm696_vm7, %v2627_v54, %v2628_v57 }
  0xb0   : > { %v2631_v10 = vsel %vm696_vm7, %v2628_v57, %v2630_v58  ;;  %v2689_v13 = vadd.f32 %v2627_v54, %v2537_v56  ;;  %335 = vst [vmem:[#allocation2 + $0x70] sm:$0x1] %v334_v0  ;;  %v502_v15 = vmul.f32 %v4708_v37, %v4647_v41  ;;  %v503_v19 = vmul.f32 %v4717_v60, %v4647_v41 }
  0xb1   : > { %v2691_v14 = vadd.f32 %v2631_v10, %v2539_v62  ;;  %v527_v20 = vmul.f32 %v4708_v37, %v4650_v42  ;;  %v2690_v22 = vadd.f32 %v2629_v8, %v2538_v4  ;;  %v528_v25 = vmul.f32 %v4717_v60, %v4650_v42  ;;  %v4072_v62 = vld [vmem:[#allocation2 + $0x68] sm:$0xff]  }
  0xb2   : > { %v2739_v24 = vrot.slane %v2689_v13, 7  ;;  %v638_v26 = vunpack.c.l.bf16 %v630_v3  ;;  %v654_v30 = vmul.f32 %v4708_v37, %v4653_v43  ;;  %v655_v31 = vmul.f32 %v4717_v60, %v4653_v43 }
  0xb3   : > { %v2742_v27 = vrot.slane %v2691_v14, 7  ;;  %v562_v29 = vrot.slane %v527_v20, 1  ;;  %v2740_v32 = vrot.slane %v2690_v22, 7  ;;  %v563_v33 = vrot.slane %v528_v25, 1 }
  0xb4   : > { %v656_v11 = vmul.f32 %v4653_v43, %v638_v26  ;;  %v815_v17 = vunpack.c.l.bf16 %v791_v21  ;;  %v707_v35 = vrot.slane %v654_v30, 2  ;;  %v708_v28 = vrot.slane %v655_v31, 2 }
  0xb5   : > { %v610_v34 = vadd.f32 %v562_v29, %v501_v1  ;;  %v844_v18 = vmul.f32 %v4776_v50, %v4655_v44  ;;  %v2741_v36 = vsel %vm260_vm2, %v2739_v24, %v2740_v32  ;;  %v2743_v38 = vsel %vm260_vm2, %v2740_v32, %v2742_v27 }
  0xb6   : > { %v564_v37 = vsel %vm555_vm6, %v562_v29, %v563_v33  ;;  %v612_v39 = vadd.f32 %v563_v33, %v503_v19  ;;  %v3942_v60 = vpack.c.bf16 %v2743_v38, %v2741_v36  ;;  %v709_v49 = vsel %vm696_vm7, %v707_v35, %v708_v28  ;;  %v1156_v14 = vld [vmem:[#allocation2 + $0x64] sm:$0x8] }
  0xb7   : > { %v611_v48 = vadd.f32 %v564_v37, %v502_v15  ;;  %v710_v51 = vrot.slane %v656_v11, 2  ;;  %v767_v52 = vadd.f32 %v707_v35, %v610_v34  ;;  %v843_v55 = vmul.f32 %v4655_v44, %v815_v17  ;;  %v1360_v32 = vld [vmem:[#allocation2 + $0x70] sm:$0x1] }
  0xb8   : > { %v845_v54 = vmul.f32 %v4778_v53, %v4655_v44  ;;  %v893_v56 = vmul.f32 %v4776_v50, %v4658_v45  ;;  %4110 = vst [vmem:[#allocation3 + $0x48] sm:$0xff] %v3942_v60   ;;  %v894_v59 = vmul.f32 %v4778_v53, %v4658_v45  ;;  %v1003_v61 = vunpack.c.l.bf16 %v995_v40 }
  0xb9   : > { %v711_v57 = vsel %vm696_vm7, %v708_v28, %v710_v51  ;;  %v768_v58 = vadd.f32 %v709_v49, %v611_v48  ;;  %v867_v1 = vadd.f32 %v843_v55, %v767_v52  ;;  %v1019_v4 = vmul.f32 %v4776_v50, %v4661_v46  ;;  %v288_v48 = vld [vmem:[#allocation2 + $0x7c] sm:$0x8]  ;;  %v336_v49 = vld [vmem:[#allocation2 + $0x88] sm:$0x1]  ;;  %v452_v51 = vld [vmem:[#allocation2 + $0x4c] sm:$0x8] }
  0xba   : > { %v769_v0 = vadd.f32 %v711_v57, %v612_v39  ;;  %v927_v3 = vrot.slane %v893_v56, 1  ;;  %v928_v10 = vrot.slane %v894_v59, 1  ;;  %v1020_v13 = vmul.f32 %v4778_v53, %v4661_v46 }
  0xbb   : > { %v868_v8 = vadd.f32 %v844_v18, %v768_v58  ;;  %v1021_v9 = vmul.f32 %v4661_v46, %v1003_v61  ;;  %v1071_v20 = vrot.slane %v1019_v4, 2  ;;  %v4966_v21 = vunpack.c.l.bf16 %v4072_v62 }
  0xbc   : > { %v869_v15 = vadd.f32 %v845_v54, %v769_v0  ;;  %v975_v19 = vadd.f32 %v927_v3, %v867_v1  ;;  %v929_v22 = vsel %vm555_vm6, %v927_v3, %v928_v10  ;;  %v1072_v24 = vrot.slane %v1020_v13, 2 }
  0xbd   : > { %v1074_v25 = vrot.slane %v1021_v9, 2  ;;  %v4969_v26 = vunpack.c.h.bf16 %v4072_v62  ;;  %v976_v27 = vadd.f32 %v929_v22, %v868_v8  ;;  %v1180_v31 = vunpack.c.l.bf16 %v1156_v14  ;;  %v631_v9 = vld [vmem:[#allocation2 + $0x58] sm:$0x1]  ;;  %v400_v22 = vld [vmem:[%s4592_s28 + $0x70] sm:$0xff]  }
  0xbe   : > { %v977_v29 = vadd.f32 %v928_v10, %v869_v15  ;;  %v1131_v30 = vadd.f32 %v1071_v20, %v975_v19  ;;  %v1073_v33 = vsel %vm696_vm7, %v1071_v20, %v1072_v24  ;;  %v1209_v17 = vmul.f32 %v4966_v21, %v4664_v47  ;;  %432 = vst [vmem:[#allocation2 + $0x170] sm:$0xff] %v400_v22  }
  0xbf   : > { %v1075_v11 = vsel %vm696_vm7, %v1072_v24, %v1074_v25  ;;  %v1210_v34 = vmul.f32 %v4969_v26, %v4664_v47  ;;  %v4294_v35 = vld [vmem:[#allocation3 + $0x48] sm:$0xff]   ;;  %v1132_v28 = vadd.f32 %v1073_v33, %v976_v27  ;;  %v1208_v36 = vmul.f32 %v4664_v47, %v1180_v31 }
  0xc0   : > { %v1133_v18 = vadd.f32 %v1075_v11, %v977_v29  ;;  %v1258_v38 = vmul.f32 %v4966_v21, %v4683_v63  ;;  %v1259_v37 = vmul.f32 %v4969_v26, %v4683_v63  ;;  %v1368_v39 = vunpack.c.l.bf16 %v1360_v32  ;;  %4189 = vmatmul.mubr.bf16.vlgmr.msra.gmra.mxu1 %v4294_v35 }
  0xc1   : > { %v1384_v40 = vmul.f32 %v4966_v21, %v4732_v23  ;;  %v1385_v60 = vmul.f32 %v4969_v26, %v4732_v23  ;;  %v1232_v52 = vadd.f32 %v1208_v36, %v1131_v30  ;;  %v1233_v55 = vadd.f32 %v1209_v17, %v1132_v28  ;;  %v794_v30 = vld [vmem:[#allocation2 + $0x64] sm:$0x8] }
  0xc2   : > { %v1234_v54 = vadd.f32 %v1210_v34, %v1133_v18  ;;  %v1292_v56 = vrot.slane %v1258_v38, 1  ;;  %v1293_v57 = vrot.slane %v1259_v37, 1  ;;  %v1386_v58 = vmul.f32 %v4732_v23, %v1368_v39 }
  0xc3   : > { %v1436_v59 = vrot.slane %v1384_v40, 2  ;;  %v1437_v61 = vrot.slane %v1385_v60, 2  ;;  %v289_v0 = vsel %vm4605_vm4, 0, %v288_v48  ;;  %v337_v1 = vsel %vm4610_vm5, 0, %v336_v49 }
  0xc4   : > { %v1340_v62 = vadd.f32 %v1292_v56, %v1232_v52  ;;  %v476_v3 = vunpack.c.l.bf16 %v452_v51  ;;  %v1294_v4 = vsel %vm555_vm6, %v1292_v56, %v1293_v57  ;;  %v1342_v8 = vadd.f32 %v1293_v57, %v1234_v54  ;;  %290 = vst [vmem:[#allocation2 + $0x7c] sm:$0x8] %v289_v0  ;;  %338 = vst [vmem:[#allocation2 + $0x88] sm:$0x1] %v337_v1  ;;  %v996_v57 = vld [vmem:[#allocation2 + $0x70] sm:$0x1] }
  0xc5   : > { %v1438_v10 = vsel %vm696_vm7, %v1436_v59, %v1437_v61  ;;  %v1439_v13 = vrot.slane %v1386_v58, 2  ;;  %v1341_v14 = vadd.f32 %v1294_v4, %v1233_v55  ;;  %v505_v20 = vmul.f32 %v4776_v50, %v4647_v41  ;;  %v4073_v0 = vld [vmem:[#allocation2 + $0x80] sm:$0xff]  }
  0xc6   : > { %v1496_v15 = vadd.f32 %v1436_v59, %v1340_v62  ;;  %v504_v19 = vmul.f32 %v4647_v41, %v476_v3  ;;  %v506_v25 = vmul.f32 %v4778_v53, %v4647_v41  ;;  %v529_v27 = vmul.f32 %v4776_v50, %v4650_v42 }
  0xc7   : > { %v1440_v24 = vsel %vm696_vm7, %v1437_v61, %v1439_v13  ;;  %v530_v29 = vmul.f32 %v4778_v53, %v4650_v42  ;;  %v1497_v31 = vadd.f32 %v1438_v10, %v1341_v14  ;;  %v639_v11 = vunpack.c.l.bf16 %v631_v9 }
  0xc8   : > { %v1498_v32 = vadd.f32 %v1440_v24, %v1342_v8  ;;  %v1549_v33 = vrot.slane %v1496_v15, 7  ;;  %v565_v17 = vrot.slane %v529_v27, 1  ;;  %v657_v35 = vmul.f32 %v4776_v50, %v4653_v43 }
  0xc9   : > { %v566_v34 = vrot.slane %v530_v29, 1  ;;  %v658_v28 = vmul.f32 %v4778_v53, %v4653_v43  ;;  %v1550_v18 = vrot.slane %v1497_v31, 7  ;;  %v659_v38 = vmul.f32 %v4653_v43, %v639_v11 }
  0xca   : > { %v1552_v36 = vrot.slane %v1498_v32, 7  ;;  %v818_v37 = vunpack.c.l.bf16 %v794_v30  ;;  %v613_v40 = vadd.f32 %v565_v17, %v504_v19  ;;  %v712_v48 = vrot.slane %v657_v35, 2 }
  0xcb   : > { %v567_v39 = vsel %vm555_vm6, %v565_v17, %v566_v34  ;;  %v615_v60 = vadd.f32 %v566_v34, %v506_v25  ;;  %v1551_v49 = vsel %vm260_vm2, %v1549_v33, %v1550_v18  ;;  %v713_v55 = vrot.slane %v658_v28, 2  ;;  %v1159_v15 = vld [vmem:[#allocation2 + $0x7c] sm:$0x8] }
  0xcc   : > { %v1553_v51 = vsel %vm260_vm2, %v1550_v18, %v1552_v36  ;;  %v614_v52 = vadd.f32 %v567_v39, %v505_v20  ;;  %v715_v54 = vrot.slane %v659_v38, 2  ;;  %v770_v56 = vadd.f32 %v712_v48, %v613_v40  ;;  %v1361_v18 = vld [vmem:[#allocation2 + $0x88] sm:$0x1]  ;;  %v309_v40 = vld [vmem:[#allocation2 + $0x124] sm:$0x8] }
  0xcd   : > { %v3811_v50 = vpack.c.bf16 %v1553_v51, %v1551_v49  ;;  %v846_v53 = vmul.f32 %v4655_v44, %v818_v37  ;;  %v714_v58 = vsel %vm696_vm7, %v712_v48, %v713_v55  ;;  %v847_v59 = vmul.f32 %v4966_v21, %v4655_v44 }
  0xce   : > { %v848_v61 = vmul.f32 %v4969_v26, %v4655_v44  ;;  %v895_v62 = vmul.f32 %v4966_v21, %v4658_v45  ;;  %v716_v1 = vsel %vm696_vm7, %v713_v55, %v715_v54  ;;  %v771_v3 = vadd.f32 %v714_v58, %v614_v52 }
  0xcf   : > { %4079 = vst [vmem:[#allocation3 + $0x10] sm:$0xff] %v3811_v50   ;;  %v870_v4 = vadd.f32 %v846_v53, %v770_v56  ;;  %v896_v8 = vmul.f32 %v4969_v26, %v4658_v45  ;;  %v772_v10 = vadd.f32 %v716_v1, %v615_v60  ;;  %v1004_v9 = vunpack.c.l.bf16 %v996_v57  ;;  %v357_v53 = vld [vmem:[#allocation2 + $0x130] sm:$0x1] }
  0xd0   : > { %v930_v13 = vrot.slane %v895_v62, 1  ;;  %v1022_v14 = vmul.f32 %v4966_v21, %v4661_v46  ;;  %v871_v19 = vadd.f32 %v847_v59, %v771_v3  ;;  %v1023_v22 = vmul.f32 %v4969_v26, %v4661_v46  ;;  %v1682_v62 = vld [vmem:[#allocation2 + $0xf4] sm:$0x8] }
  0xd1   : > { %v931_v20 = vrot.slane %v896_v8, 1  ;;  %v5027_v24 = vunpack.c.l.bf16 %v4073_v0  ;;  %v872_v25 = vadd.f32 %v848_v61, %v772_v10  ;;  %v1024_v29 = vmul.f32 %v4661_v46, %v1004_v9 }
  0xd2   : > { %v978_v27 = vadd.f32 %v930_v13, %v870_v4  ;;  %v1076_v30 = vrot.slane %v1022_v14, 2  ;;  %v1077_v32 = vrot.slane %v1023_v22, 2  ;;  %v5031_v33 = vunpack.c.h.bf16 %v4073_v0  ;;  %v1854_v22 = vld [vmem:[#allocation2 + $0x100] sm:$0x1] }
  0xd3   : > { %v932_v31 = vsel %vm555_vm6, %v930_v13, %v931_v20  ;;  %v1183_v11 = vunpack.c.l.bf16 %v1159_v15  ;;  %v980_v34 = vadd.f32 %v931_v20, %v872_v25  ;;  %v1079_v35 = vrot.slane %v1024_v29, 2 }
  0xd4   : > { %v979_v17 = vadd.f32 %v932_v31, %v871_v19  ;;  %v1134_v28 = vadd.f32 %v1076_v30, %v978_v27  ;;  %v1078_v36 = vsel %vm696_vm7, %v1076_v30, %v1077_v32  ;;  %v1212_v37 = vmul.f32 %v5027_v24, %v4664_v47 }
  0xd5   : > { %v1211_v38 = vmul.f32 %v4664_v47, %v1183_v11  ;;  %v1213_v39 = vmul.f32 %v5031_v33, %v4664_v47  ;;  %v1080_v48 = vsel %vm696_vm7, %v1077_v32, %v1079_v35  ;;  %v1260_v51 = vmul.f32 %v5027_v24, %v4683_v63 }
  0xd6   : > { %v4295_v60 = vld [vmem:[#allocation3 + $0x10] sm:$0xff]   ;;  %v1135_v49 = vadd.f32 %v1078_v36, %v979_v17  ;;  %v1261_v52 = vmul.f32 %v5031_v33, %v4683_v63  ;;  %v1136_v55 = vadd.f32 %v1080_v48, %v980_v34  ;;  %v1369_v54 = vunpack.c.l.bf16 %v1361_v18  ;;  %v2011_v34 = vld [vmem:[#allocation2 + $0x10c] sm:$0x8] }
  0xd7   : > { %v1235_v50 = vadd.f32 %v1211_v38, %v1134_v28  ;;  %v1387_v56 = vmul.f32 %v5027_v24, %v4732_v23  ;;  %4176 = vmatprep.mubr.bf16.mxu0 %v4295_v60  ;;  %v1295_v58 = vrot.slane %v1260_v51, 1  ;;  %v1388_v61 = vmul.f32 %v5031_v33, %v4732_v23 }
  0xd8   : > { %v1236_v57 = vadd.f32 %v1212_v37, %v1135_v49  ;;  %v1296_v59 = vrot.slane %v1261_v52, 1  ;;  %v1237_v0 = vadd.f32 %v1213_v39, %v1136_v55  ;;  %v1389_v1 = vmul.f32 %v4732_v23, %v1369_v54 }
  0xd9   : > { %v1441_v3 = vrot.slane %v1387_v56, 2  ;;  %v310_v4 = vsel %vm4605_vm4, 0, %v309_v40  ;;  %v1343_v10 = vadd.f32 %v1295_v58, %v1235_v50  ;;  %v1442_v13 = vrot.slane %v1388_v61, 2 }
  0xda   : > { %v1297_v8 = vsel %vm555_vm6, %v1295_v58, %v1296_v59  ;;  %311 = vst [vmem:[#allocation2 + $0x124] sm:$0x8] %v310_v4  ;;  %v358_v9 = vsel %vm4610_vm5, 0, %v357_v53  ;;  %v1345_v15 = vadd.f32 %v1296_v59, %v1237_v0  ;;  %v1444_v19 = vrot.slane %v1389_v1, 2 }
  0xdb   : > { %v1344_v14 = vadd.f32 %v1297_v8, %v1236_v57  ;;  %359 = vst [vmem:[#allocation2 + $0x130] sm:$0x1] %v358_v9  ;;  %v1706_v20 = vunpack.c.l.bf16 %v1682_v62  ;;  %v1443_v25 = vsel %vm696_vm7, %v1441_v3, %v1442_v13  ;;  %v1499_v27 = vadd.f32 %v1441_v3, %v1343_v10  ;;  %v2207_v62 = vld [vmem:[#allocation2 + $0x118] sm:$0x1] }
  0xdc   : > { %v1731_v29 = vmul.f32 %v4842_v2, %v4647_v41  ;;  %v1732_v30 = vmul.f32 %v4846_v5, %v4647_v41  ;;  %v1445_v31 = vsel %vm696_vm7, %v1442_v13, %v1444_v19  ;;  %v1752_v17 = vmul.f32 %v4842_v2, %v4650_v42 }
  0xdd   : > { %v1500_v32 = vadd.f32 %v1443_v25, %v1344_v14  ;;  %v1730_v11 = vmul.f32 %v1706_v20, %v4647_v41  ;;  %v1501_v35 = vadd.f32 %v1445_v31, %v1345_v15  ;;  %v1554_v28 = vrot.slane %v1499_v27, 7  ;;  %v4103_v14 = vld [vmem:[#allocation2 + $0x128] sm:$0xff]  }
  0xde   : > { %v1753_v18 = vmul.f32 %v4846_v5, %v4650_v42  ;;  %v1862_v36 = vunpack.c.l.bf16 %v1854_v22  ;;  %v1786_v37 = vrot.slane %v1752_v17, 1  ;;  %v1874_v39 = vmul.f32 %v4842_v2, %v4653_v43 }
  0xdf   : > { %v1555_v38 = vrot.slane %v1500_v32, 7  ;;  %v1875_v40 = vmul.f32 %v4846_v5, %v4653_v43  ;;  %v1557_v60 = vrot.slane %v1501_v35, 7  ;;  %v2035_v51 = vunpack.c.l.bf16 %v2011_v34 }
  0xe0   : > { %v1787_v48 = vrot.slane %v1753_v18, 1  ;;  %v1876_v49 = vmul.f32 %v1862_v36, %v4653_v43  ;;  %v1834_v55 = vadd.f32 %v1786_v37, %v1730_v11  ;;  %v1926_v50 = vrot.slane %v1874_v39, 2 }
  0xe1   : > { %v1556_v52 = vsel %vm260_vm2, %v1554_v28, %v1555_v38  ;;  %v1927_v54 = vrot.slane %v1875_v40, 2  ;;  %v1558_v56 = vsel %vm260_vm2, %v1555_v38, %v1557_v60  ;;  %v2059_v1 = vmul.f32 %v2035_v51, %v4655_v44  ;;  %v2364_v31 = vld [vmem:[#allocation2 + $0x124] sm:$0x8] }
  0xe2   : > { %v1788_v53 = vsel %vm555_vm6, %v1786_v37, %v1787_v48  ;;  %v1836_v57 = vadd.f32 %v1787_v48, %v1732_v30  ;;  %v1929_v58 = vrot.slane %v1876_v49, 2  ;;  %v3816_v2 = vpack.c.bf16 %v1558_v56, %v1556_v52  ;;  %v2560_v60 = vld [vmem:[#allocation2 + $0x130] sm:$0x1] }
  0xe3   : > { %v1835_v59 = vadd.f32 %v1788_v53, %v1731_v29  ;;  %v1928_v5 = vsel %vm696_vm7, %v1926_v50, %v1927_v54  ;;  %v1986_v61 = vadd.f32 %v1926_v50, %v1834_v55  ;;  %v2060_v3 = vmul.f32 %v4903_v12, %v4655_v44  ;;  %v312_v55 = vld [vmem:[#allocation2 + $0x13c] sm:$0x8] }
  0xe4   : > { %v1930_v0 = vsel %vm696_vm7, %v1927_v54, %v1929_v58  ;;  %v2061_v4 = vmul.f32 %v4906_v16, %v4655_v44  ;;  %4080 = vst [vmem:[#allocation3 + $0x18] sm:$0xff] %v3816_v2   ;;  %v2105_v13 = vmul.f32 %v4903_v12, %v4658_v45  ;;  %v2106_v9 = vmul.f32 %v4906_v16, %v4658_v45 }
  0xe5   : > { %v1987_v8 = vadd.f32 %v1928_v5, %v1835_v59  ;;  %v1988_v10 = vadd.f32 %v1930_v0, %v1836_v57  ;;  %v2083_v15 = vadd.f32 %v2059_v1, %v1986_v61  ;;  %v2215_v19 = vunpack.c.l.bf16 %v2207_v62  ;;  %v360_v61 = vld [vmem:[#allocation2 + $0x148] sm:$0x1] }
  0xe6   : > { %v2227_v20 = vmul.f32 %v4903_v12, %v4661_v46  ;;  %v2228_v22 = vmul.f32 %v4906_v16, %v4661_v46  ;;  %v2139_v29 = vrot.slane %v2105_v13, 1  ;;  %v2140_v30 = vrot.slane %v2106_v9, 1 }
  0xe7   : > { %v2084_v25 = vadd.f32 %v2060_v3, %v1987_v8  ;;  %v2085_v27 = vadd.f32 %v2061_v4, %v1988_v10  ;;  %v2229_v32 = vmul.f32 %v2215_v19, %v4661_v46  ;;  %v5089_v34 = vunpack.c.l.bf16 %v4103_v14  ;;  %v1685_v4 = vld [vmem:[#allocation2 + $0x10c] sm:$0x8] }
  0xe8   : > { %v2279_v11 = vrot.slane %v2227_v20, 2  ;;  %v2280_v17 = vrot.slane %v2228_v22, 2  ;;  %v2141_v35 = vsel %vm555_vm6, %v2139_v29, %v2140_v30  ;;  %v2187_v28 = vadd.f32 %v2139_v29, %v2083_v15 }
  0xe9   : > { %v2189_v18 = vadd.f32 %v2140_v30, %v2085_v27  ;;  %v5092_v36 = vunpack.c.h.bf16 %v4103_v14  ;;  %v2188_v38 = vadd.f32 %v2141_v35, %v2084_v25  ;;  %v2282_v39 = vrot.slane %v2229_v32, 2  ;;  %v1855_v30 = vld [vmem:[#allocation2 + $0x118] sm:$0x1] }
  0xea   : > { %v2281_v37 = vsel %vm696_vm7, %v2279_v11, %v2280_v17  ;;  %v2388_v40 = vunpack.c.l.bf16 %v2364_v31  ;;  %v2339_v48 = vadd.f32 %v2279_v11, %v2187_v28  ;;  %v2413_v49 = vmul.f32 %v5089_v34, %v4664_v47 }
  0xeb   : > { %v2414_v51 = vmul.f32 %v5092_v36, %v4664_v47  ;;  %v2458_v52 = vmul.f32 %v5089_v34, %v4683_v63  ;;  %v4296_v50 = vld [vmem:[#allocation3 + $0x18] sm:$0xff]   ;;  %v2283_v54 = vsel %vm696_vm7, %v2280_v17, %v2282_v39  ;;  %v2340_v56 = vadd.f32 %v2281_v37, %v2188_v38  ;;  %v2014_v37 = vld [vmem:[#allocation2 + $0x124] sm:$0x8] }
  0xec   : > { %v2412_v53 = vmul.f32 %v2388_v40, %v4664_v47  ;;  %v2459_v57 = vmul.f32 %v5092_v36, %v4683_v63  ;;  %v2341_v58 = vadd.f32 %v2283_v54, %v2189_v18  ;;  %v2568_v59 = vunpack.c.l.bf16 %v2560_v60  ;;  %4177 = vmatmul.mubr.bf16.gmra.mxu0 %v4296_v50 }
  0xed   : > { %v2492_v2 = vrot.slane %v2458_v52, 1  ;;  %v2580_v5 = vmul.f32 %v5089_v34, %v4732_v23  ;;  %v2437_v0 = vadd.f32 %v2413_v49, %v2340_v56  ;;  %v2581_v3 = vmul.f32 %v5092_v36, %v4732_v23 }
  0xee   : > { %v2436_v62 = vadd.f32 %v2412_v53, %v2339_v48  ;;  %v2493_v1 = vrot.slane %v2459_v57, 1  ;;  %v2438_v8 = vadd.f32 %v2414_v51, %v2341_v58  ;;  %v2582_v10 = vmul.f32 %v2568_v59, %v4732_v23 }
  0xef   : > { %v2632_v13 = vrot.slane %v2580_v5, 2  ;;  %v313_v9 = vsel %vm4605_vm4, 0, %v312_v55  ;;  %v2633_v19 = vrot.slane %v2581_v3, 2  ;;  %v361_v20 = vsel %vm4610_vm5, 0, %v360_v61 }
  0xf0   : > { %v2494_v14 = vsel %vm555_vm6, %v2492_v2, %v2493_v1  ;;  %v2540_v15 = vadd.f32 %v2492_v2, %v2436_v62  ;;  %314 = vst [vmem:[#allocation2 + $0x13c] sm:$0x8] %v313_v9  ;;  %v2542_v25 = vadd.f32 %v2493_v1, %v2438_v8  ;;  %v2635_v27 = vrot.slane %v2582_v10, 2  ;;  %362 = vst [vmem:[#allocation2 + $0x148] sm:$0x1] %v361_v20 }
  0xf1   : > { %v2541_v22 = vadd.f32 %v2494_v14, %v2437_v0  ;;  %v1709_v29 = vunpack.c.l.bf16 %v1685_v4  ;;  %v2634_v31 = vsel %vm696_vm7, %v2632_v13, %v2633_v19  ;;  %v1734_v11 = vmul.f32 %v4903_v12, %v4647_v41  ;;  %v2208_v4 = vld [vmem:[#allocation2 + $0x130] sm:$0x1] }
  0xf2   : > { %v2692_v32 = vadd.f32 %v2632_v13, %v2540_v15  ;;  %v1735_v17 = vmul.f32 %v4906_v16, %v4647_v41  ;;  %v2636_v35 = vsel %vm696_vm7, %v2633_v19, %v2635_v27  ;;  %v1754_v38 = vmul.f32 %v4903_v12, %v4650_v42 }
  0xf3   : > { %v2693_v28 = vadd.f32 %v2634_v31, %v2541_v22  ;;  %v1733_v18 = vmul.f32 %v1709_v29, %v4647_v41  ;;  %v2694_v39 = vadd.f32 %v2636_v35, %v2542_v25  ;;  %v1755_v60 = vmul.f32 %v4906_v16, %v4650_v42  ;;  %v4104_v22 = vld [vmem:[#allocation2 + $0x140] sm:$0xff]  }
  0xf4   : > { %v2744_v40 = vrot.slane %v2692_v32, 7  ;;  %v1863_v48 = vunpack.c.l.bf16 %v1855_v30  ;;  %v1789_v51 = vrot.slane %v1754_v38, 1  ;;  %v1877_v52 = vmul.f32 %v4903_v12, %v4653_v43 }
  0xf5   : > { %v2745_v49 = vrot.slane %v2693_v28, 7  ;;  %v1878_v55 = vmul.f32 %v4906_v16, %v4653_v43  ;;  %v2747_v50 = vrot.slane %v2694_v39, 7  ;;  %v1790_v54 = vrot.slane %v1755_v60, 1 }
  0xf6   : > { %v1879_v56 = vmul.f32 %v1863_v48, %v4653_v43  ;;  %v2038_v53 = vunpack.c.l.bf16 %v2014_v37  ;;  %v1837_v58 = vadd.f32 %v1789_v51, %v1733_v18  ;;  %v1931_v2 = vrot.slane %v1877_v52, 2 }
  0xf7   : > { %v2746_v57 = vsel %vm260_vm2, %v2744_v40, %v2745_v49  ;;  %v1932_v59 = vrot.slane %v1878_v55, 2  ;;  %v2748_v5 = vsel %vm260_vm2, %v2745_v49, %v2747_v50  ;;  %v1791_v61 = vsel %vm555_vm6, %v1789_v51, %v1790_v54  ;;  %v2367_v35 = vld [vmem:[#allocation2 + $0x13c] sm:$0x8]  ;;  %v2561_v50 = vld [vmem:[#allocation2 + $0x148] sm:$0x1] }
  0xf8   : > { %v1839_v62 = vadd.f32 %v1790_v54, %v1735_v17  ;;  %v1934_v0 = vrot.slane %v1879_v56, 2  ;;  %v3947_v12 = vpack.c.bf16 %v2748_v5, %v2746_v57  ;;  %v1838_v1 = vadd.f32 %v1791_v61, %v1734_v11 }
  0xf9   : > { %v1933_v16 = vsel %vm696_vm7, %v1931_v2, %v1932_v59  ;;  %v1989_v3 = vadd.f32 %v1931_v2, %v1837_v58  ;;  %v2062_v10 = vmul.f32 %v2038_v53, %v4655_v44  ;;  %v2063_v13 = vmul.f32 %v5089_v34, %v4655_v44  ;;  %v291_v58 = vld [vmem:[#allocation2 + $0x94] sm:$0x8] }
  0xfa   : > { %v1935_v8 = vsel %vm696_vm7, %v1932_v59, %v1934_v0  ;;  %v2064_v9 = vmul.f32 %v5092_v36, %v4655_v44  ;;  %4111 = vst [vmem:[#allocation3 + $0x50] sm:$0xff] %v3947_v12   ;;  %v1990_v14 = vadd.f32 %v1933_v16, %v1838_v1  ;;  %v2107_v19 = vmul.f32 %v5089_v34, %v4658_v45 }
  0xfb   : > { %v1991_v15 = vadd.f32 %v1935_v8, %v1839_v62  ;;  %v2108_v20 = vmul.f32 %v5092_v36, %v4658_v45  ;;  %v2086_v25 = vadd.f32 %v2062_v10, %v1989_v3  ;;  %v2216_v27 = vunpack.c.l.bf16 %v2208_v4  ;;  %v339_v3 = vld [vmem:[#allocation2 + $0xa0] sm:$0x1] }
  0xfc   : > { %v2230_v29 = vmul.f32 %v5089_v34, %v4661_v46  ;;  %v2231_v30 = vmul.f32 %v5092_v36, %v4661_v46  ;;  %v2087_v31 = vadd.f32 %v2063_v13, %v1990_v14  ;;  %v2142_v11 = vrot.slane %v2107_v19, 1 }
  0xfd   : > { %v2088_v32 = vadd.f32 %v2064_v9, %v1991_v15  ;;  %v2143_v17 = vrot.slane %v2108_v20, 1  ;;  %v2232_v28 = vmul.f32 %v2216_v27, %v4661_v46  ;;  %v5150_v37 = vunpack.c.l.bf16 %v4104_v22  ;;  %v455_v9 = vld [vmem:[#allocation2 + $0x64] sm:$0x8] }
  0xfe   : > { %v2284_v18 = vrot.slane %v2230_v29, 2  ;;  %v2285_v38 = vrot.slane %v2231_v30, 2  ;;  %v2190_v40 = vadd.f32 %v2142_v11, %v2086_v25  ;;  %v5153_v48 = vunpack.c.h.bf16 %v4104_v22 }
  0xff   : > { %v2144_v39 = vsel %vm555_vm6, %v2142_v11, %v2143_v17  ;;  %v2192_v60 = vadd.f32 %v2143_v17, %v2088_v32  ;;  %v2287_v52 = vrot.slane %v2232_v28, 2  ;;  %v2391_v55 = vunpack.c.l.bf16 %v2367_v35  ;;  %v632_v17 = vld [vmem:[#allocation2 + $0x70] sm:$0x1]  ;;  %v402_v35 = vld [vmem:[%s4592_s28 + $0x78] sm:$0xff]   ;;  %s4365_s28 = sshll.u32 %s4436_s19, 4  ;;  %s4366_s28 = int_to_ptr.vmem [resolvable:$false] %s4365_s28 }
 0x100   : > { %v2191_v49 = vadd.f32 %v2144_v39, %v2087_v31  ;;  %v2286_v51 = vsel %vm696_vm7, %v2284_v18, %v2285_v38  ;;  %v2342_v54 = vadd.f32 %v2284_v18, %v2190_v40  ;;  %v2416_v56 = vmul.f32 %v5150_v37, %v4664_v47  ;;  %434 = vst [vmem:[#allocation2 + $0x188] sm:$0xff] %v402_v35   ;;  %s4367_s23 = scalar_lea.vmem %s4366_s28, 4096  ;;  %p4368_p12 = scmp.lt.s32.totalorder %s5711_s11, %s4366_s28 }
 0x101   : > { %v2417_v53 = vmul.f32 %v5153_v48, %v4664_v47  ;;  %v2460_v57 = vmul.f32 %v5150_v37, %v4683_v63  ;;  %v4297_v2 = vld [vmem:[#allocation3 + $0x50] sm:$0xff]   ;;  %v2288_v59 = vsel %vm696_vm7, %v2285_v38, %v2287_v52  ;;  %v2415_v61 = vmul.f32 %v2391_v55, %v4664_v47  ;;  %v797_v52 = vld [vmem:[#allocation2 + $0x7c] sm:$0x8]  ;;  %p4369_p13 = scmp.lt.s32.totalorder %s4367_s23, %s4361_s12 }
 0x102   : > { %v2343_v5 = vadd.f32 %v2286_v51, %v2191_v49  ;;  %v2461_v62 = vmul.f32 %v5153_v48, %v4683_v63  ;;  %v2344_v0 = vadd.f32 %v2288_v59, %v2192_v60  ;;  %v2569_v1 = vunpack.c.l.bf16 %v2561_v50  ;;  %4192 = vmatprep.mubr.bf16.mxu1 %v4297_v2 }
 0x103   : > { %v2495_v12 = vrot.slane %v2460_v57, 1  ;;  %v2583_v16 = vmul.f32 %v5150_v37, %v4732_v23  ;;  %v2439_v4 = vadd.f32 %v2415_v61, %v2342_v54  ;;  %v2584_v13 = vmul.f32 %v5153_v48, %v4732_v23  ;;  %p4370_p0 = por %p4369_p13, %p4368_p12 }
 0x104   : > { %v2440_v8 = vadd.f32 %v2416_v56, %v2343_v5  ;;  %v2496_v10 = vrot.slane %v2461_v62, 1  ;;  %v2441_v14 = vadd.f32 %v2417_v53, %v2344_v0  ;;  %v2585_v15 = vmul.f32 %v2569_v1, %v4732_v23 }
 0x105   : > { %v2637_v19 = vrot.slane %v2583_v16, 2  ;;  %v292_v20 = vsel %vm4605_vm4, 0, %v291_v58  ;;  %v2543_v25 = vadd.f32 %v2495_v12, %v2439_v4  ;;  %v2638_v27 = vrot.slane %v2584_v13, 2  ;;  %p4371_p5 = pnand %p4370_p0, %p4364_p10 }
 0x106   : > { %v2497_v22 = vsel %vm555_vm6, %v2495_v12, %v2496_v10  ;;  %293 = vst [vmem:[#allocation2 + $0x94] sm:$0x8] %v292_v20  ;;  %v340_v29 = vsel %vm4610_vm5, 0, %v339_v3  ;;  %v2545_v31 = vadd.f32 %v2496_v10, %v2441_v14  ;;  %v2640_v32 = vrot.slane %v2585_v15, 2  ;;  %v997_v14 = vld [vmem:[#allocation2 + $0x88] sm:$0x1] }
 0x107   : > { %v2544_v30 = vadd.f32 %v2497_v22, %v2440_v8  ;;  %341 = vst [vmem:[#allocation2 + $0xa0] sm:$0x1] %v340_v29  ;;  %v479_v11 = vunpack.c.l.bf16 %v455_v9  ;;  %v2639_v28 = vsel %vm696_vm7, %v2637_v19, %v2638_v27  ;;  %v2695_v18 = vadd.f32 %v2637_v19, %v2543_v25 }
 0x108   : > { %v508_v38 = vmul.f32 %v4966_v21, %v4647_v41  ;;  %v509_v39 = vmul.f32 %v4969_v26, %v4647_v41  ;;  %v2641_v40 = vsel %vm696_vm7, %v2638_v27, %v2640_v32  ;;  %v531_v51 = vmul.f32 %v4966_v21, %v4650_v42 }
 0x109   : > { %v2696_v60 = vadd.f32 %v2639_v28, %v2544_v30  ;;  %v507_v49 = vmul.f32 %v4647_v41, %v479_v11  ;;  %v2697_v55 = vadd.f32 %v2641_v40, %v2545_v31  ;;  %v2749_v50 = vrot.slane %v2695_v18, 7  ;;  %v4074_v31 = vld [vmem:[#allocation2 + $0x98] sm:$0xff]  }
 0x10a   : > { %v532_v54 = vmul.f32 %v4969_v26, %v4650_v42  ;;  %v640_v56 = vunpack.c.l.bf16 %v632_v17  ;;  %v568_v57 = vrot.slane %v531_v51, 1  ;;  %v660_v58 = vmul.f32 %v4966_v21, %v4653_v43 }
 0x10b   : > { %v2750_v53 = vrot.slane %v2696_v60, 7  ;;  %v661_v2 = vmul.f32 %v4969_v26, %v4653_v43  ;;  %v2752_v59 = vrot.slane %v2697_v55, 7  ;;  %v821_v62 = vunpack.c.l.bf16 %v797_v52 }
 0x10c   : > { %v569_v5 = vrot.slane %v532_v54, 1  ;;  %v662_v61 = vmul.f32 %v4653_v43, %v640_v56  ;;  %v616_v12 = vadd.f32 %v568_v57, %v507_v49  ;;  %v717_v1 = vrot.slane %v660_v58, 2 }
 0x10d   : > { %v2751_v0 = vsel %vm260_vm2, %v2749_v50, %v2750_v53  ;;  %v718_v16 = vrot.slane %v661_v2, 2  ;;  %v2753_v3 = vsel %vm260_vm2, %v2750_v53, %v2752_v59  ;;  %v849_v19 = vmul.f32 %v4655_v44, %v821_v62  ;;  %v1162_v40 = vld [vmem:[#allocation2 + $0x94] sm:$0x8] }
 0x10e   : > { %v570_v4 = vsel %vm555_vm6, %v568_v57, %v569_v5  ;;  %v618_v8 = vadd.f32 %v569_v5, %v509_v39  ;;  %v720_v10 = vrot.slane %v662_v61, 2  ;;  %v3952_v21 = vpack.c.bf16 %v2753_v3, %v2751_v0  ;;  %v1362_v59 = vld [vmem:[#allocation2 + $0xa0] sm:$0x1] }
 0x10f   : > { %v617_v13 = vadd.f32 %v570_v4, %v508_v38  ;;  %v719_v26 = vsel %vm696_vm7, %v717_v1, %v718_v16  ;;  %v773_v9 = vadd.f32 %v717_v1, %v616_v12  ;;  %v850_v20 = vmul.f32 %v5027_v24, %v4655_v44  ;;  %v294_v12 = vld [vmem:[#allocation2 + $0xac] sm:$0x8] }
 0x110   : > { %v721_v15 = vsel %vm696_vm7, %v718_v16, %v720_v10  ;;  %v851_v22 = vmul.f32 %v5031_v33, %v4655_v44  ;;  %4112 = vst [vmem:[#allocation3 + $0x58] sm:$0xff] %v3952_v21   ;;  %v897_v29 = vmul.f32 %v5027_v24, %v4658_v45  ;;  %v898_v30 = vmul.f32 %v5031_v33, %v4658_v45 }
 0x111   : > { %v774_v25 = vadd.f32 %v719_v26, %v617_v13  ;;  %v775_v27 = vadd.f32 %v721_v15, %v618_v8  ;;  %v873_v32 = vadd.f32 %v849_v19, %v773_v9  ;;  %v1005_v11 = vunpack.c.l.bf16 %v997_v14  ;;  %v342_v9 = vld [vmem:[#allocation2 + $0xb8] sm:$0x1] }
 0x112   : > { %v1025_v17 = vmul.f32 %v5027_v24, %v4661_v46  ;;  %v1026_v35 = vmul.f32 %v5031_v33, %v4661_v46  ;;  %v933_v38 = vrot.slane %v897_v29, 1  ;;  %v934_v39 = vrot.slane %v898_v30, 1 }
 0x113   : > { %v874_v28 = vadd.f32 %v850_v20, %v774_v25  ;;  %v875_v18 = vadd.f32 %v851_v22, %v775_v27  ;;  %v1027_v60 = vmul.f32 %v4661_v46, %v1005_v11  ;;  %v5212_v52 = vunpack.c.l.bf16 %v4074_v31  ;;  %v458_v22 = vld [vmem:[#allocation2 + $0x7c] sm:$0x8] }
 0x114   : > { %v1081_v49 = vrot.slane %v1025_v17, 2  ;;  %v1082_v51 = vrot.slane %v1026_v35, 2  ;;  %v935_v55 = vsel %vm555_vm6, %v933_v38, %v934_v39  ;;  %v981_v50 = vadd.f32 %v933_v38, %v873_v32 }
 0x115   : > { %v983_v54 = vadd.f32 %v934_v39, %v875_v18  ;;  %v5215_v56 = vunpack.c.h.bf16 %v4074_v31  ;;  %v982_v53 = vadd.f32 %v935_v55, %v874_v28  ;;  %v1084_v58 = vrot.slane %v1027_v60, 2  ;;  %v633_v39 = vld [vmem:[#allocation2 + $0x88] sm:$0x1] }
 0x116   : > { %v1083_v57 = vsel %vm696_vm7, %v1081_v49, %v1082_v51  ;;  %v1186_v2 = vunpack.c.l.bf16 %v1162_v40  ;;  %v1137_v5 = vadd.f32 %v1081_v49, %v981_v50  ;;  %v1215_v61 = vmul.f32 %v5212_v52, %v4664_v47 }
 0x117   : > { %v1216_v62 = vmul.f32 %v5215_v56, %v4664_v47  ;;  %v1262_v0 = vmul.f32 %v5212_v52, %v4683_v63  ;;  %v4298_v1 = vld [vmem:[#allocation3 + $0x58] sm:$0xff]   ;;  %v1085_v16 = vsel %vm696_vm7, %v1082_v51, %v1084_v58  ;;  %v1138_v3 = vadd.f32 %v1083_v57, %v982_v53  ;;  %v800_v57 = vld [vmem:[#allocation2 + $0x94] sm:$0x8] }
 0x118   : > { %v1214_v4 = vmul.f32 %v4664_v47, %v1186_v2  ;;  %v1263_v8 = vmul.f32 %v5215_v56, %v4683_v63  ;;  %v1139_v10 = vadd.f32 %v1085_v16, %v983_v54  ;;  %v1370_v13 = vunpack.c.l.bf16 %v1362_v59  ;;  %4193 = vmatmul.mubr.bf16.gmra.mxu1 %v4298_v1 }
 0x119   : > { %v1298_v21 = vrot.slane %v1262_v0, 1  ;;  %v1390_v26 = vmul.f32 %v5212_v52, %v4732_v23  ;;  %v1239_v15 = vadd.f32 %v1215_v61, %v1138_v3  ;;  %v1391_v20 = vmul.f32 %v5215_v56, %v4732_v23 }
 0x11a   : > { %v1238_v14 = vadd.f32 %v1214_v4, %v1137_v5  ;;  %v1299_v19 = vrot.slane %v1263_v8, 1  ;;  %v1240_v25 = vadd.f32 %v1216_v62, %v1139_v10  ;;  %v1392_v27 = vmul.f32 %v4732_v23, %v1370_v13 }
 0x11b   : > { %v1446_v29 = vrot.slane %v1390_v26, 2  ;;  %v295_v30 = vsel %vm4605_vm4, 0, %v294_v12  ;;  %v1447_v11 = vrot.slane %v1391_v20, 2  ;;  %v343_v17 = vsel %vm4610_vm5, 0, %v342_v9 }
 0x11c   : > { %v1300_v31 = vsel %vm555_vm6, %v1298_v21, %v1299_v19  ;;  %v1346_v32 = vadd.f32 %v1298_v21, %v1238_v14  ;;  %296 = vst [vmem:[#allocation2 + $0xac] sm:$0x8] %v295_v30  ;;  %v1348_v28 = vadd.f32 %v1299_v19, %v1240_v25  ;;  %v1449_v18 = vrot.slane %v1392_v27, 2  ;;  %344 = vst [vmem:[#allocation2 + $0xb8] sm:$0x1] %v343_v17 }
 0x11d   : > { %v1347_v35 = vadd.f32 %v1300_v31, %v1239_v15  ;;  %v482_v38 = vunpack.c.l.bf16 %v458_v22  ;;  %v1448_v40 = vsel %vm696_vm7, %v1446_v29, %v1447_v11  ;;  %v511_v49 = vmul.f32 %v5027_v24, %v4647_v41  ;;  %v998_v22 = vld [vmem:[#allocation2 + $0xa0] sm:$0x1] }
 0x11e   : > { %v1502_v60 = vadd.f32 %v1446_v29, %v1346_v32  ;;  %v512_v51 = vmul.f32 %v5031_v33, %v4647_v41  ;;  %v1450_v55 = vsel %vm696_vm7, %v1447_v11, %v1449_v18  ;;  %v533_v53 = vmul.f32 %v5027_v24, %v4650_v42 }
 0x11f   : > { %v1503_v50 = vadd.f32 %v1448_v40, %v1347_v35  ;;  %v510_v54 = vmul.f32 %v4647_v41, %v482_v38  ;;  %v1504_v58 = vadd.f32 %v1450_v55, %v1348_v28  ;;  %v534_v59 = vmul.f32 %v5031_v33, %v4650_v42  ;;  %v4075_v35 = vld [vmem:[#allocation2 + $0xb0] sm:$0xff]  }
 0x120   : > { %v1559_v2 = vrot.slane %v1502_v60, 7  ;;  %v641_v5 = vunpack.c.l.bf16 %v633_v39  ;;  %v571_v62 = vrot.slane %v533_v53, 1  ;;  %v663_v0 = vmul.f32 %v5027_v24, %v4653_v43 }
 0x121   : > { %v1560_v61 = vrot.slane %v1503_v50, 7  ;;  %v664_v12 = vmul.f32 %v5031_v33, %v4653_v43  ;;  %v1562_v1 = vrot.slane %v1504_v58, 7  ;;  %v572_v16 = vrot.slane %v534_v59, 1 }
 0x122   : > { %v665_v3 = vmul.f32 %v4653_v43, %v641_v5  ;;  %v824_v4 = vunpack.c.l.bf16 %v800_v57  ;;  %v619_v10 = vadd.f32 %v571_v62, %v510_v54  ;;  %v722_v21 = vrot.slane %v663_v0, 2 }
 0x123   : > { %v1561_v8 = vsel %vm260_vm2, %v1559_v2, %v1560_v61  ;;  %v723_v13 = vrot.slane %v664_v12, 2  ;;  %v1563_v26 = vsel %vm260_vm2, %v1560_v61, %v1562_v1  ;;  %v573_v9 = vsel %vm555_vm6, %v571_v62, %v572_v16  ;;  %v1165_v55 = vld [vmem:[#allocation2 + $0xac] sm:$0x8]  ;;  %v1363_v1 = vld [vmem:[#allocation2 + $0xb8] sm:$0x1] }
 0x124   : > { %v621_v14 = vadd.f32 %v572_v16, %v512_v51  ;;  %v725_v15 = vrot.slane %v665_v3, 2  ;;  %v3821_v24 = vpack.c.bf16 %v1563_v26, %v1561_v8  ;;  %v620_v19 = vadd.f32 %v573_v9, %v511_v49 }
 0x125   : > { %v724_v33 = vsel %vm696_vm7, %v722_v21, %v723_v13  ;;  %v776_v20 = vadd.f32 %v722_v21, %v619_v10  ;;  %v852_v27 = vmul.f32 %v4655_v44, %v824_v4  ;;  %v853_v29 = vmul.f32 %v5212_v52, %v4655_v44  ;;  %v315_v10 = vld [vmem:[#allocation2 + $0x154] sm:$0x8] }
 0x126   : > { %v726_v25 = vsel %vm696_vm7, %v723_v13, %v725_v15  ;;  %v854_v30 = vmul.f32 %v5215_v56, %v4655_v44  ;;  %4081 = vst [vmem:[#allocation3 + $0x20] sm:$0xff] %v3821_v24   ;;  %v777_v31 = vadd.f32 %v724_v33, %v620_v19  ;;  %v899_v11 = vmul.f32 %v5212_v52, %v4658_v45 }
 0x127   : > { %v778_v32 = vadd.f32 %v726_v25, %v621_v14  ;;  %v900_v17 = vmul.f32 %v5215_v56, %v4658_v45  ;;  %v876_v28 = vadd.f32 %v852_v27, %v776_v20  ;;  %v1006_v18 = vunpack.c.l.bf16 %v998_v22  ;;  %v363_v20 = vld [vmem:[#allocation2 + $0x160] sm:$0x1] }
 0x128   : > { %v1028_v38 = vmul.f32 %v5212_v52, %v4661_v46  ;;  %v1029_v39 = vmul.f32 %v5215_v56, %v4661_v46  ;;  %v877_v40 = vadd.f32 %v853_v29, %v777_v31  ;;  %v936_v49 = vrot.slane %v899_v11, 1 }
 0x129   : > { %v878_v60 = vadd.f32 %v854_v30, %v778_v32  ;;  %v937_v51 = vrot.slane %v900_v17, 1  ;;  %v1030_v50 = vmul.f32 %v4661_v46, %v1006_v18  ;;  %v5273_v57 = vunpack.c.l.bf16 %v4075_v35  ;;  %v1688_v30 = vld [vmem:[#allocation2 + $0x124] sm:$0x8] }
 0x12a   : > { %v1086_v54 = vrot.slane %v1028_v38, 2  ;;  %v1087_v53 = vrot.slane %v1029_v39, 2  ;;  %v984_v2 = vadd.f32 %v936_v49, %v876_v28  ;;  %v5276_v5 = vunpack.c.h.bf16 %v4075_v35 }
 0x12b   : > { %v938_v58 = vsel %vm555_vm6, %v936_v49, %v937_v51  ;;  %v986_v59 = vadd.f32 %v937_v51, %v878_v60  ;;  %v1089_v0 = vrot.slane %v1030_v50, 2  ;;  %v1189_v12 = vunpack.c.l.bf16 %v1165_v55  ;;  %v1856_v51 = vld [vmem:[#allocation2 + $0x130] sm:$0x1] }
 0x12c   : > { %v985_v61 = vadd.f32 %v938_v58, %v877_v40  ;;  %v1088_v62 = vsel %vm696_vm7, %v1086_v54, %v1087_v53  ;;  %v1140_v16 = vadd.f32 %v1086_v54, %v984_v2  ;;  %v1218_v3 = vmul.f32 %v5273_v57, %v4664_v47 }
 0x12d   : > { %v1219_v4 = vmul.f32 %v5276_v5, %v4664_v47  ;;  %v1264_v8 = vmul.f32 %v5273_v57, %v4683_v63  ;;  %v4299_v21 = vld [vmem:[#allocation3 + $0x20] sm:$0xff]   ;;  %v1090_v13 = vsel %vm696_vm7, %v1087_v53, %v1089_v0  ;;  %v1217_v9 = vmul.f32 %v4664_v47, %v1189_v12 }
 0x12e   : > { %v1141_v26 = vadd.f32 %v1088_v62, %v985_v61  ;;  %v1265_v14 = vmul.f32 %v5276_v5, %v4683_v63  ;;  %v1142_v15 = vadd.f32 %v1090_v13, %v986_v59  ;;  %v1371_v19 = vunpack.c.l.bf16 %v1363_v1  ;;  %4180 = vmatprep.mubr.bf16.mxu0 %v4299_v21  ;;  %v2017_v62 = vld [vmem:[#allocation2 + $0x13c] sm:$0x8] }
 0x12f   : > { %v1301_v24 = vrot.slane %v1264_v8, 1  ;;  %v1393_v33 = vmul.f32 %v5273_v57, %v4732_v23  ;;  %v1241_v22 = vadd.f32 %v1217_v9, %v1140_v16  ;;  %v1394_v29 = vmul.f32 %v5276_v5, %v4732_v23 }
 0x130   : > { %v1242_v25 = vadd.f32 %v1218_v3, %v1141_v26  ;;  %v1302_v27 = vrot.slane %v1265_v14, 1  ;;  %v1243_v31 = vadd.f32 %v1219_v4, %v1142_v15  ;;  %v1395_v32 = vmul.f32 %v4732_v23, %v1371_v19 }
 0x131   : > { %v1451_v11 = vrot.slane %v1393_v33, 2  ;;  %v316_v17 = vsel %vm4605_vm4, 0, %v315_v10  ;;  %v1349_v28 = vadd.f32 %v1301_v24, %v1241_v22  ;;  %v1452_v18 = vrot.slane %v1394_v29, 2 }
 0x132   : > { %v1303_v35 = vsel %vm555_vm6, %v1301_v24, %v1302_v27  ;;  %317 = vst [vmem:[#allocation2 + $0x154] sm:$0x8] %v316_v17  ;;  %v364_v38 = vsel %vm4610_vm5, 0, %v363_v20  ;;  %v1351_v40 = vadd.f32 %v1302_v27, %v1243_v31  ;;  %v1454_v60 = vrot.slane %v1395_v32, 2 }
 0x133   : > { %v1350_v39 = vadd.f32 %v1303_v35, %v1242_v25  ;;  %365 = vst [vmem:[#allocation2 + $0x160] sm:$0x1] %v364_v38  ;;  %v1712_v49 = vunpack.c.l.bf16 %v1688_v30  ;;  %v1453_v55 = vsel %vm696_vm7, %v1451_v11, %v1452_v18  ;;  %v1505_v50 = vadd.f32 %v1451_v11, %v1349_v28  ;;  %v2209_v30 = vld [vmem:[#allocation2 + $0x148] sm:$0x1] }
 0x134   : > { %v1737_v54 = vmul.f32 %v5089_v34, %v4647_v41  ;;  %v1738_v53 = vmul.f32 %v5092_v36, %v4647_v41  ;;  %v1455_v58 = vsel %vm696_vm7, %v1452_v18, %v1454_v60  ;;  %v1756_v61 = vmul.f32 %v5089_v34, %v4650_v42 }
 0x135   : > { %v1506_v2 = vadd.f32 %v1453_v55, %v1350_v39  ;;  %v1736_v59 = vmul.f32 %v1712_v49, %v4647_v41  ;;  %v1507_v0 = vadd.f32 %v1455_v58, %v1351_v40  ;;  %v1564_v12 = vrot.slane %v1505_v50, 7  ;;  %v4105_v39 = vld [vmem:[#allocation2 + $0x158] sm:$0xff]  }
 0x136   : > { %v1757_v1 = vmul.f32 %v5092_v36, %v4650_v42  ;;  %v1864_v16 = vunpack.c.l.bf16 %v1856_v51  ;;  %v1792_v4 = vrot.slane %v1756_v61, 1  ;;  %v1880_v8 = vmul.f32 %v5089_v34, %v4653_v43 }
 0x137   : > { %v1565_v3 = vrot.slane %v1506_v2, 7  ;;  %v1881_v10 = vmul.f32 %v5092_v36, %v4653_v43  ;;  %v1567_v21 = vrot.slane %v1507_v0, 7  ;;  %v2041_v9 = vunpack.c.l.bf16 %v2017_v62 }
 0x138   : > { %v1793_v13 = vrot.slane %v1757_v1, 1  ;;  %v1882_v26 = vmul.f32 %v1864_v16, %v4653_v43  ;;  %v1840_v15 = vadd.f32 %v1792_v4, %v1736_v59  ;;  %v1936_v24 = vrot.slane %v1880_v8, 2 }
 0x139   : > { %v1566_v14 = vsel %vm260_vm2, %v1564_v12, %v1565_v3  ;;  %v1937_v19 = vrot.slane %v1881_v10, 2  ;;  %v1568_v33 = vsel %vm260_vm2, %v1565_v3, %v1567_v21  ;;  %v2065_v32 = vmul.f32 %v2041_v9, %v4655_v44  ;;  %v2370_v58 = vld [vmem:[#allocation2 + $0x154] sm:$0x8] }
 0x13a   : > { %v1794_v20 = vsel %vm555_vm6, %v1792_v4, %v1793_v13  ;;  %v1842_v22 = vadd.f32 %v1793_v13, %v1738_v53  ;;  %v1939_v25 = vrot.slane %v1882_v26, 2  ;;  %v3826_v34 = vpack.c.bf16 %v1568_v33, %v1566_v14  ;;  %v2562_v21 = vld [vmem:[#allocation2 + $0x160] sm:$0x1] }
 0x13b   : > { %v1841_v27 = vadd.f32 %v1794_v20, %v1737_v54  ;;  %v1938_v36 = vsel %vm696_vm7, %v1936_v24, %v1937_v19  ;;  %v1992_v29 = vadd.f32 %v1936_v24, %v1840_v15  ;;  %v2066_v11 = vmul.f32 %v5150_v37, %v4655_v44  ;;  %v318_v15 = vld [vmem:[#allocation2 + $0x16c] sm:$0x8] }
 0x13c   : > { %v1940_v31 = vsel %vm696_vm7, %v1937_v19, %v1939_v25  ;;  %v2067_v17 = vmul.f32 %v5153_v48, %v4655_v44  ;;  %4082 = vst [vmem:[#allocation3 + $0x28] sm:$0xff] %v3826_v34   ;;  %v2109_v18 = vmul.f32 %v5150_v37, %v4658_v45  ;;  %v2110_v38 = vmul.f32 %v5153_v48, %v4658_v45 }
 0x13d   : > { %v1993_v35 = vadd.f32 %v1938_v36, %v1841_v27  ;;  %v1994_v28 = vadd.f32 %v1940_v31, %v1842_v22  ;;  %v2089_v40 = vadd.f32 %v2065_v32, %v1992_v29  ;;  %v2217_v60 = vunpack.c.l.bf16 %v2209_v30  ;;  %v366_v29 = vld [vmem:[#allocation2 + $0x178] sm:$0x1] }
 0x13e   : > { %v2233_v49 = vmul.f32 %v5150_v37, %v4661_v46  ;;  %v2234_v51 = vmul.f32 %v5153_v48, %v4661_v46  ;;  %v2145_v54 = vrot.slane %v2109_v18, 1  ;;  %v2146_v53 = vrot.slane %v2110_v38, 1 }
 0x13f   : > { %v2090_v55 = vadd.f32 %v2066_v11, %v1993_v35  ;;  %v2091_v50 = vadd.f32 %v2067_v17, %v1994_v28  ;;  %v2235_v2 = vmul.f32 %v2217_v60, %v4661_v46  ;;  %v5334_v62 = vunpack.c.l.bf16 %v4105_v39  ;;  %v1691_v17 = vld [vmem:[#allocation2 + $0x13c] sm:$0x8] }
 0x140   : > { %v2289_v59 = vrot.slane %v2233_v49, 2  ;;  %v2290_v61 = vrot.slane %v2234_v51, 2  ;;  %v2147_v0 = vsel %vm555_vm6, %v2145_v54, %v2146_v53  ;;  %v2193_v12 = vadd.f32 %v2145_v54, %v2089_v40 }
 0x141   : > { %v2195_v1 = vadd.f32 %v2146_v53, %v2091_v50  ;;  %v5337_v16 = vunpack.c.h.bf16 %v4105_v39  ;;  %v2194_v3 = vadd.f32 %v2147_v0, %v2090_v55  ;;  %v2292_v8 = vrot.slane %v2235_v2, 2  ;;  %v1857_v53 = vld [vmem:[#allocation2 + $0x148] sm:$0x1] }
 0x142   : > { %v2291_v4 = vsel %vm696_vm7, %v2289_v59, %v2290_v61  ;;  %v2394_v10 = vunpack.c.l.bf16 %v2370_v58  ;;  %v2345_v13 = vadd.f32 %v2289_v59, %v2193_v12  ;;  %v2419_v26 = vmul.f32 %v5334_v62, %v4664_v47 }
 0x143   : > { %v2420_v9 = vmul.f32 %v5337_v16, %v4664_v47  ;;  %v2462_v14 = vmul.f32 %v5334_v62, %v4683_v63  ;;  %v4300_v24 = vld [vmem:[#allocation3 + $0x28] sm:$0xff]   ;;  %v2293_v19 = vsel %vm696_vm7, %v2290_v61, %v2292_v8  ;;  %v2346_v33 = vadd.f32 %v2291_v4, %v2194_v3  ;;  %v2020_v4 = vld [vmem:[#allocation2 + $0x154] sm:$0x8] }
 0x144   : > { %v2418_v20 = vmul.f32 %v2394_v10, %v4664_v47  ;;  %v2463_v22 = vmul.f32 %v5337_v16, %v4683_v63  ;;  %v2347_v25 = vadd.f32 %v2293_v19, %v2195_v1  ;;  %v2570_v27 = vunpack.c.l.bf16 %v2562_v21  ;;  %4181 = vmatmul.mubr.bf16.gmra.mxu0 %v4300_v24 }
 0x145   : > { %v2498_v34 = vrot.slane %v2462_v14, 1  ;;  %v2586_v36 = vmul.f32 %v5334_v62, %v4732_v23  ;;  %v2443_v31 = vadd.f32 %v2419_v26, %v2346_v33  ;;  %v2587_v11 = vmul.f32 %v5337_v16, %v4732_v23 }
 0x146   : > { %v2442_v30 = vadd.f32 %v2418_v20, %v2345_v13  ;;  %v2499_v32 = vrot.slane %v2463_v22, 1  ;;  %v2444_v35 = vadd.f32 %v2420_v9, %v2347_v25  ;;  %v2588_v28 = vmul.f32 %v2570_v27, %v4732_v23 }
 0x147   : > { %v2642_v18 = vrot.slane %v2586_v36, 2  ;;  %v319_v38 = vsel %vm4605_vm4, 0, %v318_v15  ;;  %v2643_v60 = vrot.slane %v2587_v11, 2  ;;  %v367_v49 = vsel %vm4610_vm5, 0, %v366_v29 }
 0x148   : > { %v2500_v39 = vsel %vm555_vm6, %v2498_v34, %v2499_v32  ;;  %v2546_v40 = vadd.f32 %v2498_v34, %v2442_v30  ;;  %320 = vst [vmem:[#allocation2 + $0x16c] sm:$0x8] %v319_v38  ;;  %v2548_v55 = vadd.f32 %v2499_v32, %v2444_v35  ;;  %v2645_v50 = vrot.slane %v2588_v28, 2  ;;  %368 = vst [vmem:[#allocation2 + $0x178] sm:$0x1] %v367_v49 }
 0x149   : > { %v2547_v51 = vadd.f32 %v2500_v39, %v2443_v31  ;;  %v1715_v54 = vunpack.c.l.bf16 %v1691_v17  ;;  %v2644_v58 = vsel %vm696_vm7, %v2642_v18, %v2643_v60  ;;  %v1740_v59 = vmul.f32 %v5150_v37, %v4647_v41  ;;  %v2210_v17 = vld [vmem:[#allocation2 + $0x160] sm:$0x1] }
 0x14a   : > { %v2698_v2 = vadd.f32 %v2642_v18, %v2546_v40  ;;  %v1741_v61 = vmul.f32 %v5153_v48, %v4647_v41  ;;  %v2646_v0 = vsel %vm696_vm7, %v2643_v60, %v2645_v50  ;;  %v1758_v3 = vmul.f32 %v5150_v37, %v4650_v42 }
 0x14b   : > { %v2699_v12 = vadd.f32 %v2644_v58, %v2547_v51  ;;  %v1739_v1 = vmul.f32 %v1715_v54, %v4647_v41  ;;  %v2700_v8 = vadd.f32 %v2646_v0, %v2548_v55  ;;  %v1759_v21 = vmul.f32 %v5153_v48, %v4650_v42  ;;  %v4106_v51 = vld [vmem:[#allocation2 + $0x170] sm:$0xff]  }
 0x14c   : > { %v2754_v10 = vrot.slane %v2698_v2, 7  ;;  %v1865_v13 = vunpack.c.l.bf16 %v1857_v53  ;;  %v1795_v9 = vrot.slane %v1758_v3, 1  ;;  %v1883_v14 = vmul.f32 %v5150_v37, %v4653_v43 }
 0x14d   : > { %v2755_v26 = vrot.slane %v2699_v12, 7  ;;  %v1884_v15 = vmul.f32 %v5153_v48, %v4653_v43  ;;  %v2757_v24 = vrot.slane %v2700_v8, 7  ;;  %v1796_v19 = vrot.slane %v1759_v21, 1 }
 0x14e   : > { %v1885_v33 = vmul.f32 %v1865_v13, %v4653_v43  ;;  %v2044_v20 = vunpack.c.l.bf16 %v2020_v4  ;;  %v1843_v25 = vadd.f32 %v1795_v9, %v1739_v1  ;;  %v1941_v34 = vrot.slane %v1883_v14, 2 }
 0x14f   : > { %v2756_v22 = vsel %vm260_vm2, %v2754_v10, %v2755_v26  ;;  %v1942_v27 = vrot.slane %v1884_v15, 2  ;;  %v2758_v36 = vsel %vm260_vm2, %v2755_v26, %v2757_v24  ;;  %v1797_v29 = vsel %vm555_vm6, %v1795_v9, %v1796_v19  ;;  %v2373_v0 = vld [vmem:[#allocation2 + $0x16c] sm:$0x8]  ;;  %v2563_v24 = vld [vmem:[#allocation2 + $0x178] sm:$0x1] }
 0x150   : > { %v1845_v30 = vadd.f32 %v1796_v19, %v1741_v61  ;;  %v1944_v31 = vrot.slane %v1885_v33, 2  ;;  %v3957_v37 = vpack.c.bf16 %v2758_v36, %v2756_v22  ;;  %v1844_v32 = vadd.f32 %v1797_v29, %v1740_v59 }
 0x151   : > { %v1943_v48 = vsel %vm696_vm7, %v1941_v34, %v1942_v27  ;;  %v1995_v11 = vadd.f32 %v1941_v34, %v1843_v25  ;;  %v2068_v28 = vmul.f32 %v2044_v20, %v4655_v44  ;;  %v2069_v18 = vmul.f32 %v5334_v62, %v4655_v44  ;;  %v461_v25 = vld [vmem:[#allocation2 + $0x94] sm:$0x8] }
 0x152   : > { %v1945_v35 = vsel %vm696_vm7, %v1942_v27, %v1944_v31  ;;  %v2070_v38 = vmul.f32 %v5337_v16, %v4655_v44  ;;  %4113 = vst [vmem:[#allocation3 + $0x60] sm:$0xff] %v3957_v37   ;;  %v1996_v39 = vadd.f32 %v1943_v48, %v1844_v32  ;;  %v2111_v60 = vmul.f32 %v5334_v62, %v4658_v45 }
 0x153   : > { %v1997_v40 = vadd.f32 %v1945_v35, %v1845_v30  ;;  %v2112_v49 = vmul.f32 %v5337_v16, %v4658_v45  ;;  %v2092_v55 = vadd.f32 %v2068_v28, %v1995_v11  ;;  %v2218_v50 = vunpack.c.l.bf16 %v2210_v17 }
 0x154   : > { %v2236_v54 = vmul.f32 %v5334_v62, %v4661_v46  ;;  %v2237_v53 = vmul.f32 %v5337_v16, %v4661_v46  ;;  %v2093_v58 = vadd.f32 %v2069_v18, %v1996_v39  ;;  %v2148_v59 = vrot.slane %v2111_v60, 1 }
 0x155   : > { %v2094_v2 = vadd.f32 %v2070_v38, %v1997_v40  ;;  %v2149_v61 = vrot.slane %v2112_v49, 1  ;;  %v2238_v12 = vmul.f32 %v2218_v50, %v4661_v46  ;;  %v5395_v4 = vunpack.c.l.bf16 %v4106_v51  ;;  %v634_v50 = vld [vmem:[#allocation2 + $0xa0] sm:$0x1] }
 0x156   : > { %v2294_v1 = vrot.slane %v2236_v54, 2  ;;  %v2295_v3 = vrot.slane %v2237_v53, 2  ;;  %v2196_v10 = vadd.f32 %v2148_v59, %v2092_v55  ;;  %v5398_v13 = vunpack.c.h.bf16 %v4106_v51 }
 0x157   : > { %v2150_v8 = vsel %vm555_vm6, %v2148_v59, %v2149_v61  ;;  %v2198_v21 = vadd.f32 %v2149_v61, %v2094_v2  ;;  %v2297_v14 = vrot.slane %v2238_v12, 2  ;;  %v2397_v15 = vunpack.c.l.bf16 %v2373_v0 }
 0x158   : > { %v2197_v26 = vadd.f32 %v2150_v8, %v2093_v58  ;;  %v2296_v9 = vsel %vm696_vm7, %v2294_v1, %v2295_v3  ;;  %v2348_v19 = vadd.f32 %v2294_v1, %v2196_v10  ;;  %v2422_v33 = vmul.f32 %v5395_v4, %v4664_v47 }
 0x159   : > { %v2423_v20 = vmul.f32 %v5398_v13, %v4664_v47  ;;  %v2464_v22 = vmul.f32 %v5395_v4, %v4683_v63  ;;  %v4301_v34 = vld [vmem:[#allocation3 + $0x60] sm:$0xff]   ;;  %v2298_v27 = vsel %vm696_vm7, %v2295_v3, %v2297_v14  ;;  %v2421_v29 = vmul.f32 %v2397_v15, %v4664_v47 }
 0x15a   : > { %v2349_v36 = vadd.f32 %v2296_v9, %v2197_v26  ;;  %v2465_v30 = vmul.f32 %v5398_v13, %v4683_v63  ;;  %v2350_v31 = vadd.f32 %v2298_v27, %v2198_v21  ;;  %v2571_v32 = vunpack.c.l.bf16 %v2563_v24  ;;  %4196 = vmatprep.mubr.bf16.mxu1 %v4301_v34  ;;  %v803_v21 = vld [vmem:[#allocation2 + $0xac] sm:$0x8] }
 0x15b   : > { %v2501_v37 = vrot.slane %v2464_v22, 1  ;;  %v2589_v48 = vmul.f32 %v5395_v4, %v4732_v23  ;;  %v2445_v11 = vadd.f32 %v2421_v29, %v2348_v19  ;;  %v2590_v28 = vmul.f32 %v5398_v13, %v4732_v23 }
 0x15c   : > { %v2446_v17 = vadd.f32 %v2422_v33, %v2349_v36  ;;  %v2502_v35 = vrot.slane %v2465_v30, 1  ;;  %v2447_v18 = vadd.f32 %v2423_v20, %v2350_v31  ;;  %v2591_v38 = vmul.f32 %v2571_v32, %v4732_v23 }
 0x15d   : > { %v2647_v39 = vrot.slane %v2589_v48, 2  ;;  %v485_v40 = vunpack.c.l.bf16 %v461_v25  ;;  %v2549_v49 = vadd.f32 %v2501_v37, %v2445_v11  ;;  %v2648_v51 = vrot.slane %v2590_v28, 2  ;;  %v999_v11 = vld [vmem:[#allocation2 + $0xb8] sm:$0x1] }
 0x15e   : > { %v2503_v60 = vsel %vm555_vm6, %v2501_v37, %v2502_v35  ;;  %v514_v55 = vmul.f32 %v5212_v52, %v4647_v41  ;;  %v2551_v53 = vadd.f32 %v2502_v35, %v2447_v18  ;;  %v2650_v58 = vrot.slane %v2591_v38, 2 }
 0x15f   : > { %v2550_v54 = vadd.f32 %v2503_v60, %v2446_v17  ;;  %v513_v2 = vmul.f32 %v4647_v41, %v485_v40  ;;  %v2649_v59 = vsel %vm696_vm7, %v2647_v39, %v2648_v51  ;;  %v2701_v61 = vadd.f32 %v2647_v39, %v2549_v49  ;;  %v4076_v60 = vld [vmem:[#allocation2 + $0xc8] sm:$0xff]  }
 0x160   : > { %v515_v0 = vmul.f32 %v5215_v56, %v4647_v41  ;;  %v535_v12 = vmul.f32 %v5212_v52, %v4650_v42  ;;  %v2651_v1 = vsel %vm696_vm7, %v2648_v51, %v2650_v58  ;;  %v536_v8 = vmul.f32 %v5215_v56, %v4650_v42 }
 0x161   : > { %v2702_v3 = vadd.f32 %v2649_v59, %v2550_v54  ;;  %v642_v10 = vunpack.c.l.bf16 %v634_v50  ;;  %v2703_v26 = vadd.f32 %v2651_v1, %v2551_v53  ;;  %v2759_v9 = vrot.slane %v2701_v61, 7  ;;  %v1168_v59 = vld [vmem:[#allocation2 + $0xc4] sm:$0x8] }
 0x162   : > { %v574_v14 = vrot.slane %v535_v12, 1  ;;  %v666_v15 = vmul.f32 %v5212_v52, %v4653_v43  ;;  %v575_v19 = vrot.slane %v536_v8, 1  ;;  %v667_v33 = vmul.f32 %v5215_v56, %v4653_v43 }
 0x163   : > { %v2760_v24 = vrot.slane %v2702_v3, 7  ;;  %v668_v20 = vmul.f32 %v4653_v43, %v642_v10  ;;  %v2762_v22 = vrot.slane %v2703_v26, 7  ;;  %v827_v27 = vunpack.c.l.bf16 %v803_v21 }
 0x164   : > { %v622_v25 = vadd.f32 %v574_v14, %v513_v2  ;;  %v727_v34 = vrot.slane %v666_v15, 2  ;;  %v576_v29 = vsel %vm555_vm6, %v574_v14, %v575_v19  ;;  %v624_v30 = vadd.f32 %v575_v19, %v515_v0 }
 0x165   : > { %v2761_v36 = vsel %vm260_vm2, %v2759_v9, %v2760_v24  ;;  %v728_v31 = vrot.slane %v667_v33, 2  ;;  %v2763_v37 = vsel %vm260_vm2, %v2760_v24, %v2762_v22  ;;  %v623_v52 = vadd.f32 %v576_v29, %v514_v55  ;;  %v1364_v24 = vld [vmem:[#allocation2 + $0xd0] sm:$0x1]  ;;  %v464_v29 = vld [vmem:[#allocation2 + $0xac] sm:$0x8] }
 0x166   : > { %v730_v32 = vrot.slane %v668_v20, 2  ;;  %v779_v48 = vadd.f32 %v727_v34, %v622_v25  ;;  %v3962_v17 = vpack.c.bf16 %v2763_v37, %v2761_v36  ;;  %v855_v35 = vmul.f32 %v4655_v44, %v827_v27 }
 0x167   : > { %v729_v56 = vsel %vm696_vm7, %v727_v34, %v728_v31  ;;  %v856_v28 = vmul.f32 %v5273_v57, %v4655_v44  ;;  %v857_v39 = vmul.f32 %v5276_v5, %v4655_v44  ;;  %v901_v40 = vmul.f32 %v5273_v57, %v4658_v45 }
 0x168   : > { %v731_v18 = vsel %vm696_vm7, %v728_v31, %v730_v32  ;;  %v780_v38 = vadd.f32 %v729_v56, %v623_v52  ;;  %4114 = vst [vmem:[#allocation3 + $0x68] sm:$0xff] %v3962_v17   ;;  %v879_v51 = vadd.f32 %v855_v35, %v779_v48  ;;  %v902_v55 = vmul.f32 %v5276_v5, %v4658_v45 }
 0x169   : > { %v781_v49 = vadd.f32 %v731_v18, %v624_v30  ;;  %v1007_v50 = vunpack.c.l.bf16 %v999_v11  ;;  %v939_v53 = vrot.slane %v901_v40, 1  ;;  %v1031_v58 = vmul.f32 %v5273_v57, %v4661_v46 }
 0x16a   : > { %v880_v54 = vadd.f32 %v856_v28, %v780_v38  ;;  %v1032_v2 = vmul.f32 %v5276_v5, %v4661_v46  ;;  %v940_v0 = vrot.slane %v902_v55, 1  ;;  %v5452_v1 = vunpack.c.l.bf16 %v4076_v60 }
 0x16b   : > { %v881_v61 = vadd.f32 %v857_v39, %v781_v49  ;;  %v1033_v12 = vmul.f32 %v4661_v46, %v1007_v50  ;;  %v987_v3 = vadd.f32 %v939_v53, %v879_v51  ;;  %v1091_v8 = vrot.slane %v1031_v58, 2 }
 0x16c   : > { %v1092_v10 = vrot.slane %v1032_v2, 2  ;;  %v5454_v21 = vunpack.c.h.bf16 %v4076_v60  ;;  %v941_v26 = vsel %vm555_vm6, %v939_v53, %v940_v0  ;;  %v1192_v15 = vunpack.c.l.bf16 %v1168_v59  ;;  %v635_v53 = vld [vmem:[#allocation2 + $0xb8] sm:$0x1] }
 0x16d   : > { %v989_v9 = vadd.f32 %v940_v0, %v881_v61  ;;  %v1094_v14 = vrot.slane %v1033_v12, 2  ;;  %v988_v19 = vadd.f32 %v941_v26, %v880_v54  ;;  %v1143_v20 = vadd.f32 %v1091_v8, %v987_v3 }
 0x16e   : > { %v1093_v33 = vsel %vm696_vm7, %v1091_v8, %v1092_v10  ;;  %v1221_v22 = vmul.f32 %v5452_v1, %v4664_v47  ;;  %v1220_v34 = vmul.f32 %v4664_v47, %v1192_v15  ;;  %v1222_v27 = vmul.f32 %v5454_v21, %v4664_v47 }
 0x16f   : > { %v1095_v25 = vsel %vm696_vm7, %v1092_v10, %v1094_v14  ;;  %v1266_v36 = vmul.f32 %v5452_v1, %v4683_v63  ;;  %v4302_v30 = vld [vmem:[#allocation3 + $0x68] sm:$0xff]   ;;  %v1144_v31 = vadd.f32 %v1093_v33, %v988_v19  ;;  %v1267_v52 = vmul.f32 %v5454_v21, %v4683_v63  ;;  %v806_v10 = vld [vmem:[#allocation2 + $0xc4] sm:$0x8] }
 0x170   : > { %v1145_v37 = vadd.f32 %v1095_v25, %v989_v9  ;;  %v1372_v32 = vunpack.c.l.bf16 %v1364_v24  ;;  %v1244_v48 = vadd.f32 %v1220_v34, %v1143_v20  ;;  %v1396_v17 = vmul.f32 %v5452_v1, %v4732_v23  ;;  %4197 = vmatmul.mubr.bf16.gmra.mxu1 %v4302_v30 }
 0x171   : > { %v1304_v11 = vrot.slane %v1266_v36, 1  ;;  %v1397_v56 = vmul.f32 %v5454_v21, %v4732_v23  ;;  %v1245_v35 = vadd.f32 %v1221_v22, %v1144_v31  ;;  %v1305_v18 = vrot.slane %v1267_v52, 1 }
 0x172   : > { %v1246_v28 = vadd.f32 %v1222_v27, %v1145_v37  ;;  %v1398_v38 = vmul.f32 %v4732_v23, %v1372_v32  ;;  %v1456_v40 = vrot.slane %v1396_v17, 2  ;;  %v488_v49 = vunpack.c.l.bf16 %v464_v29 }
 0x173   : > { %v1352_v39 = vadd.f32 %v1304_v11, %v1244_v48  ;;  %v1457_v60 = vrot.slane %v1397_v56, 2  ;;  %v1306_v51 = vsel %vm555_vm6, %v1304_v11, %v1305_v18  ;;  %v517_v54 = vmul.f32 %v5273_v57, %v4647_v41  ;;  %v1000_v56 = vld [vmem:[#allocation2 + $0xd0] sm:$0x1] }
 0x174   : > { %v1354_v55 = vadd.f32 %v1305_v18, %v1246_v28  ;;  %v1459_v50 = vrot.slane %v1398_v38, 2  ;;  %v1353_v58 = vadd.f32 %v1306_v51, %v1245_v35  ;;  %v516_v61 = vmul.f32 %v4647_v41, %v488_v49 }
 0x175   : > { %v1458_v2 = vsel %vm696_vm7, %v1456_v40, %v1457_v60  ;;  %v1508_v59 = vadd.f32 %v1456_v40, %v1352_v39  ;;  %v518_v12 = vmul.f32 %v5276_v5, %v4647_v41  ;;  %v537_v3 = vmul.f32 %v5273_v57, %v4650_v42  ;;  %v4077_v39 = vld [vmem:[#allocation2 + $0xe0] sm:$0xff]  }
 0x176   : > { %v1460_v0 = vsel %vm696_vm7, %v1457_v60, %v1459_v50  ;;  %v538_v8 = vmul.f32 %v5276_v5, %v4650_v42  ;;  %v1509_v26 = vadd.f32 %v1458_v2, %v1353_v58  ;;  %v643_v15 = vunpack.c.l.bf16 %v635_v53  ;;  %v1171_v58 = vld [vmem:[#allocation2 + $0xdc] sm:$0x8] }
 0x177   : > { %v1510_v9 = vadd.f32 %v1460_v0, %v1354_v55  ;;  %v1569_v14 = vrot.slane %v1508_v59, 7  ;;  %v577_v24 = vrot.slane %v537_v3, 1  ;;  %v669_v33 = vmul.f32 %v5273_v57, %v4653_v43 }
 0x178   : > { %v578_v19 = vrot.slane %v538_v8, 1  ;;  %v670_v20 = vmul.f32 %v5276_v5, %v4653_v43  ;;  %v1570_v22 = vrot.slane %v1509_v26, 7  ;;  %v671_v34 = vmul.f32 %v4653_v43, %v643_v15 }
 0x179   : > { %v1572_v25 = vrot.slane %v1510_v9, 7  ;;  %v830_v27 = vunpack.c.l.bf16 %v806_v10  ;;  %v625_v29 = vadd.f32 %v577_v24, %v516_v61  ;;  %v732_v31 = vrot.slane %v669_v33, 2 }
 0x17a   : > { %v579_v36 = vsel %vm555_vm6, %v577_v24, %v578_v19  ;;  %v627_v30 = vadd.f32 %v578_v19, %v518_v12  ;;  %v1571_v37 = vsel %vm260_vm2, %v1569_v14, %v1570_v22  ;;  %v733_v48 = vrot.slane %v670_v20, 2  ;;  %v1365_v20 = vld [vmem:[#allocation2 + $0xe8] sm:$0x1] }
 0x17b   : > { %v1573_v52 = vsel %vm260_vm2, %v1570_v22, %v1572_v25  ;;  %v626_v32 = vadd.f32 %v579_v36, %v517_v54  ;;  %v735_v11 = vrot.slane %v671_v34, 2  ;;  %v782_v17 = vadd.f32 %v732_v31, %v625_v29 }
 0x17c   : > { %v3831_v57 = vpack.c.bf16 %v1573_v52, %v1571_v37  ;;  %v858_v5 = vmul.f32 %v4655_v44, %v830_v27  ;;  %v734_v35 = vsel %vm696_vm7, %v732_v31, %v733_v48  ;;  %v859_v28 = vmul.f32 %v5452_v1, %v4655_v44  ;;  %v321_v27 = vld [vmem:[#allocation2 + $0x184] sm:$0x8] }
 0x17d   : > { %v860_v18 = vmul.f32 %v5454_v21, %v4655_v44  ;;  %v903_v38 = vmul.f32 %v5452_v1, %v4658_v45  ;;  %v736_v40 = vsel %vm696_vm7, %v733_v48, %v735_v11  ;;  %v783_v60 = vadd.f32 %v734_v35, %v626_v32  ;;  %v369_v11 = vld [vmem:[#allocation2 + $0x190] sm:$0x1] }
 0x17e   : > { %4083 = vst [vmem:[#allocation3 + $0x30] sm:$0xff] %v3831_v57   ;;  %v882_v49 = vadd.f32 %v858_v5, %v782_v17  ;;  %v904_v51 = vmul.f32 %v5454_v21, %v4658_v45  ;;  %v784_v55 = vadd.f32 %v736_v40, %v627_v30  ;;  %v1008_v54 = vunpack.c.l.bf16 %v1000_v56 }
 0x17f   : > { %v942_v50 = vrot.slane %v903_v38, 1  ;;  %v1034_v53 = vmul.f32 %v5452_v1, %v4661_v46  ;;  %v883_v2 = vadd.f32 %v859_v28, %v783_v60  ;;  %v1035_v61 = vmul.f32 %v5454_v21, %v4661_v46  ;;  %v1694_v28 = vld [vmem:[#allocation2 + $0x154] sm:$0x8] }
 0x180   : > { %v943_v59 = vrot.slane %v904_v51, 1  ;;  %v3796_v0 = vunpack.c.l.bf16 %v4077_v39  ;;  %v884_v12 = vadd.f32 %v860_v18, %v784_v55  ;;  %v1036_v8 = vmul.f32 %v4661_v46, %v1008_v54 }
 0x181   : > { %v990_v3 = vadd.f32 %v942_v50, %v882_v49  ;;  %v1096_v10 = vrot.slane %v1034_v53, 2  ;;  %v1097_v9 = vrot.slane %v1035_v61, 2  ;;  %v3797_v14 = vunpack.c.h.bf16 %v4077_v39 }
 0x182   : > { %v944_v26 = vsel %vm555_vm6, %v942_v50, %v943_v59  ;;  %v1195_v15 = vunpack.c.l.bf16 %v1171_v58  ;;  %v992_v19 = vadd.f32 %v943_v59, %v884_v12  ;;  %v1099_v1 = vrot.slane %v1036_v8, 2 }
 0x183   : > { %v991_v24 = vadd.f32 %v944_v26, %v883_v2  ;;  %v1146_v33 = vadd.f32 %v1096_v10, %v990_v3  ;;  %v1098_v22 = vsel %vm696_vm7, %v1096_v10, %v1097_v9  ;;  %v1224_v25 = vmul.f32 %v3796_v0, %v4664_v47  ;;  %v1858_v2 = vld [vmem:[#allocation2 + $0x160] sm:$0x1] }
 0x184   : > { %v1223_v21 = vmul.f32 %v4664_v47, %v1195_v15  ;;  %v1225_v34 = vmul.f32 %v3797_v14, %v4664_v47  ;;  %v1100_v29 = vsel %vm696_vm7, %v1097_v9, %v1099_v1  ;;  %v1268_v31 = vmul.f32 %v3796_v0, %v4683_v63  ;;  %v2023_v9 = vld [vmem:[#allocation2 + $0x16c] sm:$0x8] }
 0x185   : > { %v4303_v36 = vld [vmem:[#allocation3 + $0x30] sm:$0xff]   ;;  %v1147_v30 = vadd.f32 %v1098_v22, %v991_v24  ;;  %v1269_v37 = vmul.f32 %v3797_v14, %v4683_v63  ;;  %v1148_v52 = vadd.f32 %v1100_v29, %v992_v19  ;;  %v1373_v48 = vunpack.c.l.bf16 %v1365_v20 }
 0x186   : > { %v1247_v32 = vadd.f32 %v1223_v21, %v1146_v33  ;;  %v1399_v57 = vmul.f32 %v3796_v0, %v4732_v23  ;;  %4184 = vmatprep.mubr.bf16.mxu0 %v4303_v36  ;;  %v1307_v5 = vrot.slane %v1268_v31, 1  ;;  %v1400_v35 = vmul.f32 %v3797_v14, %v4732_v23 }
 0x187   : > { %v1248_v17 = vadd.f32 %v1224_v25, %v1147_v30  ;;  %v1308_v56 = vrot.slane %v1269_v37, 1  ;;  %v1249_v18 = vadd.f32 %v1225_v34, %v1148_v52  ;;  %v1401_v38 = vmul.f32 %v4732_v23, %v1373_v48 }
 0x188   : > { %v1461_v39 = vrot.slane %v1399_v57, 2  ;;  %v322_v40 = vsel %vm4605_vm4, 0, %v321_v27  ;;  %v1355_v49 = vadd.f32 %v1307_v5, %v1247_v32  ;;  %v1462_v51 = vrot.slane %v1400_v35, 2 }
 0x189   : > { %v1309_v60 = vsel %vm555_vm6, %v1307_v5, %v1308_v56  ;;  %323 = vst [vmem:[#allocation2 + $0x184] sm:$0x8] %v322_v40  ;;  %v370_v55 = vsel %vm4610_vm5, 0, %v369_v11  ;;  %v1357_v54 = vadd.f32 %v1308_v56, %v1249_v18  ;;  %v1464_v53 = vrot.slane %v1401_v38, 2 }
 0x18a   : > { %v1356_v50 = vadd.f32 %v1309_v60, %v1248_v17  ;;  %371 = vst [vmem:[#allocation2 + $0x190] sm:$0x1] %v370_v55  ;;  %v1718_v58 = vunpack.c.l.bf16 %v1694_v28  ;;  %v1463_v59 = vsel %vm696_vm7, %v1461_v39, %v1462_v51  ;;  %v1511_v61 = vadd.f32 %v1461_v39, %v1355_v49  ;;  %v2211_v17 = vld [vmem:[#allocation2 + $0x178] sm:$0x1]  ;;  %v4107_v60 = vld [vmem:[#allocation2 + $0x188] sm:$0xff]  }
 0x18b   : > { %v1743_v0 = vmul.f32 %v5334_v62, %v4647_v41  ;;  %v1744_v12 = vmul.f32 %v5337_v16, %v4647_v41  ;;  %v1465_v3 = vsel %vm696_vm7, %v1462_v51, %v1464_v53  ;;  %v1760_v26 = vmul.f32 %v5334_v62, %v4650_v42 }
 0x18c   : > { %v1512_v8 = vadd.f32 %v1463_v59, %v1356_v50  ;;  %v1742_v10 = vmul.f32 %v1718_v58, %v4647_v41  ;;  %v1513_v14 = vadd.f32 %v1465_v3, %v1357_v54  ;;  %v1574_v15 = vrot.slane %v1511_v61, 7 }
 0x18d   : > { %v1761_v24 = vmul.f32 %v5337_v16, %v4650_v42  ;;  %v1866_v19 = vunpack.c.l.bf16 %v1858_v2  ;;  %v1798_v33 = vrot.slane %v1760_v26, 1  ;;  %v1886_v20 = vmul.f32 %v5334_v62, %v4653_v43 }
 0x18e   : > { %v1575_v1 = vrot.slane %v1512_v8, 7  ;;  %v1887_v22 = vmul.f32 %v5337_v16, %v4653_v43  ;;  %v1577_v21 = vrot.slane %v1513_v14, 7  ;;  %v2047_v27 = vunpack.c.l.bf16 %v2023_v9 }
 0x18f   : > { %v1799_v25 = vrot.slane %v1761_v24, 1  ;;  %v1888_v34 = vmul.f32 %v1866_v19, %v4653_v43  ;;  %v1846_v29 = vadd.f32 %v1798_v33, %v1742_v10  ;;  %v1946_v30 = vrot.slane %v1886_v20, 2 }
 0x190   : > { %v1576_v36 = vsel %vm260_vm2, %v1574_v15, %v1575_v1  ;;  %v1947_v31 = vrot.slane %v1887_v22, 2  ;;  %v1578_v37 = vsel %vm260_vm2, %v1575_v1, %v1577_v21  ;;  %v2071_v56 = vmul.f32 %v2047_v27, %v4655_v44  ;;  %v2376_v59 = vld [vmem:[#allocation2 + $0x184] sm:$0x8] }
 0x191   : > { %v1800_v52 = vsel %vm555_vm6, %v1798_v33, %v1799_v25  ;;  %v1848_v32 = vadd.f32 %v1799_v25, %v1744_v12  ;;  %v1949_v48 = vrot.slane %v1888_v34, 2  ;;  %v3836_v62 = vpack.c.bf16 %v1578_v37, %v1576_v36  ;;  %v2564_v1 = vld [vmem:[#allocation2 + $0x190] sm:$0x1]  ;;  %v267_v25 = vld [vmem:[#allocation2 + $0x19c] sm:$0x8] }
 0x192   : > { %v1847_v57 = vadd.f32 %v1800_v52, %v1743_v0  ;;  %v1948_v16 = vsel %vm696_vm7, %v1946_v30, %v1947_v31  ;;  %v1998_v11 = vadd.f32 %v1946_v30, %v1846_v29  ;;  %v2072_v35 = vmul.f32 %v5395_v4, %v4655_v44 }
 0x193   : > { %v1950_v5 = vsel %vm696_vm7, %v1947_v31, %v1949_v48  ;;  %v2073_v28 = vmul.f32 %v5398_v13, %v4655_v44  ;;  %4084 = vst [vmem:[#allocation3 + $0x38] sm:$0xff] %v3836_v62   ;;  %v2113_v39 = vmul.f32 %v5395_v4, %v4658_v45  ;;  %v2114_v40 = vmul.f32 %v5398_v13, %v4658_v45  ;;  %v272_v48 = vld [vmem:[#allocation2 + $0x1a8] sm:$0x1] }
 0x194   : > { %v1999_v18 = vadd.f32 %v1948_v16, %v1847_v57  ;;  %v2000_v38 = vadd.f32 %v1950_v5, %v1848_v32  ;;  %v2095_v49 = vadd.f32 %v2071_v56, %v1998_v11  ;;  %v2219_v51 = vunpack.c.l.bf16 %v2211_v17  ;;  %v1697_v17 = vld [vmem:[#allocation2 + $0x16c] sm:$0x8] }
 0x195   : > { %v2239_v55 = vmul.f32 %v5395_v4, %v4661_v46  ;;  %v2240_v50 = vmul.f32 %v5398_v13, %v4661_v46  ;;  %v2151_v58 = vrot.slane %v2113_v39, 1  ;;  %v2152_v2 = vrot.slane %v2114_v40, 1 }
 0x196   : > { %v2096_v54 = vadd.f32 %v2072_v35, %v1999_v18  ;;  %v2097_v53 = vadd.f32 %v2073_v28, %v2000_v38  ;;  %v2241_v61 = vmul.f32 %v2219_v51, %v4661_v46  ;;  %v5560_v3 = vunpack.c.l.bf16 %v4107_v60 }
 0x197   : > { %v2299_v0 = vrot.slane %v2239_v55, 2  ;;  %v2300_v12 = vrot.slane %v2240_v50, 2  ;;  %v2153_v8 = vsel %vm555_vm6, %v2151_v58, %v2152_v2  ;;  %v2199_v10 = vadd.f32 %v2151_v58, %v2095_v49  ;;  %v1859_v50 = vld [vmem:[#allocation2 + $0x178] sm:$0x1] }
 0x198   : > { %v2201_v26 = vadd.f32 %v2152_v2, %v2097_v53  ;;  %v5563_v9 = vunpack.c.h.bf16 %v4107_v60  ;;  %v2200_v14 = vadd.f32 %v2153_v8, %v2096_v54  ;;  %v2302_v24 = vrot.slane %v2241_v61, 2  ;;  %v5586_v54 = vpop.f32.mrf.mxu0 }
 0x199   : > { %v2301_v15 = vsel %vm696_vm7, %v2299_v0, %v2300_v12  ;;  %v2400_v19 = vunpack.c.l.bf16 %v2376_v59  ;;  %v2351_v33 = vadd.f32 %v2299_v0, %v2199_v10  ;;  %v2425_v20 = vmul.f32 %v5560_v3, %v4664_v47 }
 0x19a   : > { %v2426_v22 = vmul.f32 %v5563_v9, %v4664_v47  ;;  %v2466_v21 = vmul.f32 %v5560_v3, %v4683_v63  ;;  %v4304_v34 = vld [vmem:[#allocation3 + $0x38] sm:$0xff]   ;;  %v2303_v27 = vsel %vm696_vm7, %v2300_v12, %v2302_v24  ;;  %v2352_v36 = vadd.f32 %v2301_v15, %v2200_v14  ;;  %v2026_v12 = vld [vmem:[#allocation2 + $0x184] sm:$0x8] }
 0x19b   : > { %v2424_v29 = vmul.f32 %v2400_v19, %v4664_v47  ;;  %v2467_v30 = vmul.f32 %v5563_v9, %v4683_v63  ;;  %v2353_v31 = vadd.f32 %v2303_v27, %v2201_v26  ;;  %v2572_v52 = vunpack.c.l.bf16 %v2564_v1  ;;  %4185 = vmatmul.mubr.bf16.gmra.mxu0 %v4304_v34 }
 0x19c   : > { %v2504_v37 = vrot.slane %v2466_v21, 1  ;;  %v2592_v32 = vmul.f32 %v5560_v3, %v4732_v23  ;;  %v2449_v57 = vadd.f32 %v2425_v20, %v2352_v36  ;;  %v2593_v11 = vmul.f32 %v5563_v9, %v4732_v23 }
 0x19d   : > { %v2448_v62 = vadd.f32 %v2424_v29, %v2351_v33  ;;  %v2505_v16 = vrot.slane %v2467_v30, 1  ;;  %v2450_v5 = vadd.f32 %v2426_v22, %v2353_v31  ;;  %v2594_v56 = vmul.f32 %v2572_v52, %v4732_v23  ;;  %v5603_v33 = vpop.f32.mrf.mxu0 }
 0x19e   : > { %v2652_v35 = vrot.slane %v2592_v32, 2  ;;  %v268_v28 = vsel %vm4605_vm4, 0, %v267_v25  ;;  %v2653_v39 = vrot.slane %v2593_v11, 2  ;;  %v273_v40 = vsel %vm4610_vm5, 0, %v272_v48  ;;  %v2212_v32 = vld [vmem:[#allocation2 + $0x190] sm:$0x1] }
 0x19f   : > { %v2506_v18 = vsel %vm555_vm6, %v2504_v37, %v2505_v16  ;;  %v2552_v38 = vadd.f32 %v2504_v37, %v2448_v62  ;;  %269 = vst [vmem:[#allocation2 + $0x19c] sm:$0x8] %v268_v28  ;;  %v2554_v49 = vadd.f32 %v2505_v16, %v2450_v5  ;;  %v2655_v51 = vrot.slane %v2594_v56, 2  ;;  %274 = vst [vmem:[#allocation2 + $0x1a8] sm:$0x1] %v273_v40  ;;  %v5610_v48 = vpop.f32.mrf.mxu0 }
 0x1a0   : > { %v2553_v60 = vadd.f32 %v2506_v18, %v2449_v57  ;;  %v1721_v55 = vunpack.c.l.bf16 %v1697_v17  ;;  %v2654_v53 = vsel %vm696_vm7, %v2652_v35, %v2653_v39  ;;  %v1746_v58 = vmul.f32 %v5395_v4, %v4647_v41 }
 0x1a1   : > { %v2704_v6 = vadd.f32 %v2652_v35, %v2552_v38  ;;  %v1747_v2 = vmul.f32 %v5398_v13, %v4647_v41  ;;  %v2656_v7 = vsel %vm696_vm7, %v2653_v39, %v2655_v51  ;;  %v1762_v0 = vmul.f32 %v5395_v4, %v4650_v42  ;;  %v4108_v35 = vld [vmem:[#allocation2 + $0x1a0] sm:$0xff]  }
 0x1a2   : > { %v2705_v59 = vadd.f32 %v2654_v53, %v2553_v60  ;;  %v1745_v61 = vmul.f32 %v1721_v55, %v4647_v41  ;;  %v2706_v8 = vadd.f32 %v2656_v7, %v2554_v49  ;;  %v1763_v26 = vmul.f32 %v5398_v13, %v4650_v42  ;;  %v4190_v55 = vpop.f32.mrf.mxu1 }
 0x1a3   : > { %v2764_v10 = vrot.slane %v2704_v6, 7  ;;  %v1867_v14 = vunpack.c.l.bf16 %v1859_v50  ;;  %v1801_v24 = vrot.slane %v1762_v0, 1  ;;  %v1889_v19 = vmul.f32 %v5395_v4, %v4653_v43  ;;  %v5626_v50 = vpop.f32.mrf.mxu0 }
 0x1a4   : > { %v2765_v15 = vrot.slane %v2705_v59, 7  ;;  %v1890_v1 = vmul.f32 %v5398_v13, %v4653_v43  ;;  %v2767_v41 = vrot.slane %v2706_v8, 7  ;;  %v1802_v20 = vrot.slane %v1763_v26, 1 }
 0x1a5   : > { %v1891_v22 = vmul.f32 %v1867_v14, %v4653_v43  ;;  %v2050_v21 = vunpack.c.l.bf16 %v2026_v12  ;;  %v1849_v34 = vadd.f32 %v1801_v24, %v1745_v61  ;;  %v1951_v42 = vrot.slane %v1889_v19, 2 }
 0x1a6   : > { %v2766_v25 = vsel %vm260_vm2, %v2764_v10, %v2765_v15  ;;  %v1952_v27 = vrot.slane %v1890_v1, 2  ;;  %v2768_v36 = vsel %vm260_vm2, %v2765_v15, %v2767_v41  ;;  %v1803_v29 = vsel %vm555_vm6, %v1801_v24, %v1802_v20  ;;  %v2379_v51 = vld [vmem:[#allocation2 + $0x19c] sm:$0x8]  ;;  %v2565_v8 = vld [vmem:[#allocation2 + $0x1a8] sm:$0x1]  ;;  %v3166_v24 = vpop.f32.mrf.mxu1 }
 0x1a7   : > { %v1851_v4 = vadd.f32 %v1802_v20, %v1747_v2  ;;  %v1954_v30 = vrot.slane %v1891_v22, 2  ;;  %v3967_v31 = vpack.c.bf16 %v2768_v36, %v2766_v25  ;;  %v1850_v13 = vadd.f32 %v1803_v29, %v1746_v58  ;;  %v5637_v15 = vld [vmem:[%s5759_s3] ss:$0 sm:$0xff] }
 0x1a8   : > { %v1953_v37 = vsel %vm696_vm7, %v1951_v42, %v1952_v27  ;;  %v2001_v52 = vadd.f32 %v1951_v42, %v1849_v34  ;;  %v2074_v62 = vmul.f32 %v2050_v21, %v4655_v44  ;;  %v2075_v57 = vmul.f32 %v5560_v3, %v4655_v44 }
 0x1a9   : > { %v1955_v43 = vsel %vm696_vm7, %v1952_v27, %v1954_v30  ;;  %v2076_v16 = vmul.f32 %v5563_v9, %v4655_v44  ;;  %4115 = vst [vmem:[#allocation3 + $0x70] sm:$0xff] %v3967_v31   ;;  %v2002_v11 = vadd.f32 %v1953_v37, %v1850_v13  ;;  %v2115_v5 = vmul.f32 %v5560_v3, %v4658_v45 }
 0x1aa   : > { %v2003_v17 = vadd.f32 %v1955_v43, %v1851_v4  ;;  %v2116_v56 = vmul.f32 %v5563_v9, %v4658_v45  ;;  %v2098_v28 = vadd.f32 %v2074_v62, %v2001_v52  ;;  %v2220_v18 = vunpack.c.l.bf16 %v2212_v32  ;;  %v4191_v52 = vpop.f32.mrf.mxu1 }
 0x1ab   : > { %v2242_v38 = vmul.f32 %v5560_v3, %v4661_v46  ;;  %v2243_v39 = vmul.f32 %v5563_v9, %v4661_v46  ;;  %v2099_v40 = vadd.f32 %v2075_v57, %v2002_v11  ;;  %v2154_v60 = vrot.slane %v2115_v5, 1 }
 0x1ac   : > { %v2100_v44 = vadd.f32 %v2076_v16, %v2003_v17  ;;  %v2155_v49 = vrot.slane %v2116_v56, 1  ;;  %v2244_v53 = vmul.f32 %v2220_v18, %v4661_v46  ;;  %v3932_v58 = vunpack.c.l.bf16 %v4108_v35  ;;  %v4178_v19 = vpop.f32.mrf.mxu0 }
 0x1ad   : > { %v2304_v45 = vrot.slane %v2242_v38, 2  ;;  %v2305_v6 = vrot.slane %v2243_v39, 2  ;;  %v2202_v7 = vadd.f32 %v2154_v60, %v2098_v28  ;;  %v3933_v59 = vunpack.c.h.bf16 %v4108_v35  ;;  %v3169_v39 = vpop.f32.mrf.mxu1 }
 0x1ae   : > { %v2156_v2 = vsel %vm555_vm6, %v2154_v60, %v2155_v49  ;;  %v2204_v3 = vadd.f32 %v2155_v49, %v2100_v44  ;;  %v2307_v0 = vrot.slane %v2244_v53, 2  ;;  %v2403_v12 = vunpack.c.l.bf16 %v2379_v51 }
 0x1af   : > { %v2203_v61 = vadd.f32 %v2156_v2, %v2099_v40  ;;  %v2306_v9 = vsel %vm696_vm7, %v2304_v45, %v2305_v6  ;;  %v2354_v10 = vadd.f32 %v2304_v45, %v2202_v7  ;;  %v2428_v26 = vmul.f32 %v3932_v58, %v4664_v47 }
 0x1b0   : > { %v2429_v14 = vmul.f32 %v3933_v59, %v4664_v47  ;;  %v2468_v46 = vmul.f32 %v3932_v58, %v4683_v63  ;;  %v4305_v1 = vld [vmem:[#allocation3 + $0x70] sm:$0xff]   ;;  %v2308_v41 = vsel %vm696_vm7, %v2305_v6, %v2307_v0  ;;  %v2427_v22 = vmul.f32 %v2403_v12, %v4664_v47 }
 0x1b1   : > { %v2355_v20 = vadd.f32 %v2306_v9, %v2203_v61  ;;  %v2469_v21 = vmul.f32 %v3933_v59, %v4683_v63  ;;  %v2356_v25 = vadd.f32 %v2308_v41, %v2204_v3  ;;  %v2573_v42 = vunpack.c.l.bf16 %v2565_v8  ;;  %4200 = vmatprep.mubr.bf16.mxu1 %v4305_v1  ;;  %v3118_v63 = vpop.f32.mrf.mxu0 }
 0x1b2   : > { %v2507_v34 = vrot.slane %v2468_v46, 1  ;;  %v2595_v27 = vmul.f32 %v3932_v58, %v4732_v23  ;;  %v2451_v36 = vadd.f32 %v2427_v22, %v2354_v10  ;;  %v2596_v30 = vmul.f32 %v3933_v59, %v4732_v23 }
 0x1b3   : > { %v2452_v29 = vadd.f32 %v2428_v26, %v2355_v20  ;;  %v2508_v4 = vrot.slane %v2469_v21, 1  ;;  %v2453_v31 = vadd.f32 %v2429_v14, %v2356_v25  ;;  %v2597_v13 = vmul.f32 %v2573_v42, %v4732_v23  ;;  %v4179_v40 = vpop.f32.mrf.mxu0 }
 0x1b4   : > { %v2657_v37 = vrot.slane %v2595_v27, 2  ;;  %v3111_v47 = vadd.f32 %v5586_v54, %v5637_v15  ;;  %v2555_v43 = vadd.f32 %v2507_v34, %v2451_v36  ;;  %v2658_v62 = vrot.slane %v2596_v30, 2 }
 0x1b5   : > { %v2509_v32 = vsel %vm555_vm6, %v2507_v34, %v2508_v4  ;;  %v3175_v57 = vadd.f32 %v4190_v55, %v5637_v15  ;;  %v2557_v11 = vadd.f32 %v2508_v4, %v2453_v31  ;;  %v2660_v17 = vrot.slane %v2597_v13, 2  ;;  %v3121_v9 = vpop.f32.mrf.mxu0 }
 0x1b6   : > { %v2556_v16 = vadd.f32 %v2509_v32, %v2452_v29  ;;  %v2659_v5 = vsel %vm696_vm7, %v2657_v37, %v2658_v62  ;;  %v2707_v56 = vadd.f32 %v2657_v37, %v2555_v43  ;;  %v3231_v35 = vmax.f32 %v3111_v47, 0.0 }
 0x1b7   : > { %v3103_v23 = vadd.f32 %v5637_v15, %v5603_v33  ;;  %v2661_v54 = vsel %vm696_vm7, %v2658_v62, %v2660_v17  ;;  %v3167_v18 = vadd.f32 %v5637_v15, %v3166_v24  ;;  %v3114_v38 = vadd.f32 %v5610_v48, %v5637_v15 }
 0x1b8   : > { %v2708_v28 = vadd.f32 %v2659_v5, %v2556_v16  ;;  %v2709_v44 = vadd.f32 %v2661_v54, %v2557_v11  ;;  %v2769_v60 = vrot.slane %v2707_v56, 7  ;;  %v3247_v49 = vmax.f32 %v3175_v57, 0.0 }
 0x1b9   : > { %v3178_v51 = vadd.f32 %v4191_v52, %v5637_v15  ;;  %v3229_v53 = vmax.f32 %v3103_v23, 0.0  ;;  %v3232_v45 = vmax.f32 %v3114_v38, 0.0  ;;  %v3106_v33 = vadd.f32 %v5637_v15, %v5626_v50 }
 0x1ba   : > { %v2770_v55 = vrot.slane %v2708_v28, 7  ;;  %v2772_v6 = vrot.slane %v2709_v44, 7  ;;  %v3245_v58 = vmax.f32 %v3167_v18, 0.0  ;;  %v3170_v7 = vadd.f32 %v5637_v15, %v3169_v39 }
 0x1bb   : > { %v3248_v2 = vmax.f32 %v3178_v51, 0.0  ;;  %v3982_v3 = vpack.c.bf16 %v3232_v45, %v3231_v35  ;;  %v3230_v59 = vmax.f32 %v3106_v33, 0.0  ;;  %v3127_v61 = vadd.f32 %v4178_v19, %v5637_v15 }
 0x1bc   : > { %v2771_v48 = vsel %vm260_vm2, %v2769_v60, %v2770_v55  ;;  %v2773_v0 = vsel %vm260_vm2, %v2770_v55, %v2772_v6  ;;  %v3246_v8 = vmax.f32 %v3170_v7, 0.0  ;;  %v3119_v10 = vadd.f32 %v5637_v15, %v3118_v63 }
 0x1bd   : > { %v4022_v12 = vpack.c.bf16 %v3248_v2, %v3247_v49  ;;  %v3972_v26 = vpack.c.bf16 %v2773_v0, %v2771_v48  ;;  %4117 = vst [vmem:[%s5666_s13 + $0x8] sm:$0xff] %v3982_v3   ;;  %v3977_v50 = vpack.c.bf16 %v3230_v59, %v3229_v53  ;;  %v3130_v14 = vadd.f32 %v4179_v40, %v5637_v15 }
 0x1be   : > { %v4017_v46 = vpack.c.bf16 %v3246_v8, %v3245_v58  ;;  %v3122_v24 = vadd.f32 %v5637_v15, %v3121_v9  ;;  %v3235_v19 = vmax.f32 %v3127_v61, 0.0  ;;  %v3233_v41 = vmax.f32 %v3119_v10, 0.0 }
 0x1bf   : > { %4125 = vst [vmem:[%s5666_s13 + $0x48] sm:$0xff] %v4022_v12   ;;  %4116 = vst [vmem:[#allocation3 + $0x78] sm:$0xff] %v3972_v26   ;;  %v3236_v1 = vmax.f32 %v3130_v14, 0.0 }
 0x1c0   : > { %3978 = vst [vmem:[%s5666_s13] sm:$0xff] %v3977_v50   ;;  %4124 = vst [vmem:[%s5666_s13 + $0x40] sm:$0xff] %v4017_v46   ;;  %v3234_v20 = vmax.f32 %v3122_v24, 0.0 }
 0x1c1   : > { %v3992_v22 = vpack.c.bf16 %v3236_v1, %v3235_v19 }
 0x1c2   : > { %v3987_v21 = vpack.c.bf16 %v3234_v20, %v3233_v41 }
 0x1c3   : > { %4119 = vst [vmem:[%s5666_s13 + $0x18] sm:$0xff] %v3992_v22  }
 0x1c4   : > { %4118 = vst [vmem:[%s5666_s13 + $0x10] sm:$0xff] %v3987_v21  }
 0x1c6   : > { %v4306_v25 = vld [vmem:[#allocation3 + $0x78] sm:$0xff]  }
 0x1c7   : > { %4201 = vmatmul.mubr.bf16.gmra.mxu1 %v4306_v25 }
 0x1d8   : > { %v4194_v34 = vpop.f32.mrf.mxu1 }
 0x1d9   : > { %v3191_v27 = vadd.f32 %v4194_v34, %v5637_v15 }
 0x1da   : > { %v3182_v42 = vpop.f32.mrf.mxu1 }
 0x1db   : > { %v3183_v29 = vadd.f32 %v5637_v15, %v3182_v42  ;;  %v3251_v31 = vmax.f32 %v3191_v27, 0.0 }
 0x1dc   : > { %v4195_v36 = vpop.f32.mrf.mxu1 }
 0x1dd   : > { %v3194_v4 = vadd.f32 %v4195_v36, %v5637_v15  ;;  %v3249_v47 = vmax.f32 %v3183_v29, 0.0 }
 0x1de   : > { %v3185_v30 = vpop.f32.mrf.mxu1 }
 0x1df   : > { %v3252_v13 = vmax.f32 %v3194_v4, 0.0  ;;  %v3186_v37 = vadd.f32 %v5637_v15, %v3185_v30 }
 0x1e1   : > { %v4032_v52 = vpack.c.bf16 %v3252_v13, %v3251_v31  ;;  %v3250_v63 = vmax.f32 %v3186_v37, 0.0 }
 0x1e3   : > { %4127 = vst [vmem:[%s5666_s13 + $0x58] sm:$0xff] %v4032_v52   ;;  %v4027_v32 = vpack.c.bf16 %v3250_v63, %v3249_v47 }
 0x1e5   : > { %4126 = vst [vmem:[%s5666_s13 + $0x50] sm:$0xff] %v4027_v32  }
 0x204   : > { %v4182_v43 = vpop.f32.mrf.mxu0 }
 0x205   : > { %v3143_v57 = vadd.f32 %v4182_v43, %v5637_v15 }
 0x206   : > { %v3134_v62 = vpop.f32.mrf.mxu0 }
 0x207   : > { %v3135_v11 = vadd.f32 %v5637_v15, %v3134_v62  ;;  %v3239_v56 = vmax.f32 %v3143_v57, 0.0 }
 0x208   : > { %v4183_v16 = vpop.f32.mrf.mxu0 }
 0x209   : > { %v3146_v17 = vadd.f32 %v4183_v16, %v5637_v15  ;;  %v3237_v54 = vmax.f32 %v3135_v11, 0.0 }
 0x20a   : > { %v3137_v5 = vpop.f32.mrf.mxu0 }
 0x20b   : > { %v3240_v35 = vmax.f32 %v3146_v17, 0.0  ;;  %v3138_v23 = vadd.f32 %v5637_v15, %v3137_v5 }
 0x20d   : > { %v4002_v28 = vpack.c.bf16 %v3240_v35, %v3239_v56  ;;  %v3238_v18 = vmax.f32 %v3138_v23, 0.0 }
 0x20f   : > { %4121 = vst [vmem:[%s5666_s13 + $0x28] sm:$0xff] %v4002_v28   ;;  %v3997_v38 = vpack.c.bf16 %v3238_v18, %v3237_v54 }
 0x211   : > { %4120 = vst [vmem:[%s5666_s13 + $0x20] sm:$0xff] %v3997_v38  }
 0x230   : > { %v4198_v39 = vpop.f32.mrf.mxu1 }
 0x231   : > { %v3207_v44 = vadd.f32 %v4198_v39, %v5637_v15 }
 0x232   : > { %v3198_v40 = vpop.f32.mrf.mxu1 }
 0x233   : > { %v3199_v49 = vadd.f32 %v5637_v15, %v3198_v40  ;;  %v3255_v53 = vmax.f32 %v3207_v44, 0.0 }
 0x234   : > { %v4199_v60 = vpop.f32.mrf.mxu1 }
 0x235   : > { %v3210_v51 = vadd.f32 %v4199_v60, %v5637_v15  ;;  %v3253_v6 = vmax.f32 %v3199_v49, 0.0 }
 0x236   : > { %v3201_v55 = vpop.f32.mrf.mxu1 }
 0x237   : > { %v3256_v45 = vmax.f32 %v3210_v51, 0.0  ;;  %v3202_v33 = vadd.f32 %v5637_v15, %v3201_v55 }
 0x239   : > { %v4042_v58 = vpack.c.bf16 %v3256_v45, %v3255_v53  ;;  %v3254_v2 = vmax.f32 %v3202_v33, 0.0 }
 0x23b   : > { %4129 = vst [vmem:[%s5666_s13 + $0x68] sm:$0xff] %v4042_v58   ;;  %v4037_v7 = vpack.c.bf16 %v3254_v2, %v3253_v6 }
 0x23d   : > { %4128 = vst [vmem:[%s5666_s13 + $0x60] sm:$0xff] %v4037_v7  }
 0x25b   : > { %v4186_v48 = vpop.f32.mrf.mxu0 }
 0x25c   : > { %v3159_v59 = vadd.f32 %v4186_v48, %v5637_v15 }
 0x25d   : > { %v3150_v3 = vpop.f32.mrf.mxu0 }
 0x25e   : > { %v3151_v9 = vadd.f32 %v5637_v15, %v3150_v3  ;;  %v3243_v8 = vmax.f32 %v3159_v59, 0.0 }
 0x25f   : > { %v4187_v61 = vpop.f32.mrf.mxu0 }
 0x260   : > { %v3162_v0 = vadd.f32 %v4187_v61, %v5637_v15  ;;  %v3241_v50 = vmax.f32 %v3151_v9, 0.0 }
 0x261   : > { %v3153_v12 = vpop.f32.mrf.mxu0 }
 0x262   : > { %v3244_v10 = vmax.f32 %v3162_v0, 0.0  ;;  %v3154_v26 = vadd.f32 %v5637_v15, %v3153_v12 }
 0x264   : > { %v4012_v14 = vpack.c.bf16 %v3244_v10, %v3243_v8  ;;  %v3242_v46 = vmax.f32 %v3154_v26, 0.0 }
 0x266   : > { %4123 = vst [vmem:[%s5666_s13 + $0x38] sm:$0xff] %v4012_v14   ;;  %v4007_v24 = vpack.c.bf16 %v3242_v46, %v3241_v50 }
 0x268   : > { %4122 = vst [vmem:[%s5666_s13 + $0x30] sm:$0xff] %v4007_v24  }
 0x287   : > { %v4202_v19 = vpop.f32.mrf.mxu1 }
 0x288   : > { %v3223_v41 = vadd.f32 %v4202_v19, %v5637_v15 }
 0x289   : > { %v3214_v1 = vpop.f32.mrf.mxu1 }
 0x28a   : > { %v3215_v22 = vadd.f32 %v5637_v15, %v3214_v1  ;;  %v3259_v34 = vmax.f32 %v3223_v41, 0.0 }
 0x28b   : > { %v4203_v20 = vpop.f32.mrf.mxu1 }
 0x28c   : > { %v3226_v21 = vadd.f32 %v4203_v20, %v5637_v15  ;;  %v3257_v36 = vmax.f32 %v3215_v22, 0.0 }
 0x28d   : > { %v3217_v25 = vpop.f32.mrf.mxu1 }
 0x28e   : > { %v3260_v42 = vmax.f32 %v3226_v21, 0.0  ;;  %v3218_v27 = vadd.f32 %v5637_v15, %v3217_v25 }
 0x290   : > { %v4052_v29 = vpack.c.bf16 %v3260_v42, %v3259_v34  ;;  %v3258_v4 = vmax.f32 %v3218_v27, 0.0 }
 0x292   : > { %4131 = vst [vmem:[%s5666_s13 + $0x78] sm:$0xff] %v4052_v29   ;;  %v4047_v30 = vpack.c.bf16 %v3258_v4, %v3257_v36 }
 0x294   : > { %4130 = vst [vmem:[%s5666_s13 + $0x70] sm:$0xff] %v4047_v30  }
 0x295   : > { %4374 = shalt.err (!%p4371_p5)
}
 0x296   : > { %s4375_s21 = scalar_lea.hbm %s5709_s7, 2048  ;;  %s4379_s24 = scalar_lea.hbm %s5760_s4, 4096 }
 0x297   : > { %p4376_p2 = scmp.ne.s32.totalorder %s5709_s7, %s4375_s21  ;;  %p4380_p6 = scmp.lt.s32.totalorder %s5709_s7, %s5760_s4 }
 0x298   : > { %p4381_p8 = scmp.lt.s32.totalorder %s4379_s24, %s4375_s21 }
 0x299   : > { %p4377_p1 = pnand %p4376_p2, %p5780_p7 }
 0x29a   : > { %p4382_p3 = por %p4381_p8, %p4380_p6 }
 0x29b   : > { %p4378_p4 = pneg %p4377_p1 }
 0x29d   : > { %p4383_p11 = pnand %p4382_p3, %p4378_p4 }
 0x29f   : > { %4386 = shalt.err (!%p4383_p11)
}
 0x2a0   : > { %s4437_s13 = smov 64   ;;  %s4438_s14 = smov 4  }
 0x2a1   : > { %4227 = dma.vmem_to_hbm [thread:$0]  (%p5780_p7), %s5711_s11, 2048, %s5709_s7, %s3422_s8, %s4437_s13, %s4437_s13, %s4438_s14  }
 0x2a2 PF: > { %s3450_s20 = sand.u32 1, %s4417_s15   ;;  %p5781_p9 = scmp.ne.s32.totalorder %s5766_s22, 0 }
 0x2a3   : > { %p5782_p10 = scmp.ge.s32.totalorder %s4429_s18, 2  ;;  %s3451_s25 = scalar_lea.sflag [#allocation6], %s3450_s20 }
 0x2a5   : > { %p4238_p12 = pnand %p5782_p10, %p5781_p9 }
 0x2a7   : > { %p4239_p13 = pneg %p4238_p12 }
 0x2a9   : > { %4412 = dma.done.wait (%p4239_p13), %s3451_s25, 2048  }
 0x2aa   : > { %4414 = vsyncadd (%p4239_p13), %s3451_s25, 4294965248  ;;  %p18_p0 = scmp.ge.s32.totalorder %s4518_s27, 4   ;;  %s5783_s15 = smov %s4421_s16 }
 0x2ab   : > { %s5784_s16 = smov %s4425_s17  ;;  %s5785_s17 = smov %s4538_s9 }
 0x2ac   : > { %s5786_s18 = smov %s4518_s27  ;;  %20 = sbr.rel (!%p18_p0) target bundleno = 6 (0x6), region = 94 }
 0x2b1   :  { %3456 = vsyncpa [#allocation5], 1 }
 0x2b2   :  { %3458 = vsyncpa [#allocation5 + $0x1], 1 }
 0x2b3   :  { %3459 = vsyncpa [#allocation8], 1 }
 0x2b4   :  { %3460 = vsyncpa [#allocation6], 1 }
 0x2b5   :  { %3462 = vsyncpa [#allocation6 + $0x1], 1 }

</bundles_post_ra>
